<compile_context>
chip_gen: v5e
topology: v5e:2x2
jax: 0.10.0
libtpu: 0.0.40
codegen_flags: <defaults>
</compile_context>

<pallas_src>
import jax
import jax.numpy as jnp
from jax.experimental import pallas as pl
from jax.experimental.pallas import tpu as pltpu


_MM_DTYPE = jnp.bfloat16            # matmul operand dtype (accumulate in f32)
_VMEM_LIMIT = 32 * 1024 * 1024      # safe scoped-VMEM limit on v5e/v6e/v7x


# ----------------------------------------------------------------------------
# Pallas kernels
# ----------------------------------------------------------------------------
def _conv_pool_kernel(p_ref, w_ref, b_ref, o_ref):
    """Fused 3x3 'same' conv + bias + ReLU + 2x2/2 maxpool for a batch tile.

    p_ref: (TB, M, K)  pooled-output patches, M = H2*W2, K = 16*Cin.
    w_ref: (4, K, Cout) per-pool-parity zero-padded weights.
    b_ref: (1, Cout)    bias (f32).
    o_ref: (TB, M, Cout) pooled ReLU output (f32).
    """
    tb, m, k = p_ref.shape
    cout = o_ref.shape[-1]
    x = p_ref[...].reshape(tb * m, k)           # layout-preserving (m % 8 == 0)
    # One MXU dot per pool parity on the SAME patch block; running max.
    acc = jnp.dot(x, w_ref[0], preferred_element_type=jnp.float32)
    for q in range(1, 4):
        acc = jnp.maximum(
            acc, jnp.dot(x, w_ref[q], preferred_element_type=jnp.float32))
    # bias is constant across parities (commutes with max); ReLU is monotone.
    o_ref[...] = jnp.maximum(acc + b_ref[...], 0.0).reshape(tb, m, cout)


def _fc1_relu_fc2_kernel(x_ref, w1_ref, b1_ref, w2_ref, b2_ref, o_ref):
    """o = relu(x @ w1 + b1) @ w2 + b2 for one batch tile (fc2 N padded to 128)."""
    h = jnp.dot(x_ref[...], w1_ref[...], preferred_element_type=jnp.float32)
    h = jnp.maximum(h + b1_ref[...], 0.0)
    # TODO(synk): nn.Dropout(0.5) is an eval-mode identity here (no RNG masking).
    o_ref[...] = jnp.dot(h.astype(w2_ref.dtype), w2_ref[...],
                         preferred_element_type=jnp.float32) + b2_ref[...]


# ----------------------------------------------------------------------------
# XLA-side patch packing (keeps the kernel free of strided slicing)
# ----------------------------------------------------------------------------
def _pool_patches(x_nhwc, dtype):
    """NHWC -> (B, (H/2)*(W/2), 16*C) pooled-output patches.

    Row (b, ho*W2+wo) holds the 4x4 window of the zero-padded input that covers
    the four 3x3 conv receptive fields pooled into output (ho, wo), flattened
    in (u, v, c) order.  Built once in XLA so the kernel gets one contiguous
    DMA per grid step and does pure matmuls.
    """
    B, H, W, C = x_nhwc.shape
    h2, w2 = H // 2, W // 2
    xp = jnp.pad(x_nhwc, ((0, 0), (1, 1), (1, 1), (0, 0)))
    taps = [xp[:, u:u + 2 * h2:2, v:v + 2 * w2:2, :]
            for u in range(4) for v in range(4)]            # 16 x (B, h2, w2, C)
    patch = jnp.stack(taps, axis=3)                         # (B, h2, w2, 16, C)
    return patch.reshape(B, h2 * w2, 16 * C).astype(dtype)


# ----------------------------------------------------------------------------
# Pallas wrappers
# ----------------------------------------------------------------------------
def conv3x3_relu_pool(x_nhwc, w4, b, *, tile_b=8):
    """NHWC 3x3 'same' conv + bias + ReLU + 2x2/2 maxpool, fused in one kernel."""
    B, H, W, Cin = x_nhwc.shape
    h2, w2 = H // 2, W // 2
    M = h2 * w2
    K = w4.shape[1]
    Cout = w4.shape[2]

    patches = _pool_patches(x_nhwc, w4.dtype)               # (B, M, K) bf16
    tb = min(tile_b, B)
    Bp = pl.cdiv(B, tb) * tb
    if Bp != B:
        patches = jnp.pad(patches, ((0, Bp - B), (0, 0), (0, 0)))

    out = pl.pallas_call(
        _conv_pool_kernel,
        out_shape=jax.ShapeDtypeStruct((Bp, M, Cout), jnp.float32),
        grid=(Bp // tb,),
        in_specs=[pl.BlockSpec((tb, M, K), lambda i: (i, 0, 0)),
                  pl.BlockSpec((4, K, Cout), lambda i: (0, 0, 0)),
                  pl.BlockSpec((1, Cout), lambda i: (0, 0))],
        out_specs=pl.BlockSpec((tb, M, Cout), lambda i: (i, 0, 0)),
        compiler_params=pltpu.CompilerParams(
            dimension_semantics=("parallel",),
            vmem_limit_bytes=_VMEM_LIMIT),
    )(patches, w4, b)
    return out[:B].reshape(B, h2, w2, Cout)


def fc1_relu_fc2(x, w1, b1, w2p, b2p, *, tile_b=256):
    """Fused fc1 + ReLU + fc2 (fc2 padded to 128 lanes); tiled over batch."""
    B, K = x.shape
    N1 = w1.shape[1]
    Np = w2p.shape[1]
    x = x.astype(w1.dtype)
    tb = min(tile_b, B)
    Bp = pl.cdiv(B, tb) * tb
    if Bp != B:
        x = jnp.pad(x, ((0, Bp - B), (0, 0)))
    out = pl.pallas_call(
        _fc1_relu_fc2_kernel,
        out_shape=jax.ShapeDtypeStruct((Bp, Np), jnp.float32),
        grid=(Bp // tb,),
        in_specs=[
            pl.BlockSpec((tb, K), lambda i: (i, 0)),
            pl.BlockSpec((K, N1), lambda i: (0, 0)),
            pl.BlockSpec((1, N1), lambda i: (0, 0)),
            pl.BlockSpec((Np, Np), lambda i: (0, 0)),
            pl.BlockSpec((1, Np), lambda i: (0, 0)),
        ],
        out_specs=pl.BlockSpec((tb, Np), lambda i: (i, 0)),
        compiler_params=pltpu.CompilerParams(
            dimension_semantics=("parallel",),
            vmem_limit_bytes=_VMEM_LIMIT),
    )(x, w1, b1, w2p, b2p)
    return out[:B]


# ----------------------------------------------------------------------------
# Parameters (PyTorch layout -> kernel layout, one-time)
# ----------------------------------------------------------------------------
def init_torch_params(key):
    """Random parameters in the PyTorch nn.Module layouts."""
    ks = jax.random.split(key, 8)
    s = 0.05
    return {
        "conv1_w": jax.random.normal(ks[0], (32, 3, 3, 3), jnp.float32) * s,
        "conv1_b": jax.random.normal(ks[1], (32,), jnp.float32) * s,
        "conv2_w": jax.random.normal(ks[2], (64, 32, 3, 3), jnp.float32) * s,
        "conv2_b": jax.random.normal(ks[3], (64,), jnp.float32) * s,
        "fc1_w": jax.random.normal(ks[4], (128, 64 * 8 * 8), jnp.float32) * s,
        "fc1_b": jax.random.normal(ks[5], (128,), jnp.float32) * s,
        "fc2_w": jax.random.normal(ks[6], (10, 128), jnp.float32) * s,
        "fc2_b": jax.random.normal(ks[7], (10,), jnp.float32) * s,
    }


def _prep_conv_weight(w_oihw, dtype):
    """[Cout, Cin, 3, 3] -> (4, 16*Cin, Cout): per pool parity (qh, qw), the
    3x3 weights scattered into the pooled output's 4x4 input window (zeros
    elsewhere), so conv-at-parity-q == patch @ w4[q]."""
    cout, cin = w_oihw.shape[0], w_oihw.shape[1]
    w_hwio = jnp.transpose(w_oihw, (2, 3, 1, 0))            # (3, 3, Cin, Cout)
    w4 = jnp.zeros((4, 4, 4, cin, cout), jnp.float32)
    for q, (qh, qw) in enumerate(((0, 0), (0, 1), (1, 0), (1, 1))):
        w4 = w4.at[q, qh:qh + 3, qw:qw + 3].set(w_hwio)
    return w4.reshape(4, 16 * cin, cout).astype(dtype)


def prepare_params(tp):
    """One-time layout transforms / dtype casts, kept OUT of the jitted path."""
    conv1_w = _prep_conv_weight(tp["conv1_w"], _MM_DTYPE)    # (4, 48, 32)
    conv2_w = _prep_conv_weight(tp["conv2_w"], _MM_DTYPE)    # (4, 512, 64)
    # fc1: [128, 4096(c,h,w)] -> [4096(h,w,c), 128] so the NHWC flatten of the
    # conv2 output feeds it directly (no per-forward transpose).
    fc1_w = jnp.transpose(tp["fc1_w"].reshape(128, 64, 8, 8),
                          (2, 3, 1, 0)).reshape(4096, 128).astype(_MM_DTYPE)
    # fc2: [10, 128] -> [128, 128] zero-padded so the fused fc kernel stores a
    # lane-dense 128-wide output; logits[:, :10] sliced outside.
    fc2_w = jnp.pad(tp["fc2_w"].T, ((0, 0), (0, 118))).astype(_MM_DTYPE)
    fc2_b = jnp.pad(tp["fc2_b"], (0, 118)).reshape(1, 128)
    return {
        "conv1_w": conv1_w, "conv1_b": tp["conv1_b"].reshape(1, 32),
        "conv2_w": conv2_w, "conv2_b": tp["conv2_b"].reshape(1, 64),
        "fc1_w": fc1_w, "fc1_b": tp["fc1_b"].reshape(1, 128),
        "fc2_w": fc2_w, "fc2_b": fc2_b,
    }


# ----------------------------------------------------------------------------
# Forward pass
# ----------------------------------------------------------------------------
@jax.jit
def simple_cnn_forward(params, x_nchw):
    """x_nchw: [B, 3, 32, 32] float32 -> logits [B, 10] (eval-mode forward)."""
    x = jnp.transpose(x_nchw, (0, 2, 3, 1))                          # NCHW -> NHWC once
    x = conv3x3_relu_pool(x, params["conv1_w"], params["conv1_b"])   # [B, 16, 16, 32]
    x = conv3x3_relu_pool(x, params["conv2_w"], params["conv2_b"])   # [B, 8, 8, 64]
    B = x.shape[0]
    flat = x.reshape(B, 8 * 8 * 64)   # NHWC flatten; fc1 columns pre-permuted to match
    logits_padded = fc1_relu_fc2(flat, params["fc1_w"], params["fc1_b"],
                                 params["fc2_w"], params["fc2_b"])   # [B, 128]
    return logits_padded[:, :10]


def reference_forward(tp, x_nchw):
    """Pure JAX/XLA f32 reference matching the PyTorch forward (eval mode)."""
    x = jnp.transpose(x_nchw, (0, 2, 3, 1))
    for wn, bn in (("conv1_w", "conv1_b"), ("conv2_w", "conv2_b")):
        w = jnp.transpose(tp[wn], (2, 3, 1, 0))                      # HWIO
        y = jax.lax.conv_general_dilated(
            x, w, (1, 1), "SAME", dimension_numbers=("NHWC", "HWIO", "NHWC"))
        y = jnp.maximum(y + tp[bn], 0.0)
        B, H, W, C = y.shape
        x = y.reshape(B, H // 2, 2, W // 2, 2, C).max(axis=(2, 4))
    B = x.shape[0]
    flat = jnp.transpose(x, (0, 3, 1, 2)).reshape(B, -1)             # PyTorch NCHW flatten
    h = jnp.maximum(flat @ tp["fc1_w"].T + tp["fc1_b"], 0.0)
    return h @ tp["fc2_w"].T + tp["fc2_b"]


if __name__ == "__main__":
    key = jax.random.PRNGKey(0)
    pkey, xkey = jax.random.split(key)
    torch_params = init_torch_params(pkey)
    params = prepare_params(torch_params)          # one-time weight layout prep
    # Spatial size must be 32x32 / 3 channels so 64*8*8 matches fc1 (as in the model).
    x = jax.random.normal(xkey, (2, 3, 32, 32), jnp.float32)
    out = simple_cnn_forward(params, x)
    jax.block_until_ready(out)
    assert out.shape == (2, 10) and out.dtype == jnp.float32
    ref = reference_forward(torch_params, x)
    max_err = float(jnp.max(jnp.abs(out - ref)))
    # bf16 matmul operands with f32 accumulation -> slightly looser tolerance.
    assert bool(jnp.allclose(out, ref, rtol=2e-2, atol=2e-2)), f"max_err={max_err}"
    print("KERNEL_OK")
</pallas_src>

<mosaic_0001>
module attributes {stable_mosaic.version = 11 : i64} {
  func.func @_conv_pool_kernel(%arg0: i32, %arg1: memref<2x256x48xbf16, #tpu.memory_space<vmem>>, %arg2: memref<4x48x32xbf16, #tpu.memory_space<vmem>>, %arg3: memref<1x32xf32, #tpu.memory_space<vmem>>, %arg4: memref<2x256x32xf32, #tpu.memory_space<vmem>>) attributes {dimension_semantics = [#tpu.dimension_semantics<parallel>], iteration_bounds = array<i64: 1>, scalar_prefetch = 0 : i64, scratch_operands = 0 : i64, tpu.core_type = #tpu.core_type<tc>, window_params = [{transform_indices = @transform_0, window_bounds = array<i64: 2, 256, 48>}, {pipeline_mode = #tpu.pipeline_mode<synchronous>, transform_indices = @transform_1, window_bounds = array<i64: 4, 48, 32>}, {pipeline_mode = #tpu.pipeline_mode<synchronous>, transform_indices = @transform_2, window_bounds = array<i64: 1, 32>}, {transform_indices = @transform_3, window_bounds = array<i64: 2, 256, 32>}]} {
    %c0 = arith.constant 0 : index
    %c0_0 = arith.constant 0 : index
    %c0_1 = arith.constant 0 : index
    %0 = vector.load %arg1[%c0, %c0_0, %c0_1] : memref<2x256x48xbf16, #tpu.memory_space<vmem>>, vector<2x256x48xbf16>
    %1 = vector.shape_cast %0 : vector<2x256x48xbf16> to vector<512x48xbf16>
    %c0_2 = arith.constant 0 : index
    %c0_3 = arith.constant 0 : index
    %c0_4 = arith.constant 0 : index
    %2 = vector.load %arg2[%c0_2, %c0_3, %c0_4] : memref<4x48x32xbf16, #tpu.memory_space<vmem>>, vector<1x48x32xbf16>
    %3 = vector.shape_cast %2 : vector<1x48x32xbf16> to vector<48x32xbf16>
    %cst = arith.constant dense<0.000000e+00> : vector<512x32xf32>
    %4 = tpu.matmul %1, %3, %cst {dimension_numbers = #tpu.dot_dimension_numbers<[1], [0], [0], [1], [0, 0, 1, 1], [], []>} : vector<512x48xbf16>, vector<48x32xbf16>, vector<512x32xf32> -> vector<512x32xf32>
    %c1 = arith.constant 1 : index
    %c0_5 = arith.constant 0 : index
    %c0_6 = arith.constant 0 : index
    %5 = vector.load %arg2[%c1, %c0_5, %c0_6] : memref<4x48x32xbf16, #tpu.memory_space<vmem>>, vector<1x48x32xbf16>
    %6 = vector.shape_cast %5 : vector<1x48x32xbf16> to vector<48x32xbf16>
    %cst_7 = arith.constant dense<0.000000e+00> : vector<512x32xf32>
    %7 = tpu.matmul %1, %6, %cst_7 {dimension_numbers = #tpu.dot_dimension_numbers<[1], [0], [0], [1], [0, 0, 1, 1], [], []>} : vector<512x48xbf16>, vector<48x32xbf16>, vector<512x32xf32> -> vector<512x32xf32>
    %8 = arith.maximumf %4, %7 : vector<512x32xf32>
    %c2 = arith.constant 2 : index
    %c0_8 = arith.constant 0 : index
    %c0_9 = arith.constant 0 : index
    %9 = vector.load %arg2[%c2, %c0_8, %c0_9] : memref<4x48x32xbf16, #tpu.memory_space<vmem>>, vector<1x48x32xbf16>
    %10 = vector.shape_cast %9 : vector<1x48x32xbf16> to vector<48x32xbf16>
    %cst_10 = arith.constant dense<0.000000e+00> : vector<512x32xf32>
    %11 = tpu.matmul %1, %10, %cst_10 {dimension_numbers = #tpu.dot_dimension_numbers<[1], [0], [0], [1], [0, 0, 1, 1], [], []>} : vector<512x48xbf16>, vector<48x32xbf16>, vector<512x32xf32> -> vector<512x32xf32>
    %12 = arith.maximumf %8, %11 : vector<512x32xf32>
    %c3 = arith.constant 3 : index
    %c0_11 = arith.constant 0 : index
    %c0_12 = arith.constant 0 : index
    %13 = vector.load %arg2[%c3, %c0_11, %c0_12] : memref<4x48x32xbf16, #tpu.memory_space<vmem>>, vector<1x48x32xbf16>
    %14 = vector.shape_cast %13 : vector<1x48x32xbf16> to vector<48x32xbf16>
    %cst_13 = arith.constant dense<0.000000e+00> : vector<512x32xf32>
    %15 = tpu.matmul %1, %14, %cst_13 {dimension_numbers = #tpu.dot_dimension_numbers<[1], [0], [0], [1], [0, 0, 1, 1], [], []>} : vector<512x48xbf16>, vector<48x32xbf16>, vector<512x32xf32> -> vector<512x32xf32>
    %16 = arith.maximumf %12, %15 : vector<512x32xf32>
    %c0_14 = arith.constant 0 : index
    %c0_15 = arith.constant 0 : index
    %17 = vector.load %arg3[%c0_14, %c0_15] : memref<1x32xf32, #tpu.memory_space<vmem>>, vector<1x32xf32>
    %18 = vector.broadcast %17 : vector<1x32xf32> to vector<512x32xf32>
    %19 = arith.addf %16, %18 : vector<512x32xf32>
    %cst_16 = arith.constant 0.000000e+00 : f32
    %20 = vector.broadcast %cst_16 : f32 to vector<512x32xf32>
    %21 = arith.maximumf %19, %20 : vector<512x32xf32>
    %22 = vector.shape_cast %21 : vector<512x32xf32> to vector<2x256x32xf32>
    %c0_17 = arith.constant 0 : index
    %c0_18 = arith.constant 0 : index
    %c0_19 = arith.constant 0 : index
    %23 = vector.load %arg4[%c0_17, %c0_18, %c0_19] : memref<2x256x32xf32, #tpu.memory_space<vmem>>, vector<2x256x32xf32>
    tpu.vector_store %arg4[%c0_17, %c0_18, %c0_19], %22 {strides = array<i32>} : memref<2x256x32xf32, #tpu.memory_space<vmem>>, vector<2x256x32xf32>,
    return
  }
  func.func @transform_0(%arg0: i32) -> (i32, i32, i32) {
    %c0_i32 = arith.constant 0 : i32
    %c0_i32_0 = arith.constant 0 : i32
    %c0_i32_1 = arith.constant 0 : i32
    return %arg0, %c0_i32, %c0_i32_0 : i32, i32, i32
  }
  func.func @transform_1(%arg0: i32) -> (i32, i32, i32) {
    %c0_i32 = arith.constant 0 : i32
    %c0_i32_0 = arith.constant 0 : i32
    %c0_i32_1 = arith.constant 0 : i32
    %c0_i32_2 = arith.constant 0 : i32
    return %c0_i32, %c0_i32_0, %c0_i32_1 : i32, i32, i32
  }
  func.func @transform_2(%arg0: i32) -> (i32, i32) {
    %c0_i32 = arith.constant 0 : i32
    %c0_i32_0 = arith.constant 0 : i32
    %c0_i32_1 = arith.constant 0 : i32
    return %c0_i32, %c0_i32_0 : i32, i32
  }
  func.func @transform_3(%arg0: i32) -> (i32, i32, i32) {
    %c0_i32 = arith.constant 0 : i32
    %c0_i32_0 = arith.constant 0 : i32
    %c0_i32_1 = arith.constant 0 : i32
    return %arg0, %c0_i32, %c0_i32_0 : i32, i32, i32
  }
}

module attributes {stable_mosaic.version = 11 : i64} {
  func.func @_conv_pool_kernel(%arg0: i32, %arg1: memref<2x64x512xbf16, #tpu.memory_space<vmem>>, %arg2: memref<4x512x64xbf16, #tpu.memory_space<vmem>>, %arg3: memref<1x64xf32, #tpu.memory_space<vmem>>, %arg4: memref<2x64x64xf32, #tpu.memory_space<vmem>>) attributes {dimension_semantics = [#tpu.dimension_semantics<parallel>], iteration_bounds = array<i64: 1>, scalar_prefetch = 0 : i64, scratch_operands = 0 : i64, tpu.core_type = #tpu.core_type<tc>, window_params = [{transform_indices = @transform_0, window_bounds = array<i64: 2, 64, 512>}, {pipeline_mode = #tpu.pipeline_mode<synchronous>, transform_indices = @transform_1, window_bounds = array<i64: 4, 512, 64>}, {pipeline_mode = #tpu.pipeline_mode<synchronous>, transform_indices = @transform_2, window_bounds = array<i64: 1, 64>}, {transform_indices = @transform_3, window_bounds = array<i64: 2, 64, 64>}]} {
    %c0 = arith.constant 0 : index
    %c0_0 = arith.constant 0 : index
    %c0_1 = arith.constant 0 : index
    %0 = vector.load %arg1[%c0, %c0_0, %c0_1] : memref<2x64x512xbf16, #tpu.memory_space<vmem>>, vector<2x64x512xbf16>
    %1 = vector.shape_cast %0 : vector<2x64x512xbf16> to vector<128x512xbf16>
    %c0_2 = arith.constant 0 : index
    %c0_3 = arith.constant 0 : index
    %c0_4 = arith.constant 0 : index
    %2 = vector.load %arg2[%c0_2, %c0_3, %c0_4] : memref<4x512x64xbf16, #tpu.memory_space<vmem>>, vector<1x512x64xbf16>
    %3 = vector.shape_cast %2 : vector<1x512x64xbf16> to vector<512x64xbf16>
    %cst = arith.constant dense<0.000000e+00> : vector<128x64xf32>
    %4 = tpu.matmul %1, %3, %cst {dimension_numbers = #tpu.dot_dimension_numbers<[1], [0], [0], [1], [0, 0, 1, 1], [], []>} : vector<128x512xbf16>, vector<512x64xbf16>, vector<128x64xf32> -> vector<128x64xf32>
    %c1 = arith.constant 1 : index
    %c0_5 = arith.constant 0 : index
    %c0_6 = arith.constant 0 : index
    %5 = vector.load %arg2[%c1, %c0_5, %c0_6] : memref<4x512x64xbf16, #tpu.memory_space<vmem>>, vector<1x512x64xbf16>
    %6 = vector.shape_cast %5 : vector<1x512x64xbf16> to vector<512x64xbf16>
    %cst_7 = arith.constant dense<0.000000e+00> : vector<128x64xf32>
    %7 = tpu.matmul %1, %6, %cst_7 {dimension_numbers = #tpu.dot_dimension_numbers<[1], [0], [0], [1], [0, 0, 1, 1], [], []>} : vector<128x512xbf16>, vector<512x64xbf16>, vector<128x64xf32> -> vector<128x64xf32>
    %8 = arith.maximumf %4, %7 : vector<128x64xf32>
    %c2 = arith.constant 2 : index
    %c0_8 = arith.constant 0 : index
    %c0_9 = arith.constant 0 : index
    %9 = vector.load %arg2[%c2, %c0_8, %c0_9] : memref<4x512x64xbf16, #tpu.memory_space<vmem>>, vector<1x512x64xbf16>
    %10 = vector.shape_cast %9 : vector<1x512x64xbf16> to vector<512x64xbf16>
    %cst_10 = arith.constant dense<0.000000e+00> : vector<128x64xf32>
    %11 = tpu.matmul %1, %10, %cst_10 {dimension_numbers = #tpu.dot_dimension_numbers<[1], [0], [0], [1], [0, 0, 1, 1], [], []>} : vector<128x512xbf16>, vector<512x64xbf16>, vector<128x64xf32> -> vector<128x64xf32>
    %12 = arith.maximumf %8, %11 : vector<128x64xf32>
    %c3 = arith.constant 3 : index
    %c0_11 = arith.constant 0 : index
    %c0_12 = arith.constant 0 : index
    %13 = vector.load %arg2[%c3, %c0_11, %c0_12] : memref<4x512x64xbf16, #tpu.memory_space<vmem>>, vector<1x512x64xbf16>
    %14 = vector.shape_cast %13 : vector<1x512x64xbf16> to vector<512x64xbf16>
    %cst_13 = arith.constant dense<0.000000e+00> : vector<128x64xf32>
    %15 = tpu.matmul %1, %14, %cst_13 {dimension_numbers = #tpu.dot_dimension_numbers<[1], [0], [0], [1], [0, 0, 1, 1], [], []>} : vector<128x512xbf16>, vector<512x64xbf16>, vector<128x64xf32> -> vector<128x64xf32>
    %16 = arith.maximumf %12, %15 : vector<128x64xf32>
    %c0_14 = arith.constant 0 : index
    %c0_15 = arith.constant 0 : index
    %17 = vector.load %arg3[%c0_14, %c0_15] : memref<1x64xf32, #tpu.memory_space<vmem>>, vector<1x64xf32>
    %18 = vector.broadcast %17 : vector<1x64xf32> to vector<128x64xf32>
    %19 = arith.addf %16, %18 : vector<128x64xf32>
    %cst_16 = arith.constant 0.000000e+00 : f32
    %20 = vector.broadcast %cst_16 : f32 to vector<128x64xf32>
    %21 = arith.maximumf %19, %20 : vector<128x64xf32>
    %22 = vector.shape_cast %21 : vector<128x64xf32> to vector<2x64x64xf32>
    %c0_17 = arith.constant 0 : index
    %c0_18 = arith.constant 0 : index
    %c0_19 = arith.constant 0 : index
    %23 = vector.load %arg4[%c0_17, %c0_18, %c0_19] : memref<2x64x64xf32, #tpu.memory_space<vmem>>, vector<2x64x64xf32>
    tpu.vector_store %arg4[%c0_17, %c0_18, %c0_19], %22 {strides = array<i32>} : memref<2x64x64xf32, #tpu.memory_space<vmem>>, vector<2x64x64xf32>,
    return
  }
  func.func @transform_0(%arg0: i32) -> (i32, i32, i32) {
    %c0_i32 = arith.constant 0 : i32
    %c0_i32_0 = arith.constant 0 : i32
    %c0_i32_1 = arith.constant 0 : i32
    return %arg0, %c0_i32, %c0_i32_0 : i32, i32, i32
  }
  func.func @transform_1(%arg0: i32) -> (i32, i32, i32) {
    %c0_i32 = arith.constant 0 : i32
    %c0_i32_0 = arith.constant 0 : i32
    %c0_i32_1 = arith.constant 0 : i32
    %c0_i32_2 = arith.constant 0 : i32
    return %c0_i32, %c0_i32_0, %c0_i32_1 : i32, i32, i32
  }
  func.func @transform_2(%arg0: i32) -> (i32, i32) {
    %c0_i32 = arith.constant 0 : i32
    %c0_i32_0 = arith.constant 0 : i32
    %c0_i32_1 = arith.constant 0 : i32
    return %c0_i32, %c0_i32_0 : i32, i32
  }
  func.func @transform_3(%arg0: i32) -> (i32, i32, i32) {
    %c0_i32 = arith.constant 0 : i32
    %c0_i32_0 = arith.constant 0 : i32
    %c0_i32_1 = arith.constant 0 : i32
    return %arg0, %c0_i32, %c0_i32_0 : i32, i32, i32
  }
}

module attributes {stable_mosaic.version = 11 : i64} {
  func.func @_fc1_relu_fc2_kernel(%arg0: i32, %arg1: memref<2x4096xbf16, #tpu.memory_space<vmem>>, %arg2: memref<4096x128xbf16, #tpu.memory_space<vmem>>, %arg3: memref<1x128xf32, #tpu.memory_space<vmem>>, %arg4: memref<128x128xbf16, #tpu.memory_space<vmem>>, %arg5: memref<1x128xf32, #tpu.memory_space<vmem>>, %arg6: memref<2x128xf32, #tpu.memory_space<vmem>>) attributes {dimension_semantics = [#tpu.dimension_semantics<parallel>], iteration_bounds = array<i64: 1>, scalar_prefetch = 0 : i64, scratch_operands = 0 : i64, tpu.core_type = #tpu.core_type<tc>, window_params = [{transform_indices = @transform_0, window_bounds = array<i64: 2, 4096>}, {pipeline_mode = #tpu.pipeline_mode<synchronous>, transform_indices = @transform_1, window_bounds = array<i64: 4096, 128>}, {pipeline_mode = #tpu.pipeline_mode<synchronous>, transform_indices = @transform_2, window_bounds = array<i64: 1, 128>}, {pipeline_mode = #tpu.pipeline_mode<synchronous>, transform_indices = @transform_3, window_bounds = array<i64: 128, 128>}, {pipeline_mode = #tpu.pipeline_mode<synchronous>, transform_indices = @transform_4, window_bounds = array<i64: 1, 128>}, {transform_indices = @transform_5, window_bounds = array<i64: 2, 128>}]} {
    %c0 = arith.constant 0 : index
    %c0_0 = arith.constant 0 : index
    %0 = vector.load %arg1[%c0, %c0_0] : memref<2x4096xbf16, #tpu.memory_space<vmem>>, vector<2x4096xbf16>
    %c0_1 = arith.constant 0 : index
    %c0_2 = arith.constant 0 : index
    %1 = vector.load %arg2[%c0_1, %c0_2] : memref<4096x128xbf16, #tpu.memory_space<vmem>>, vector<4096x128xbf16>
    %cst = arith.constant dense<0.000000e+00> : vector<2x128xf32>
    %2 = tpu.matmul %0, %1, %cst {dimension_numbers = #tpu.dot_dimension_numbers<[1], [0], [0], [1], [0, 0, 1, 1], [], []>} : vector<2x4096xbf16>, vector<4096x128xbf16>, vector<2x128xf32> -> vector<2x128xf32>
    %c0_3 = arith.constant 0 : index
    %c0_4 = arith.constant 0 : index
    %3 = vector.load %arg3[%c0_3, %c0_4] : memref<1x128xf32, #tpu.memory_space<vmem>>, vector<1x128xf32>
    %4 = vector.broadcast %3 : vector<1x128xf32> to vector<2x128xf32>
    %5 = arith.addf %2, %4 : vector<2x128xf32>
    %cst_5 = arith.constant 0.000000e+00 : f32
    %6 = vector.broadcast %cst_5 : f32 to vector<2x128xf32>
    %7 = arith.maximumf %5, %6 : vector<2x128xf32>
    %8 = arith.truncf %7 : vector<2x128xf32> to vector<2x128xbf16>
    %c0_6 = arith.constant 0 : index
    %c0_7 = arith.constant 0 : index
    %9 = vector.load %arg4[%c0_6, %c0_7] : memref<128x128xbf16, #tpu.memory_space<vmem>>, vector<128x128xbf16>
    %cst_8 = arith.constant dense<0.000000e+00> : vector<2x128xf32>
    %10 = tpu.matmul %8, %9, %cst_8 {dimension_numbers = #tpu.dot_dimension_numbers<[1], [0], [0], [1], [0, 0, 1, 1], [], []>} : vector<2x128xbf16>, vector<128x128xbf16>, vector<2x128xf32> -> vector<2x128xf32>
    %c0_9 = arith.constant 0 : index
    %c0_10 = arith.constant 0 : index
    %11 = vector.load %arg5[%c0_9, %c0_10] : memref<1x128xf32, #tpu.memory_space<vmem>>, vector<1x128xf32>
    %12 = vector.broadcast %11 : vector<1x128xf32> to vector<2x128xf32>
    %13 = arith.addf %10, %12 : vector<2x128xf32>
    %c0_11 = arith.constant 0 : index
    %c0_12 = arith.constant 0 : index
    %14 = vector.load %arg6[%c0_11, %c0_12] : memref<2x128xf32, #tpu.memory_space<vmem>>, vector<2x128xf32>
    tpu.vector_store %arg6[%c0_11, %c0_12], %13 {strides = array<i32>} : memref<2x128xf32, #tpu.memory_space<vmem>>, vector<2x128xf32>,
    return
  }
  func.func @transform_0(%arg0: i32) -> (i32, i32) {
    %c0_i32 = arith.constant 0 : i32
    %c0_i32_0 = arith.constant 0 : i32
    return %arg0, %c0_i32 : i32, i32
  }
  func.func @transform_1(%arg0: i32) -> (i32, i32) {
    %c0_i32 = arith.constant 0 : i32
    %c0_i32_0 = arith.constant 0 : i32
    %c0_i32_1 = arith.constant 0 : i32
    return %c0_i32, %c0_i32_0 : i32, i32
  }
  func.func @transform_2(%arg0: i32) -> (i32, i32) {
    %c0_i32 = arith.constant 0 : i32
    %c0_i32_0 = arith.constant 0 : i32
    %c0_i32_1 = arith.constant 0 : i32
    return %c0_i32, %c0_i32_0 : i32, i32
  }
  func.func @transform_3(%arg0: i32) -> (i32, i32) {
    %c0_i32 = arith.constant 0 : i32
    %c0_i32_0 = arith.constant 0 : i32
    %c0_i32_1 = arith.constant 0 : i32
    return %c0_i32, %c0_i32_0 : i32, i32
  }
  func.func @transform_4(%arg0: i32) -> (i32, i32) {
    %c0_i32 = arith.constant 0 : i32
    %c0_i32_0 = arith.constant 0 : i32
    %c0_i32_1 = arith.constant 0 : i32
    return %c0_i32, %c0_i32_0 : i32, i32
  }
  func.func @transform_5(%arg0: i32) -> (i32, i32) {
    %c0_i32 = arith.constant 0 : i32
    %c0_i32_0 = arith.constant 0 : i32
    return %arg0, %c0_i32 : i32, i32
  }
}

</mosaic_0001>

<bundles_post_ra>
// kernel: simple_cnn_forward.3
= control target key start
LH: loop header
LB: loop body
LE: loop exit
PB: predicated region body
PF: predicated region fallthrough
CT: control target
= control target key end

     0   :  { %vm263_vm0 = vcmask 392192   ;;  %vm1435_vm1 = vcmask 261120   ;;  %s2482_s1 = inlined_call_operand.vmem [shape: bf16[4,48,32], index: 1, kind: input, shape index: {}]   ;;  %s2483_s0 = inlined_call_operand.vmem [shape: bf16[2,256,48], index: 0, kind: input, shape index: {}]   ;;  %s2484_s2 = inlined_call_operand.vmem [shape: f32[1,32], index: 2, kind: input, shape index: {}]   ;;  %s2485_s3 = inlined_call_operand.vmem [shape: f32[2,256,32], index: 3, kind: output, shape index: {}]  }
   0x1   :  { %v1860_v0 = vld [vmem:[%s2482_s1 + $0x10] sm:$0xff]  ;;  %v1863_v1 = vld [vmem:[%s2482_s1 + $0x28] sm:$0xff]  ;;  %v1866_v2 = vld [vmem:[%s2482_s1 + $0x40] sm:$0xff] }
   0x2   :  { %v1869_v3 = vld [vmem:[%s2482_s1 + $0x58] sm:$0xff]  ;;  %365 = vmatpush.bf16.msra.mxu0 %v1860_v0  ;;  %559 = vmatpush.bf16.msra.mxu1 %v1863_v1  ;;  %v1859_v4 = vld [vmem:[%s2482_s1 + $0x8] sm:$0xff]  ;;  %v1862_v5 = vld [vmem:[%s2482_s1 + $0x20] sm:$0xff] }
   0x3   :  { %817 = vmatpush.bf16.msra.mxu2 %v1866_v2  ;;  %1075 = vmatpush.bf16.msra.mxu3 %v1869_v3  ;;  %v1865_v6 = vld [vmem:[%s2482_s1 + $0x38] sm:$0xff]  ;;  %v1868_v7 = vld [vmem:[%s2482_s1 + $0x50] sm:$0xff]  ;;  %v1858_v8 = vld [vmem:[%s2482_s1] sm:$0xff] }
   0x4   :  { %v1861_v9 = vld [vmem:[%s2482_s1 + $0x18] sm:$0xff]  ;;  %v1864_v10 = vld [vmem:[%s2482_s1 + $0x30] sm:$0xff]  ;;  %v1867_v11 = vld [vmem:[%s2482_s1 + $0x48] sm:$0xff] }
   0x5   :  { %v1826_v12 = vld [vmem:[%s2483_s0] sm:$0xff]  ;;  %v1827_v13 = vld [vmem:[%s2483_s0 + $0x8] sm:$0xff]  ;;  %v1828_v14 = vld [vmem:[%s2483_s0 + $0x10] sm:$0xff] }
   0x6   :  { %366 = vmatpush.bf16.msra.mxu0 %v1859_v4  ;;  %560 = vmatpush.bf16.msra.mxu1 %v1862_v5  ;;  %v1829_v15 = vld [vmem:[%s2483_s0 + $0x18] sm:$0xff]  ;;  %v1830_v16 = vld [vmem:[%s2483_s0 + $0x20] sm:$0xff]  ;;  %v1831_v17 = vld [vmem:[%s2483_s0 + $0x28] sm:$0xff] }
   0x7   :  { %818 = vmatpush.bf16.msra.mxu2 %v1865_v6  ;;  %1076 = vmatpush.bf16.msra.mxu3 %v1868_v7  ;;  %v1832_v18 = vld [vmem:[%s2483_s0 + $0x30] sm:$0xff]  ;;  %v1833_v19 = vld [vmem:[%s2483_s0 + $0x38] sm:$0xff]  ;;  %v1834_v20 = vld [vmem:[%s2483_s0 + $0x40] sm:$0xff] }
   0x8   :  { %v1994_v27 = vld [vmem:[%s2484_s2] ss:$0 sm:$0xff]  ;;  %v1835_v36 = vld [vmem:[%s2483_s0 + $0x48] sm:$0xff]  ;;  %v1836_v55 = vld [vmem:[%s2483_s0 + $0x50] sm:$0xff] }
   0xa   :  { %367 = vmatpush.bf16.msra.mxu0 %v1858_v8  ;;  %561 = vmatpush.bf16.msra.mxu1 %v1861_v9 }
   0xb   :  { %819 = vmatpush.bf16.msra.mxu2 %v1864_v10  ;;  %1077 = vmatpush.bf16.msra.mxu3 %v1867_v11  ;;  %v1837_v10 = vld [vmem:[%s2483_s0 + $0x58] sm:$0xff] }
   0xd   :  { %1644 = vmatmul.msk.bf16.vlgmr.msra.gmra.mxu0 %vm263_vm0, %v1826_v12  ;;  %1694 = vmatmul.msk.bf16.vlgmr.msra.gmra.mxu1 %vm263_vm0, %v1826_v12 }
   0xe   :  { %1744 = vmatmul.msk.bf16.vlgmr.msra.gmra.mxu2 %vm263_vm0, %v1826_v12  ;;  %1794 = vmatmul.msk.bf16.vlgmr.msra.gmra.mxu3 %vm263_vm0, %v1826_v12 }
  0x1d   :  { %1645 = vmatmul.msk.bf16.gmra.mxu0 %vm263_vm0, %v1827_v13  ;;  %1695 = vmatmul.msk.bf16.gmra.mxu1 %vm263_vm0, %v1827_v13 }
  0x1e   :  { %1745 = vmatmul.msk.bf16.gmra.mxu2 %vm263_vm0, %v1827_v13  ;;  %1795 = vmatmul.msk.bf16.gmra.mxu3 %vm263_vm0, %v1827_v13 }
  0x2d   :  { %1646 = vmatmul.msk.bf16.gmra.mxu0 %vm263_vm0, %v1828_v14  ;;  %1696 = vmatmul.msk.bf16.gmra.mxu1 %vm263_vm0, %v1828_v14 }
  0x2e   :  { %1746 = vmatmul.msk.bf16.gmra.mxu2 %vm263_vm0, %v1828_v14  ;;  %1796 = vmatmul.msk.bf16.gmra.mxu3 %vm263_vm0, %v1828_v14 }
  0x3d   :  { %1647 = vmatmul.msk.bf16.gmra.mxu0 %vm263_vm0, %v1829_v15  ;;  %1697 = vmatmul.msk.bf16.gmra.mxu1 %vm263_vm0, %v1829_v15 }
  0x3e   :  { %1747 = vmatmul.msk.bf16.gmra.mxu2 %vm263_vm0, %v1829_v15  ;;  %1797 = vmatmul.msk.bf16.gmra.mxu3 %vm263_vm0, %v1829_v15 }
  0x4d   :  { %1648 = vmatmul.msk.bf16.gmra.mxu0 %vm263_vm0, %v1830_v16  ;;  %1698 = vmatmul.msk.bf16.gmra.mxu1 %vm263_vm0, %v1830_v16 }
  0x4e   :  { %1748 = vmatmul.msk.bf16.gmra.mxu2 %vm263_vm0, %v1830_v16  ;;  %1798 = vmatmul.msk.bf16.gmra.mxu3 %vm263_vm0, %v1830_v16 }
  0x5d   :  { %1649 = vmatmul.msk.bf16.gmra.mxu0 %vm263_vm0, %v1831_v17  ;;  %1699 = vmatmul.msk.bf16.gmra.mxu1 %vm263_vm0, %v1831_v17 }
  0x5e   :  { %1749 = vmatmul.msk.bf16.gmra.mxu2 %vm263_vm0, %v1831_v17  ;;  %1799 = vmatmul.msk.bf16.gmra.mxu3 %vm263_vm0, %v1831_v17 }
  0x6d   :  { %1650 = vmatmul.msk.bf16.gmra.mxu0 %vm263_vm0, %v1832_v18  ;;  %1700 = vmatmul.msk.bf16.gmra.mxu1 %vm263_vm0, %v1832_v18 }
  0x6e   :  { %1750 = vmatmul.msk.bf16.gmra.mxu2 %vm263_vm0, %v1832_v18  ;;  %1800 = vmatmul.msk.bf16.gmra.mxu3 %vm263_vm0, %v1832_v18 }
  0x7d   :  { %1651 = vmatmul.msk.bf16.gmra.mxu0 %vm263_vm0, %v1833_v19  ;;  %1701 = vmatmul.msk.bf16.gmra.mxu1 %vm263_vm0, %v1833_v19 }
  0x7e   :  { %1751 = vmatmul.msk.bf16.gmra.mxu2 %vm263_vm0, %v1833_v19  ;;  %1801 = vmatmul.msk.bf16.gmra.mxu3 %vm263_vm0, %v1833_v19 }
  0x8a   :  { %v369_v21 = vpop.f32.mrf.mxu0  ;;  %v563_v22 = vpop.f32.mrf.mxu1 }
  0x8b   :  { %v723_v23 = vmax.f32 %v369_v21, %v563_v22 }
  0x8d   :  { %1652 = vmatmul.msk.bf16.gmra.mxu0 %vm263_vm0, %v1834_v20  ;;  %1702 = vmatmul.msk.bf16.gmra.mxu1 %vm263_vm0, %v1834_v20 }
  0x8e   :  { %1752 = vmatmul.msk.bf16.gmra.mxu2 %vm263_vm0, %v1834_v20  ;;  %1802 = vmatmul.msk.bf16.gmra.mxu3 %vm263_vm0, %v1834_v20 }
  0x91   :  { %v821_v24 = vpop.f32.mrf.mxu2  ;;  %v1079_v25 = vpop.f32.mrf.mxu3 }
  0x92   :  { %v981_v26 = vmax.f32 %v723_v23, %v821_v24  ;;  %v371_v28 = vpop.f32.mrf.mxu0  ;;  %v565_v29 = vpop.f32.mrf.mxu1 }
  0x93   :  { %v724_v33 = vmax.f32 %v371_v28, %v565_v29 }
  0x94   :  { %v1239_v30 = vmax.f32 %v981_v26, %v1079_v25 }
  0x96   :  { %v1307_v31 = vadd.f32 %v1994_v27, %v1239_v30  ;;  %v1838_v30 = vld [vmem:[%s2483_s0 + $0x60] sm:$0xff] }
  0x98   :  { %v1371_v32 = vmax.f32 %v1307_v31, 0.0 }
  0x99   :  { %v823_v34 = vpop.f32.mrf.mxu2  ;;  %v1081_v35 = vpop.f32.mrf.mxu3 }
  0x9a   :  { %1436 = vst.msk [vmem:[%s2485_s3] sm:$0xff] %vm1435_vm1, %v1371_v32  ;;  %v982_v37 = vmax.f32 %v724_v33, %v823_v34  ;;  %v374_v38 = vpop.f32.mrf.mxu0  ;;  %v568_v39 = vpop.f32.mrf.mxu1 }
  0x9b   :  { %v725_v42 = vmax.f32 %v374_v38, %v568_v39 }
  0x9c   :  { %v1240_v40 = vmax.f32 %v982_v37, %v1081_v35 }
  0x9d   :  { %1653 = vmatmul.msk.bf16.gmra.mxu0 %vm263_vm0, %v1835_v36  ;;  %1703 = vmatmul.msk.bf16.gmra.mxu1 %vm263_vm0, %v1835_v36 }
  0x9e   :  { %v1308_v41 = vadd.f32 %v1994_v27, %v1240_v40  ;;  %1753 = vmatmul.msk.bf16.gmra.mxu2 %vm263_vm0, %v1835_v36  ;;  %1803 = vmatmul.msk.bf16.gmra.mxu3 %vm263_vm0, %v1835_v36 }
  0xa0   :  { %v1372_v43 = vmax.f32 %v1308_v41, 0.0 }
  0xa1   :  { %v826_v44 = vpop.f32.mrf.mxu2  ;;  %v1084_v45 = vpop.f32.mrf.mxu3 }
  0xa2   :  { %1437 = vst.msk [vmem:[%s2485_s3 + $0x8] sm:$0xff] %vm1435_vm1, %v1372_v43  ;;  %v983_v46 = vmax.f32 %v725_v42, %v826_v44  ;;  %v376_v47 = vpop.f32.mrf.mxu0  ;;  %v570_v48 = vpop.f32.mrf.mxu1 }
  0xa3   :  { %v726_v52 = vmax.f32 %v376_v47, %v570_v48 }
  0xa4   :  { %v1241_v49 = vmax.f32 %v983_v46, %v1084_v45 }
  0xa6   :  { %v1309_v50 = vadd.f32 %v1994_v27, %v1241_v49  ;;  %v1839_v49 = vld [vmem:[%s2483_s0 + $0x68] sm:$0xff] }
  0xa8   :  { %v1373_v51 = vmax.f32 %v1309_v50, 0.0 }
  0xa9   :  { %v828_v53 = vpop.f32.mrf.mxu2  ;;  %v1086_v54 = vpop.f32.mrf.mxu3 }
  0xaa   :  { %1438 = vst.msk [vmem:[%s2485_s3 + $0x10] sm:$0xff] %vm1435_vm1, %v1373_v51  ;;  %v984_v56 = vmax.f32 %v726_v52, %v828_v53  ;;  %v379_v57 = vpop.f32.mrf.mxu0  ;;  %v573_v58 = vpop.f32.mrf.mxu1 }
  0xab   :  { %v727_v61 = vmax.f32 %v379_v57, %v573_v58 }
  0xac   :  { %v1242_v59 = vmax.f32 %v984_v56, %v1086_v54 }
  0xad   :  { %1654 = vmatmul.msk.bf16.gmra.mxu0 %vm263_vm0, %v1836_v55  ;;  %1704 = vmatmul.msk.bf16.gmra.mxu1 %vm263_vm0, %v1836_v55 }
  0xae   :  { %v1310_v60 = vadd.f32 %v1994_v27, %v1242_v59  ;;  %1754 = vmatmul.msk.bf16.gmra.mxu2 %vm263_vm0, %v1836_v55  ;;  %1804 = vmatmul.msk.bf16.gmra.mxu3 %vm263_vm0, %v1836_v55 }
  0xb0   :  { %v1374_v62 = vmax.f32 %v1310_v60, 0.0 }
  0xb1   :  { %v831_v63 = vpop.f32.mrf.mxu2  ;;  %v1089_v0 = vpop.f32.mrf.mxu3 }
  0xb2   :  { %1439 = vst.msk [vmem:[%s2485_s3 + $0x18] sm:$0xff] %vm1435_vm1, %v1374_v62  ;;  %v985_v1 = vmax.f32 %v727_v61, %v831_v63  ;;  %v381_v2 = vpop.f32.mrf.mxu0  ;;  %v575_v3 = vpop.f32.mrf.mxu1 }
  0xb3   :  { %v728_v7 = vmax.f32 %v381_v2, %v575_v3 }
  0xb4   :  { %v1243_v4 = vmax.f32 %v985_v1, %v1089_v0 }
  0xb6   :  { %v1311_v5 = vadd.f32 %v1994_v27, %v1243_v4  ;;  %v1840_v4 = vld [vmem:[%s2483_s0 + $0x70] sm:$0xff] }
  0xb8   :  { %v1375_v6 = vmax.f32 %v1311_v5, 0.0 }
  0xb9   :  { %v833_v8 = vpop.f32.mrf.mxu2  ;;  %v1091_v9 = vpop.f32.mrf.mxu3 }
  0xba   :  { %1440 = vst.msk [vmem:[%s2485_s3 + $0x20] sm:$0xff] %vm1435_vm1, %v1375_v6  ;;  %v986_v11 = vmax.f32 %v728_v7, %v833_v8  ;;  %v384_v12 = vpop.f32.mrf.mxu0  ;;  %v578_v13 = vpop.f32.mrf.mxu1 }
  0xbb   :  { %v729_v16 = vmax.f32 %v384_v12, %v578_v13 }
  0xbc   :  { %v1244_v14 = vmax.f32 %v986_v11, %v1091_v9 }
  0xbd   :  { %1655 = vmatmul.msk.bf16.gmra.mxu0 %vm263_vm0, %v1837_v10  ;;  %1705 = vmatmul.msk.bf16.gmra.mxu1 %vm263_vm0, %v1837_v10 }
  0xbe   :  { %v1312_v15 = vadd.f32 %v1994_v27, %v1244_v14  ;;  %1755 = vmatmul.msk.bf16.gmra.mxu2 %vm263_vm0, %v1837_v10  ;;  %1805 = vmatmul.msk.bf16.gmra.mxu3 %vm263_vm0, %v1837_v10 }
  0xc0   :  { %v1376_v17 = vmax.f32 %v1312_v15, 0.0 }
  0xc1   :  { %v836_v18 = vpop.f32.mrf.mxu2  ;;  %v1094_v19 = vpop.f32.mrf.mxu3 }
  0xc2   :  { %1441 = vst.msk [vmem:[%s2485_s3 + $0x28] sm:$0xff] %vm1435_vm1, %v1376_v17  ;;  %v987_v20 = vmax.f32 %v729_v16, %v836_v18  ;;  %v386_v21 = vpop.f32.mrf.mxu0  ;;  %v580_v22 = vpop.f32.mrf.mxu1 }
  0xc3   :  { %v730_v26 = vmax.f32 %v386_v21, %v580_v22 }
  0xc4   :  { %v1245_v23 = vmax.f32 %v987_v20, %v1094_v19 }
  0xc6   :  { %v1313_v24 = vadd.f32 %v1994_v27, %v1245_v23  ;;  %v1841_v23 = vld [vmem:[%s2483_s0 + $0x78] sm:$0xff] }
  0xc8   :  { %v1377_v25 = vmax.f32 %v1313_v24, 0.0 }
  0xc9   :  { %v838_v28 = vpop.f32.mrf.mxu2  ;;  %v1096_v29 = vpop.f32.mrf.mxu3 }
  0xca   :  { %1442 = vst.msk [vmem:[%s2485_s3 + $0x30] sm:$0xff] %vm1435_vm1, %v1377_v25  ;;  %v988_v31 = vmax.f32 %v730_v26, %v838_v28  ;;  %v389_v32 = vpop.f32.mrf.mxu0  ;;  %v583_v33 = vpop.f32.mrf.mxu1 }
  0xcb   :  { %v731_v36 = vmax.f32 %v389_v32, %v583_v33 }
  0xcc   :  { %v1246_v34 = vmax.f32 %v988_v31, %v1096_v29 }
  0xcd   :  { %1656 = vmatmul.msk.bf16.gmra.mxu0 %vm263_vm0, %v1838_v30  ;;  %1706 = vmatmul.msk.bf16.gmra.mxu1 %vm263_vm0, %v1838_v30 }
  0xce   :  { %v1314_v35 = vadd.f32 %v1994_v27, %v1246_v34  ;;  %1756 = vmatmul.msk.bf16.gmra.mxu2 %vm263_vm0, %v1838_v30  ;;  %1806 = vmatmul.msk.bf16.gmra.mxu3 %vm263_vm0, %v1838_v30 }
  0xd0   :  { %v1378_v37 = vmax.f32 %v1314_v35, 0.0 }
  0xd1   :  { %v841_v38 = vpop.f32.mrf.mxu2  ;;  %v1099_v39 = vpop.f32.mrf.mxu3 }
  0xd2   :  { %1443 = vst.msk [vmem:[%s2485_s3 + $0x38] sm:$0xff] %vm1435_vm1, %v1378_v37  ;;  %v989_v40 = vmax.f32 %v731_v36, %v841_v38  ;;  %v391_v41 = vpop.f32.mrf.mxu0  ;;  %v585_v42 = vpop.f32.mrf.mxu1 }
  0xd3   :  { %v732_v46 = vmax.f32 %v391_v41, %v585_v42 }
  0xd4   :  { %v1247_v43 = vmax.f32 %v989_v40, %v1099_v39 }
  0xd6   :  { %v1315_v44 = vadd.f32 %v1994_v27, %v1247_v43  ;;  %v1842_v43 = vld [vmem:[%s2483_s0 + $0x80] sm:$0xff] }
  0xd8   :  { %v1379_v45 = vmax.f32 %v1315_v44, 0.0 }
  0xd9   :  { %v843_v47 = vpop.f32.mrf.mxu2  ;;  %v1101_v48 = vpop.f32.mrf.mxu3 }
  0xda   :  { %1444 = vst.msk [vmem:[%s2485_s3 + $0x40] sm:$0xff] %vm1435_vm1, %v1379_v45  ;;  %v990_v50 = vmax.f32 %v732_v46, %v843_v47  ;;  %v394_v51 = vpop.f32.mrf.mxu0  ;;  %v588_v52 = vpop.f32.mrf.mxu1 }
  0xdb   :  { %v733_v55 = vmax.f32 %v394_v51, %v588_v52 }
  0xdc   :  { %v1248_v53 = vmax.f32 %v990_v50, %v1101_v48 }
  0xdd   :  { %1657 = vmatmul.msk.bf16.gmra.mxu0 %vm263_vm0, %v1839_v49  ;;  %1707 = vmatmul.msk.bf16.gmra.mxu1 %vm263_vm0, %v1839_v49 }
  0xde   :  { %v1316_v54 = vadd.f32 %v1994_v27, %v1248_v53  ;;  %1757 = vmatmul.msk.bf16.gmra.mxu2 %vm263_vm0, %v1839_v49  ;;  %1807 = vmatmul.msk.bf16.gmra.mxu3 %vm263_vm0, %v1839_v49 }
  0xe0   :  { %v1380_v56 = vmax.f32 %v1316_v54, 0.0 }
  0xe1   :  { %v846_v57 = vpop.f32.mrf.mxu2  ;;  %v1104_v58 = vpop.f32.mrf.mxu3 }
  0xe2   :  { %1445 = vst.msk [vmem:[%s2485_s3 + $0x48] sm:$0xff] %vm1435_vm1, %v1380_v56  ;;  %v991_v59 = vmax.f32 %v733_v55, %v846_v57  ;;  %v396_v60 = vpop.f32.mrf.mxu0  ;;  %v590_v61 = vpop.f32.mrf.mxu1 }
  0xe3   :  { %v734_v1 = vmax.f32 %v396_v60, %v590_v61 }
  0xe4   :  { %v1249_v62 = vmax.f32 %v991_v59, %v1104_v58 }
  0xe6   :  { %v1317_v63 = vadd.f32 %v1994_v27, %v1249_v62  ;;  %v1843_v62 = vld [vmem:[%s2483_s0 + $0x88] sm:$0xff] }
  0xe8   :  { %v1381_v0 = vmax.f32 %v1317_v63, 0.0 }
  0xe9   :  { %v848_v2 = vpop.f32.mrf.mxu2  ;;  %v1106_v3 = vpop.f32.mrf.mxu3 }
  0xea   :  { %1446 = vst.msk [vmem:[%s2485_s3 + $0x50] sm:$0xff] %vm1435_vm1, %v1381_v0  ;;  %v992_v5 = vmax.f32 %v734_v1, %v848_v2  ;;  %v399_v6 = vpop.f32.mrf.mxu0  ;;  %v593_v7 = vpop.f32.mrf.mxu1 }
  0xeb   :  { %v735_v10 = vmax.f32 %v399_v6, %v593_v7 }
  0xec   :  { %v1250_v8 = vmax.f32 %v992_v5, %v1106_v3 }
  0xed   :  { %1658 = vmatmul.msk.bf16.gmra.mxu0 %vm263_vm0, %v1840_v4  ;;  %1708 = vmatmul.msk.bf16.gmra.mxu1 %vm263_vm0, %v1840_v4 }
  0xee   :  { %v1318_v9 = vadd.f32 %v1994_v27, %v1250_v8  ;;  %1758 = vmatmul.msk.bf16.gmra.mxu2 %vm263_vm0, %v1840_v4  ;;  %1808 = vmatmul.msk.bf16.gmra.mxu3 %vm263_vm0, %v1840_v4 }
  0xf0   :  { %v1382_v11 = vmax.f32 %v1318_v9, 0.0 }
  0xf1   :  { %v851_v12 = vpop.f32.mrf.mxu2  ;;  %v1109_v13 = vpop.f32.mrf.mxu3 }
  0xf2   :  { %1447 = vst.msk [vmem:[%s2485_s3 + $0x58] sm:$0xff] %vm1435_vm1, %v1382_v11  ;;  %v993_v14 = vmax.f32 %v735_v10, %v851_v12  ;;  %v401_v15 = vpop.f32.mrf.mxu0  ;;  %v595_v16 = vpop.f32.mrf.mxu1 }
  0xf3   :  { %v736_v20 = vmax.f32 %v401_v15, %v595_v16 }
  0xf4   :  { %v1251_v17 = vmax.f32 %v993_v14, %v1109_v13 }
  0xf6   :  { %v1319_v18 = vadd.f32 %v1994_v27, %v1251_v17  ;;  %v1844_v17 = vld [vmem:[%s2483_s0 + $0x90] sm:$0xff] }
  0xf8   :  { %v1383_v19 = vmax.f32 %v1319_v18, 0.0 }
  0xf9   :  { %v853_v21 = vpop.f32.mrf.mxu2  ;;  %v1111_v22 = vpop.f32.mrf.mxu3 }
  0xfa   :  { %1448 = vst.msk [vmem:[%s2485_s3 + $0x60] sm:$0xff] %vm1435_vm1, %v1383_v19  ;;  %v994_v24 = vmax.f32 %v736_v20, %v853_v21  ;;  %v404_v25 = vpop.f32.mrf.mxu0  ;;  %v598_v26 = vpop.f32.mrf.mxu1 }
  0xfb   :  { %v737_v30 = vmax.f32 %v404_v25, %v598_v26 }
  0xfc   :  { %v1252_v28 = vmax.f32 %v994_v24, %v1111_v22 }
  0xfd   :  { %1659 = vmatmul.msk.bf16.gmra.mxu0 %vm263_vm0, %v1841_v23  ;;  %1709 = vmatmul.msk.bf16.gmra.mxu1 %vm263_vm0, %v1841_v23 }
  0xfe   :  { %v1320_v29 = vadd.f32 %v1994_v27, %v1252_v28  ;;  %1759 = vmatmul.msk.bf16.gmra.mxu2 %vm263_vm0, %v1841_v23  ;;  %1809 = vmatmul.msk.bf16.gmra.mxu3 %vm263_vm0, %v1841_v23 }
 0x100   :  { %v1384_v31 = vmax.f32 %v1320_v29, 0.0 }
 0x101   :  { %v856_v32 = vpop.f32.mrf.mxu2  ;;  %v1114_v33 = vpop.f32.mrf.mxu3 }
 0x102   :  { %1449 = vst.msk [vmem:[%s2485_s3 + $0x68] sm:$0xff] %vm1435_vm1, %v1384_v31  ;;  %v995_v34 = vmax.f32 %v737_v30, %v856_v32  ;;  %v406_v35 = vpop.f32.mrf.mxu0  ;;  %v600_v36 = vpop.f32.mrf.mxu1 }
 0x103   :  { %v738_v40 = vmax.f32 %v406_v35, %v600_v36 }
 0x104   :  { %v1253_v37 = vmax.f32 %v995_v34, %v1114_v33 }
 0x106   :  { %v1321_v38 = vadd.f32 %v1994_v27, %v1253_v37  ;;  %v1845_v37 = vld [vmem:[%s2483_s0 + $0x98] sm:$0xff] }
 0x108   :  { %v1385_v39 = vmax.f32 %v1321_v38, 0.0 }
 0x109   :  { %v858_v41 = vpop.f32.mrf.mxu2  ;;  %v1116_v42 = vpop.f32.mrf.mxu3 }
 0x10a   :  { %1450 = vst.msk [vmem:[%s2485_s3 + $0x70] sm:$0xff] %vm1435_vm1, %v1385_v39  ;;  %v996_v44 = vmax.f32 %v738_v40, %v858_v41  ;;  %v409_v45 = vpop.f32.mrf.mxu0  ;;  %v603_v46 = vpop.f32.mrf.mxu1 }
 0x10b   :  { %v739_v49 = vmax.f32 %v409_v45, %v603_v46 }
 0x10c   :  { %v1254_v47 = vmax.f32 %v996_v44, %v1116_v42 }
 0x10d   :  { %1660 = vmatmul.msk.bf16.gmra.mxu0 %vm263_vm0, %v1842_v43  ;;  %1710 = vmatmul.msk.bf16.gmra.mxu1 %vm263_vm0, %v1842_v43 }
 0x10e   :  { %v1322_v48 = vadd.f32 %v1994_v27, %v1254_v47  ;;  %1760 = vmatmul.msk.bf16.gmra.mxu2 %vm263_vm0, %v1842_v43  ;;  %1810 = vmatmul.msk.bf16.gmra.mxu3 %vm263_vm0, %v1842_v43 }
 0x110   :  { %v1386_v50 = vmax.f32 %v1322_v48, 0.0 }
 0x111   :  { %v861_v51 = vpop.f32.mrf.mxu2  ;;  %v1119_v52 = vpop.f32.mrf.mxu3 }
 0x112   :  { %1451 = vst.msk [vmem:[%s2485_s3 + $0x78] sm:$0xff] %vm1435_vm1, %v1386_v50  ;;  %v997_v53 = vmax.f32 %v739_v49, %v861_v51  ;;  %v411_v54 = vpop.f32.mrf.mxu0  ;;  %v605_v55 = vpop.f32.mrf.mxu1 }
 0x113   :  { %v740_v59 = vmax.f32 %v411_v54, %v605_v55 }
 0x114   :  { %v1255_v56 = vmax.f32 %v997_v53, %v1119_v52 }
 0x116   :  { %v1323_v57 = vadd.f32 %v1994_v27, %v1255_v56  ;;  %v1846_v56 = vld [vmem:[%s2483_s0 + $0xa0] sm:$0xff] }
 0x118   :  { %v1387_v58 = vmax.f32 %v1323_v57, 0.0 }
 0x119   :  { %v863_v60 = vpop.f32.mrf.mxu2  ;;  %v1121_v61 = vpop.f32.mrf.mxu3 }
 0x11a   :  { %1452 = vst.msk [vmem:[%s2485_s3 + $0x80] sm:$0xff] %vm1435_vm1, %v1387_v58  ;;  %v998_v63 = vmax.f32 %v740_v59, %v863_v60  ;;  %v414_v0 = vpop.f32.mrf.mxu0  ;;  %v608_v1 = vpop.f32.mrf.mxu1 }
 0x11b   :  { %v741_v4 = vmax.f32 %v414_v0, %v608_v1 }
 0x11c   :  { %v1256_v2 = vmax.f32 %v998_v63, %v1121_v61 }
 0x11d   :  { %1661 = vmatmul.msk.bf16.gmra.mxu0 %vm263_vm0, %v1843_v62  ;;  %1711 = vmatmul.msk.bf16.gmra.mxu1 %vm263_vm0, %v1843_v62 }
 0x11e   :  { %v1324_v3 = vadd.f32 %v1994_v27, %v1256_v2  ;;  %1761 = vmatmul.msk.bf16.gmra.mxu2 %vm263_vm0, %v1843_v62  ;;  %1811 = vmatmul.msk.bf16.gmra.mxu3 %vm263_vm0, %v1843_v62 }
 0x120   :  { %v1388_v5 = vmax.f32 %v1324_v3, 0.0 }
 0x121   :  { %v866_v6 = vpop.f32.mrf.mxu2  ;;  %v1124_v7 = vpop.f32.mrf.mxu3 }
 0x122   :  { %1453 = vst.msk [vmem:[%s2485_s3 + $0x88] sm:$0xff] %vm1435_vm1, %v1388_v5  ;;  %v999_v8 = vmax.f32 %v741_v4, %v866_v6  ;;  %v416_v9 = vpop.f32.mrf.mxu0  ;;  %v610_v10 = vpop.f32.mrf.mxu1 }
 0x123   :  { %v742_v14 = vmax.f32 %v416_v9, %v610_v10 }
 0x124   :  { %v1257_v11 = vmax.f32 %v999_v8, %v1124_v7 }
 0x126   :  { %v1325_v12 = vadd.f32 %v1994_v27, %v1257_v11  ;;  %v1847_v11 = vld [vmem:[%s2483_s0 + $0xa8] sm:$0xff] }
 0x128   :  { %v1389_v13 = vmax.f32 %v1325_v12, 0.0 }
 0x129   :  { %v868_v15 = vpop.f32.mrf.mxu2  ;;  %v1126_v16 = vpop.f32.mrf.mxu3 }
 0x12a   :  { %1454 = vst.msk [vmem:[%s2485_s3 + $0x90] sm:$0xff] %vm1435_vm1, %v1389_v13  ;;  %v1000_v18 = vmax.f32 %v742_v14, %v868_v15  ;;  %v419_v19 = vpop.f32.mrf.mxu0  ;;  %v613_v20 = vpop.f32.mrf.mxu1 }
 0x12b   :  { %v743_v23 = vmax.f32 %v419_v19, %v613_v20 }
 0x12c   :  { %v1258_v21 = vmax.f32 %v1000_v18, %v1126_v16 }
 0x12d   :  { %1662 = vmatmul.msk.bf16.gmra.mxu0 %vm263_vm0, %v1844_v17  ;;  %1712 = vmatmul.msk.bf16.gmra.mxu1 %vm263_vm0, %v1844_v17 }
 0x12e   :  { %v1326_v22 = vadd.f32 %v1994_v27, %v1258_v21  ;;  %1762 = vmatmul.msk.bf16.gmra.mxu2 %vm263_vm0, %v1844_v17  ;;  %1812 = vmatmul.msk.bf16.gmra.mxu3 %vm263_vm0, %v1844_v17 }
 0x130   :  { %v1390_v24 = vmax.f32 %v1326_v22, 0.0 }
 0x131   :  { %v871_v25 = vpop.f32.mrf.mxu2  ;;  %v1129_v26 = vpop.f32.mrf.mxu3 }
 0x132   :  { %1455 = vst.msk [vmem:[%s2485_s3 + $0x98] sm:$0xff] %vm1435_vm1, %v1390_v24  ;;  %v1001_v28 = vmax.f32 %v743_v23, %v871_v25  ;;  %v421_v29 = vpop.f32.mrf.mxu0  ;;  %v615_v30 = vpop.f32.mrf.mxu1 }
 0x133   :  { %v744_v34 = vmax.f32 %v421_v29, %v615_v30 }
 0x134   :  { %v1259_v31 = vmax.f32 %v1001_v28, %v1129_v26 }
 0x136   :  { %v1327_v32 = vadd.f32 %v1994_v27, %v1259_v31  ;;  %v1848_v31 = vld [vmem:[%s2483_s0 + $0xb0] sm:$0xff] }
 0x138   :  { %v1391_v33 = vmax.f32 %v1327_v32, 0.0 }
 0x139   :  { %v873_v35 = vpop.f32.mrf.mxu2  ;;  %v1131_v36 = vpop.f32.mrf.mxu3 }
 0x13a   :  { %1456 = vst.msk [vmem:[%s2485_s3 + $0xa0] sm:$0xff] %vm1435_vm1, %v1391_v33  ;;  %v1002_v38 = vmax.f32 %v744_v34, %v873_v35  ;;  %v424_v39 = vpop.f32.mrf.mxu0  ;;  %v618_v40 = vpop.f32.mrf.mxu1 }
 0x13b   :  { %v745_v43 = vmax.f32 %v424_v39, %v618_v40 }
 0x13c   :  { %v1260_v41 = vmax.f32 %v1002_v38, %v1131_v36 }
 0x13d   :  { %1663 = vmatmul.msk.bf16.gmra.mxu0 %vm263_vm0, %v1845_v37  ;;  %1713 = vmatmul.msk.bf16.gmra.mxu1 %vm263_vm0, %v1845_v37 }
 0x13e   :  { %v1328_v42 = vadd.f32 %v1994_v27, %v1260_v41  ;;  %1763 = vmatmul.msk.bf16.gmra.mxu2 %vm263_vm0, %v1845_v37  ;;  %1813 = vmatmul.msk.bf16.gmra.mxu3 %vm263_vm0, %v1845_v37 }
 0x140   :  { %v1392_v44 = vmax.f32 %v1328_v42, 0.0 }
 0x141   :  { %v876_v45 = vpop.f32.mrf.mxu2  ;;  %v1134_v46 = vpop.f32.mrf.mxu3 }
 0x142   :  { %1457 = vst.msk [vmem:[%s2485_s3 + $0xa8] sm:$0xff] %vm1435_vm1, %v1392_v44  ;;  %v1003_v47 = vmax.f32 %v745_v43, %v876_v45  ;;  %v426_v48 = vpop.f32.mrf.mxu0  ;;  %v620_v49 = vpop.f32.mrf.mxu1 }
 0x143   :  { %v746_v53 = vmax.f32 %v426_v48, %v620_v49 }
 0x144   :  { %v1261_v50 = vmax.f32 %v1003_v47, %v1134_v46 }
 0x146   :  { %v1329_v51 = vadd.f32 %v1994_v27, %v1261_v50  ;;  %v1849_v50 = vld [vmem:[%s2483_s0 + $0xb8] sm:$0xff] }
 0x148   :  { %v1393_v52 = vmax.f32 %v1329_v51, 0.0 }
 0x149   :  { %v878_v54 = vpop.f32.mrf.mxu2  ;;  %v1136_v55 = vpop.f32.mrf.mxu3 }
 0x14a   :  { %1458 = vst.msk [vmem:[%s2485_s3 + $0xb0] sm:$0xff] %vm1435_vm1, %v1393_v52  ;;  %v1004_v57 = vmax.f32 %v746_v53, %v878_v54  ;;  %v429_v58 = vpop.f32.mrf.mxu0  ;;  %v623_v59 = vpop.f32.mrf.mxu1 }
 0x14b   :  { %v747_v62 = vmax.f32 %v429_v58, %v623_v59 }
 0x14c   :  { %v1262_v60 = vmax.f32 %v1004_v57, %v1136_v55 }
 0x14d   :  { %1664 = vmatmul.msk.bf16.gmra.mxu0 %vm263_vm0, %v1846_v56  ;;  %1714 = vmatmul.msk.bf16.gmra.mxu1 %vm263_vm0, %v1846_v56 }
 0x14e   :  { %v1330_v61 = vadd.f32 %v1994_v27, %v1262_v60  ;;  %1764 = vmatmul.msk.bf16.gmra.mxu2 %vm263_vm0, %v1846_v56  ;;  %1814 = vmatmul.msk.bf16.gmra.mxu3 %vm263_vm0, %v1846_v56 }
 0x150   :  { %v1394_v63 = vmax.f32 %v1330_v61, 0.0 }
 0x151   :  { %v881_v0 = vpop.f32.mrf.mxu2  ;;  %v1139_v1 = vpop.f32.mrf.mxu3 }
 0x152   :  { %1459 = vst.msk [vmem:[%s2485_s3 + $0xb8] sm:$0xff] %vm1435_vm1, %v1394_v63  ;;  %v1005_v2 = vmax.f32 %v747_v62, %v881_v0  ;;  %v431_v3 = vpop.f32.mrf.mxu0  ;;  %v625_v4 = vpop.f32.mrf.mxu1 }
 0x153   :  { %v748_v8 = vmax.f32 %v431_v3, %v625_v4 }
 0x154   :  { %v1263_v5 = vmax.f32 %v1005_v2, %v1139_v1 }
 0x156   :  { %v1331_v6 = vadd.f32 %v1994_v27, %v1263_v5  ;;  %v1850_v5 = vld [vmem:[%s2483_s0 + $0xc0] sm:$0xff] }
 0x158   :  { %v1395_v7 = vmax.f32 %v1331_v6, 0.0 }
 0x159   :  { %v883_v9 = vpop.f32.mrf.mxu2  ;;  %v1141_v10 = vpop.f32.mrf.mxu3 }
 0x15a   :  { %1460 = vst.msk [vmem:[%s2485_s3 + $0xc0] sm:$0xff] %vm1435_vm1, %v1395_v7  ;;  %v1006_v12 = vmax.f32 %v748_v8, %v883_v9  ;;  %v434_v13 = vpop.f32.mrf.mxu0  ;;  %v628_v14 = vpop.f32.mrf.mxu1 }
 0x15b   :  { %v749_v17 = vmax.f32 %v434_v13, %v628_v14 }
 0x15c   :  { %v1264_v15 = vmax.f32 %v1006_v12, %v1141_v10 }
 0x15d   :  { %1665 = vmatmul.msk.bf16.gmra.mxu0 %vm263_vm0, %v1847_v11  ;;  %1715 = vmatmul.msk.bf16.gmra.mxu1 %vm263_vm0, %v1847_v11 }
 0x15e   :  { %v1332_v16 = vadd.f32 %v1994_v27, %v1264_v15  ;;  %1765 = vmatmul.msk.bf16.gmra.mxu2 %vm263_vm0, %v1847_v11  ;;  %1815 = vmatmul.msk.bf16.gmra.mxu3 %vm263_vm0, %v1847_v11 }
 0x160   :  { %v1396_v18 = vmax.f32 %v1332_v16, 0.0 }
 0x161   :  { %v886_v19 = vpop.f32.mrf.mxu2  ;;  %v1144_v20 = vpop.f32.mrf.mxu3 }
 0x162   :  { %1461 = vst.msk [vmem:[%s2485_s3 + $0xc8] sm:$0xff] %vm1435_vm1, %v1396_v18  ;;  %v1007_v21 = vmax.f32 %v749_v17, %v886_v19  ;;  %v436_v22 = vpop.f32.mrf.mxu0  ;;  %v630_v23 = vpop.f32.mrf.mxu1 }
 0x163   :  { %v750_v28 = vmax.f32 %v436_v22, %v630_v23 }
 0x164   :  { %v1265_v24 = vmax.f32 %v1007_v21, %v1144_v20 }
 0x166   :  { %v1333_v25 = vadd.f32 %v1994_v27, %v1265_v24  ;;  %v1851_v24 = vld [vmem:[%s2483_s0 + $0xc8] sm:$0xff] }
 0x168   :  { %v1397_v26 = vmax.f32 %v1333_v25, 0.0 }
 0x169   :  { %v888_v29 = vpop.f32.mrf.mxu2  ;;  %v1146_v30 = vpop.f32.mrf.mxu3 }
 0x16a   :  { %1462 = vst.msk [vmem:[%s2485_s3 + $0xd0] sm:$0xff] %vm1435_vm1, %v1397_v26  ;;  %v1008_v32 = vmax.f32 %v750_v28, %v888_v29  ;;  %v439_v33 = vpop.f32.mrf.mxu0  ;;  %v633_v34 = vpop.f32.mrf.mxu1 }
 0x16b   :  { %v751_v37 = vmax.f32 %v439_v33, %v633_v34 }
 0x16c   :  { %v1266_v35 = vmax.f32 %v1008_v32, %v1146_v30 }
 0x16d   :  { %1666 = vmatmul.msk.bf16.gmra.mxu0 %vm263_vm0, %v1848_v31  ;;  %1716 = vmatmul.msk.bf16.gmra.mxu1 %vm263_vm0, %v1848_v31 }
 0x16e   :  { %v1334_v36 = vadd.f32 %v1994_v27, %v1266_v35  ;;  %1766 = vmatmul.msk.bf16.gmra.mxu2 %vm263_vm0, %v1848_v31  ;;  %1816 = vmatmul.msk.bf16.gmra.mxu3 %vm263_vm0, %v1848_v31 }
 0x170   :  { %v1398_v38 = vmax.f32 %v1334_v36, 0.0 }
 0x171   :  { %v891_v39 = vpop.f32.mrf.mxu2  ;;  %v1149_v40 = vpop.f32.mrf.mxu3 }
 0x172   :  { %1463 = vst.msk [vmem:[%s2485_s3 + $0xd8] sm:$0xff] %vm1435_vm1, %v1398_v38  ;;  %v1009_v41 = vmax.f32 %v751_v37, %v891_v39  ;;  %v441_v42 = vpop.f32.mrf.mxu0  ;;  %v635_v43 = vpop.f32.mrf.mxu1 }
 0x173   :  { %v752_v47 = vmax.f32 %v441_v42, %v635_v43 }
 0x174   :  { %v1267_v44 = vmax.f32 %v1009_v41, %v1149_v40 }
 0x176   :  { %v1335_v45 = vadd.f32 %v1994_v27, %v1267_v44  ;;  %v1852_v44 = vld [vmem:[%s2483_s0 + $0xd0] sm:$0xff] }
 0x178   :  { %v1399_v46 = vmax.f32 %v1335_v45, 0.0 }
 0x179   :  { %v893_v48 = vpop.f32.mrf.mxu2  ;;  %v1151_v49 = vpop.f32.mrf.mxu3 }
 0x17a   :  { %1464 = vst.msk [vmem:[%s2485_s3 + $0xe0] sm:$0xff] %vm1435_vm1, %v1399_v46  ;;  %v1010_v51 = vmax.f32 %v752_v47, %v893_v48  ;;  %v444_v52 = vpop.f32.mrf.mxu0  ;;  %v638_v53 = vpop.f32.mrf.mxu1 }
 0x17b   :  { %v753_v56 = vmax.f32 %v444_v52, %v638_v53 }
 0x17c   :  { %v1268_v54 = vmax.f32 %v1010_v51, %v1151_v49 }
 0x17d   :  { %1667 = vmatmul.msk.bf16.gmra.mxu0 %vm263_vm0, %v1849_v50  ;;  %1717 = vmatmul.msk.bf16.gmra.mxu1 %vm263_vm0, %v1849_v50 }
 0x17e   :  { %v1336_v55 = vadd.f32 %v1994_v27, %v1268_v54  ;;  %1767 = vmatmul.msk.bf16.gmra.mxu2 %vm263_vm0, %v1849_v50  ;;  %1817 = vmatmul.msk.bf16.gmra.mxu3 %vm263_vm0, %v1849_v50 }
 0x180   :  { %v1400_v57 = vmax.f32 %v1336_v55, 0.0 }
 0x181   :  { %v896_v58 = vpop.f32.mrf.mxu2  ;;  %v1154_v59 = vpop.f32.mrf.mxu3 }
 0x182   :  { %1465 = vst.msk [vmem:[%s2485_s3 + $0xe8] sm:$0xff] %vm1435_vm1, %v1400_v57  ;;  %v1011_v60 = vmax.f32 %v753_v56, %v896_v58  ;;  %v446_v61 = vpop.f32.mrf.mxu0  ;;  %v640_v62 = vpop.f32.mrf.mxu1 }
 0x183   :  { %v754_v2 = vmax.f32 %v446_v61, %v640_v62 }
 0x184   :  { %v1269_v63 = vmax.f32 %v1011_v60, %v1154_v59 }
 0x186   :  { %v1337_v0 = vadd.f32 %v1994_v27, %v1269_v63  ;;  %v1853_v63 = vld [vmem:[%s2483_s0 + $0xd8] sm:$0xff] }
 0x188   :  { %v1401_v1 = vmax.f32 %v1337_v0, 0.0 }
 0x189   :  { %v898_v3 = vpop.f32.mrf.mxu2  ;;  %v1156_v4 = vpop.f32.mrf.mxu3 }
 0x18a   :  { %1466 = vst.msk [vmem:[%s2485_s3 + $0xf0] sm:$0xff] %vm1435_vm1, %v1401_v1  ;;  %v1012_v6 = vmax.f32 %v754_v2, %v898_v3  ;;  %v449_v7 = vpop.f32.mrf.mxu0  ;;  %v643_v8 = vpop.f32.mrf.mxu1 }
 0x18b   :  { %v755_v11 = vmax.f32 %v449_v7, %v643_v8 }
 0x18c   :  { %v1270_v9 = vmax.f32 %v1012_v6, %v1156_v4 }
 0x18d   :  { %1668 = vmatmul.msk.bf16.gmra.mxu0 %vm263_vm0, %v1850_v5  ;;  %1718 = vmatmul.msk.bf16.gmra.mxu1 %vm263_vm0, %v1850_v5 }
 0x18e   :  { %v1338_v10 = vadd.f32 %v1994_v27, %v1270_v9  ;;  %1768 = vmatmul.msk.bf16.gmra.mxu2 %vm263_vm0, %v1850_v5  ;;  %1818 = vmatmul.msk.bf16.gmra.mxu3 %vm263_vm0, %v1850_v5 }
 0x190   :  { %v1402_v12 = vmax.f32 %v1338_v10, 0.0 }
 0x191   :  { %v901_v13 = vpop.f32.mrf.mxu2  ;;  %v1159_v14 = vpop.f32.mrf.mxu3 }
 0x192   :  { %1467 = vst.msk [vmem:[%s2485_s3 + $0xf8] sm:$0xff] %vm1435_vm1, %v1402_v12  ;;  %v1013_v15 = vmax.f32 %v755_v11, %v901_v13  ;;  %v451_v16 = vpop.f32.mrf.mxu0  ;;  %v645_v17 = vpop.f32.mrf.mxu1 }
 0x193   :  { %v756_v21 = vmax.f32 %v451_v16, %v645_v17 }
 0x194   :  { %v1271_v18 = vmax.f32 %v1013_v15, %v1159_v14 }
 0x196   :  { %v1339_v19 = vadd.f32 %v1994_v27, %v1271_v18  ;;  %v1854_v18 = vld [vmem:[%s2483_s0 + $0xe0] sm:$0xff] }
 0x198   :  { %v1403_v20 = vmax.f32 %v1339_v19, 0.0 }
 0x199   :  { %v903_v22 = vpop.f32.mrf.mxu2  ;;  %v1161_v23 = vpop.f32.mrf.mxu3 }
 0x19a   :  { %1468 = vst.msk [vmem:[%s2485_s3 + $0x100] sm:$0xff] %vm1435_vm1, %v1403_v20  ;;  %v1014_v25 = vmax.f32 %v756_v21, %v903_v22  ;;  %v454_v26 = vpop.f32.mrf.mxu0  ;;  %v648_v28 = vpop.f32.mrf.mxu1 }
 0x19b   :  { %v757_v31 = vmax.f32 %v454_v26, %v648_v28 }
 0x19c   :  { %v1272_v29 = vmax.f32 %v1014_v25, %v1161_v23 }
 0x19d   :  { %1669 = vmatmul.msk.bf16.gmra.mxu0 %vm263_vm0, %v1851_v24  ;;  %1719 = vmatmul.msk.bf16.gmra.mxu1 %vm263_vm0, %v1851_v24 }
 0x19e   :  { %v1340_v30 = vadd.f32 %v1994_v27, %v1272_v29  ;;  %1769 = vmatmul.msk.bf16.gmra.mxu2 %vm263_vm0, %v1851_v24  ;;  %1819 = vmatmul.msk.bf16.gmra.mxu3 %vm263_vm0, %v1851_v24 }
 0x1a0   :  { %v1404_v32 = vmax.f32 %v1340_v30, 0.0 }
 0x1a1   :  { %v906_v33 = vpop.f32.mrf.mxu2  ;;  %v1164_v34 = vpop.f32.mrf.mxu3 }
 0x1a2   :  { %1469 = vst.msk [vmem:[%s2485_s3 + $0x108] sm:$0xff] %vm1435_vm1, %v1404_v32  ;;  %v1015_v35 = vmax.f32 %v757_v31, %v906_v33  ;;  %v456_v36 = vpop.f32.mrf.mxu0  ;;  %v650_v37 = vpop.f32.mrf.mxu1 }
 0x1a3   :  { %v758_v41 = vmax.f32 %v456_v36, %v650_v37 }
 0x1a4   :  { %v1273_v38 = vmax.f32 %v1015_v35, %v1164_v34 }
 0x1a6   :  { %v1341_v39 = vadd.f32 %v1994_v27, %v1273_v38  ;;  %v1855_v38 = vld [vmem:[%s2483_s0 + $0xe8] sm:$0xff] }
 0x1a8   :  { %v1405_v40 = vmax.f32 %v1341_v39, 0.0 }
 0x1a9   :  { %v908_v42 = vpop.f32.mrf.mxu2  ;;  %v1166_v43 = vpop.f32.mrf.mxu3 }
 0x1aa   :  { %1470 = vst.msk [vmem:[%s2485_s3 + $0x110] sm:$0xff] %vm1435_vm1, %v1405_v40  ;;  %v1016_v45 = vmax.f32 %v758_v41, %v908_v42  ;;  %v459_v46 = vpop.f32.mrf.mxu0  ;;  %v653_v47 = vpop.f32.mrf.mxu1 }
 0x1ab   :  { %v759_v50 = vmax.f32 %v459_v46, %v653_v47 }
 0x1ac   :  { %v1274_v48 = vmax.f32 %v1016_v45, %v1166_v43 }
 0x1ad   :  { %1670 = vmatmul.msk.bf16.gmra.mxu0 %vm263_vm0, %v1852_v44  ;;  %1720 = vmatmul.msk.bf16.gmra.mxu1 %vm263_vm0, %v1852_v44 }
 0x1ae   :  { %v1342_v49 = vadd.f32 %v1994_v27, %v1274_v48  ;;  %1770 = vmatmul.msk.bf16.gmra.mxu2 %vm263_vm0, %v1852_v44  ;;  %1820 = vmatmul.msk.bf16.gmra.mxu3 %vm263_vm0, %v1852_v44 }
 0x1b0   :  { %v1406_v51 = vmax.f32 %v1342_v49, 0.0 }
 0x1b1   :  { %v911_v52 = vpop.f32.mrf.mxu2  ;;  %v1169_v53 = vpop.f32.mrf.mxu3 }
 0x1b2   :  { %1471 = vst.msk [vmem:[%s2485_s3 + $0x118] sm:$0xff] %vm1435_vm1, %v1406_v51  ;;  %v1017_v54 = vmax.f32 %v759_v50, %v911_v52  ;;  %v461_v55 = vpop.f32.mrf.mxu0  ;;  %v655_v56 = vpop.f32.mrf.mxu1 }
 0x1b3   :  { %v760_v60 = vmax.f32 %v461_v55, %v655_v56 }
 0x1b4   :  { %v1275_v57 = vmax.f32 %v1017_v54, %v1169_v53 }
 0x1b6   :  { %v1343_v58 = vadd.f32 %v1994_v27, %v1275_v57  ;;  %v1856_v57 = vld [vmem:[%s2483_s0 + $0xf0] sm:$0xff] }
 0x1b8   :  { %v1407_v59 = vmax.f32 %v1343_v58, 0.0 }
 0x1b9   :  { %v913_v61 = vpop.f32.mrf.mxu2  ;;  %v1171_v62 = vpop.f32.mrf.mxu3 }
 0x1ba   :  { %1472 = vst.msk [vmem:[%s2485_s3 + $0x120] sm:$0xff] %vm1435_vm1, %v1407_v59  ;;  %v1018_v0 = vmax.f32 %v760_v60, %v913_v61  ;;  %v464_v1 = vpop.f32.mrf.mxu0  ;;  %v658_v2 = vpop.f32.mrf.mxu1 }
 0x1bb   :  { %v761_v5 = vmax.f32 %v464_v1, %v658_v2 }
 0x1bc   :  { %v1276_v3 = vmax.f32 %v1018_v0, %v1171_v62 }
 0x1bd   :  { %1671 = vmatmul.msk.bf16.gmra.mxu0 %vm263_vm0, %v1853_v63  ;;  %1721 = vmatmul.msk.bf16.gmra.mxu1 %vm263_vm0, %v1853_v63 }
 0x1be   :  { %v1344_v4 = vadd.f32 %v1994_v27, %v1276_v3  ;;  %1771 = vmatmul.msk.bf16.gmra.mxu2 %vm263_vm0, %v1853_v63  ;;  %1821 = vmatmul.msk.bf16.gmra.mxu3 %vm263_vm0, %v1853_v63 }
 0x1c0   :  { %v1408_v6 = vmax.f32 %v1344_v4, 0.0 }
 0x1c1   :  { %v916_v7 = vpop.f32.mrf.mxu2  ;;  %v1174_v8 = vpop.f32.mrf.mxu3 }
 0x1c2   :  { %1473 = vst.msk [vmem:[%s2485_s3 + $0x128] sm:$0xff] %vm1435_vm1, %v1408_v6  ;;  %v1019_v9 = vmax.f32 %v761_v5, %v916_v7  ;;  %v466_v10 = vpop.f32.mrf.mxu0  ;;  %v660_v11 = vpop.f32.mrf.mxu1 }
 0x1c3   :  { %v762_v15 = vmax.f32 %v466_v10, %v660_v11 }
 0x1c4   :  { %v1277_v12 = vmax.f32 %v1019_v9, %v1174_v8 }
 0x1c6   :  { %v1345_v13 = vadd.f32 %v1994_v27, %v1277_v12  ;;  %v1857_v12 = vld [vmem:[%s2483_s0 + $0xf8] sm:$0xff] }
 0x1c8   :  { %v1409_v14 = vmax.f32 %v1345_v13, 0.0 }
 0x1c9   :  { %v918_v16 = vpop.f32.mrf.mxu2  ;;  %v1176_v17 = vpop.f32.mrf.mxu3 }
 0x1ca   :  { %1474 = vst.msk [vmem:[%s2485_s3 + $0x130] sm:$0xff] %vm1435_vm1, %v1409_v14  ;;  %v1020_v19 = vmax.f32 %v762_v15, %v918_v16  ;;  %v469_v20 = vpop.f32.mrf.mxu0  ;;  %v663_v21 = vpop.f32.mrf.mxu1 }
 0x1cb   :  { %v763_v24 = vmax.f32 %v469_v20, %v663_v21 }
 0x1cc   :  { %v1278_v22 = vmax.f32 %v1020_v19, %v1176_v17 }
 0x1cd   :  { %1672 = vmatmul.msk.bf16.gmra.mxu0 %vm263_vm0, %v1854_v18  ;;  %1722 = vmatmul.msk.bf16.gmra.mxu1 %vm263_vm0, %v1854_v18 }
 0x1ce   :  { %v1346_v23 = vadd.f32 %v1994_v27, %v1278_v22  ;;  %1772 = vmatmul.msk.bf16.gmra.mxu2 %vm263_vm0, %v1854_v18  ;;  %1822 = vmatmul.msk.bf16.gmra.mxu3 %vm263_vm0, %v1854_v18 }
 0x1d0   :  { %v1410_v25 = vmax.f32 %v1346_v23, 0.0 }
 0x1d1   :  { %v921_v26 = vpop.f32.mrf.mxu2  ;;  %v1179_v28 = vpop.f32.mrf.mxu3 }
 0x1d2   :  { %1475 = vst.msk [vmem:[%s2485_s3 + $0x138] sm:$0xff] %vm1435_vm1, %v1410_v25  ;;  %v1021_v29 = vmax.f32 %v763_v24, %v921_v26  ;;  %v471_v30 = vpop.f32.mrf.mxu0  ;;  %v665_v31 = vpop.f32.mrf.mxu1 }
 0x1d3   :  { %v764_v35 = vmax.f32 %v471_v30, %v665_v31 }
 0x1d4   :  { %v1279_v32 = vmax.f32 %v1021_v29, %v1179_v28 }
 0x1d6   :  { %v1347_v33 = vadd.f32 %v1994_v27, %v1279_v32  ;;  %v2349_v27 = vld [vmem:[%s2484_s2] ss:$0 sm:$0xff] }
 0x1d8   :  { %v1411_v34 = vmax.f32 %v1347_v33, 0.0 }
 0x1d9   :  { %v923_v36 = vpop.f32.mrf.mxu2  ;;  %v1181_v37 = vpop.f32.mrf.mxu3 }
 0x1da   :  { %1476 = vst.msk [vmem:[%s2485_s3 + $0x140] sm:$0xff] %vm1435_vm1, %v1411_v34  ;;  %v1022_v39 = vmax.f32 %v764_v35, %v923_v36  ;;  %v474_v40 = vpop.f32.mrf.mxu0  ;;  %v668_v41 = vpop.f32.mrf.mxu1 }
 0x1db   :  { %v765_v44 = vmax.f32 %v474_v40, %v668_v41 }
 0x1dc   :  { %v1280_v42 = vmax.f32 %v1022_v39, %v1181_v37 }
 0x1dd   :  { %1673 = vmatmul.msk.bf16.gmra.mxu0 %vm263_vm0, %v1855_v38  ;;  %1723 = vmatmul.msk.bf16.gmra.mxu1 %vm263_vm0, %v1855_v38 }
 0x1de   :  { %v1348_v43 = vadd.f32 %v2349_v27, %v1280_v42  ;;  %1773 = vmatmul.msk.bf16.gmra.mxu2 %vm263_vm0, %v1855_v38  ;;  %1823 = vmatmul.msk.bf16.gmra.mxu3 %vm263_vm0, %v1855_v38 }
 0x1e0   :  { %v1412_v45 = vmax.f32 %v1348_v43, 0.0 }
 0x1e1   :  { %v926_v46 = vpop.f32.mrf.mxu2  ;;  %v1184_v47 = vpop.f32.mrf.mxu3 }
 0x1e2   :  { %1477 = vst.msk [vmem:[%s2485_s3 + $0x148] sm:$0xff] %vm1435_vm1, %v1412_v45  ;;  %v1023_v48 = vmax.f32 %v765_v44, %v926_v46  ;;  %v476_v49 = vpop.f32.mrf.mxu0  ;;  %v670_v50 = vpop.f32.mrf.mxu1 }
 0x1e3   :  { %v766_v54 = vmax.f32 %v476_v49, %v670_v50 }
 0x1e4   :  { %v1281_v51 = vmax.f32 %v1023_v48, %v1184_v47 }
 0x1e6   :  { %v1349_v52 = vadd.f32 %v2349_v27, %v1281_v51 }
 0x1e8   :  { %v1413_v53 = vmax.f32 %v1349_v52, 0.0 }
 0x1e9   :  { %v928_v55 = vpop.f32.mrf.mxu2  ;;  %v1186_v56 = vpop.f32.mrf.mxu3 }
 0x1ea   :  { %1478 = vst.msk [vmem:[%s2485_s3 + $0x150] sm:$0xff] %vm1435_vm1, %v1413_v53  ;;  %v1024_v58 = vmax.f32 %v766_v54, %v928_v55  ;;  %v479_v59 = vpop.f32.mrf.mxu0  ;;  %v673_v60 = vpop.f32.mrf.mxu1 }
 0x1eb   :  { %v767_v63 = vmax.f32 %v479_v59, %v673_v60 }
 0x1ec   :  { %v1282_v61 = vmax.f32 %v1024_v58, %v1186_v56 }
 0x1ed   :  { %1674 = vmatmul.msk.bf16.gmra.mxu0 %vm263_vm0, %v1856_v57  ;;  %1724 = vmatmul.msk.bf16.gmra.mxu1 %vm263_vm0, %v1856_v57 }
 0x1ee   :  { %v1350_v62 = vadd.f32 %v2349_v27, %v1282_v61  ;;  %1774 = vmatmul.msk.bf16.gmra.mxu2 %vm263_vm0, %v1856_v57  ;;  %1824 = vmatmul.msk.bf16.gmra.mxu3 %vm263_vm0, %v1856_v57 }
 0x1f0   :  { %v1414_v0 = vmax.f32 %v1350_v62, 0.0 }
 0x1f1   :  { %v931_v1 = vpop.f32.mrf.mxu2  ;;  %v1189_v2 = vpop.f32.mrf.mxu3 }
 0x1f2   :  { %1479 = vst.msk [vmem:[%s2485_s3 + $0x158] sm:$0xff] %vm1435_vm1, %v1414_v0  ;;  %v1025_v3 = vmax.f32 %v767_v63, %v931_v1  ;;  %v481_v4 = vpop.f32.mrf.mxu0  ;;  %v675_v5 = vpop.f32.mrf.mxu1 }
 0x1f3   :  { %v768_v9 = vmax.f32 %v481_v4, %v675_v5 }
 0x1f4   :  { %v1283_v6 = vmax.f32 %v1025_v3, %v1189_v2 }
 0x1f6   :  { %v1351_v7 = vadd.f32 %v2349_v27, %v1283_v6 }
 0x1f8   :  { %v1415_v8 = vmax.f32 %v1351_v7, 0.0 }
 0x1f9   :  { %v933_v10 = vpop.f32.mrf.mxu2  ;;  %v1191_v11 = vpop.f32.mrf.mxu3 }
 0x1fa   :  { %1480 = vst.msk [vmem:[%s2485_s3 + $0x160] sm:$0xff] %vm1435_vm1, %v1415_v8  ;;  %v1026_v13 = vmax.f32 %v768_v9, %v933_v10  ;;  %v484_v14 = vpop.f32.mrf.mxu0  ;;  %v678_v15 = vpop.f32.mrf.mxu1 }
 0x1fb   :  { %v769_v18 = vmax.f32 %v484_v14, %v678_v15 }
 0x1fc   :  { %v1284_v16 = vmax.f32 %v1026_v13, %v1191_v11 }
 0x1fd   :  { %1675 = vmatmul.msk.bf16.gmra.mxu0 %vm263_vm0, %v1857_v12  ;;  %1725 = vmatmul.msk.bf16.gmra.mxu1 %vm263_vm0, %v1857_v12 }
 0x1fe   :  { %v1352_v17 = vadd.f32 %v2349_v27, %v1284_v16  ;;  %1775 = vmatmul.msk.bf16.gmra.mxu2 %vm263_vm0, %v1857_v12  ;;  %1825 = vmatmul.msk.bf16.gmra.mxu3 %vm263_vm0, %v1857_v12 }
 0x200   :  { %v1416_v19 = vmax.f32 %v1352_v17, 0.0 }
 0x201   :  { %v936_v20 = vpop.f32.mrf.mxu2  ;;  %v1194_v21 = vpop.f32.mrf.mxu3 }
 0x202   :  { %1481 = vst.msk [vmem:[%s2485_s3 + $0x168] sm:$0xff] %vm1435_vm1, %v1416_v19  ;;  %v1027_v22 = vmax.f32 %v769_v18, %v936_v20  ;;  %v486_v23 = vpop.f32.mrf.mxu0  ;;  %v680_v24 = vpop.f32.mrf.mxu1 }
 0x203   :  { %v770_v29 = vmax.f32 %v486_v23, %v680_v24 }
 0x204   :  { %v1285_v25 = vmax.f32 %v1027_v22, %v1194_v21 }
 0x206   :  { %v1353_v26 = vadd.f32 %v2349_v27, %v1285_v25 }
 0x208   :  { %v1417_v28 = vmax.f32 %v1353_v26, 0.0 }
 0x209   :  { %v938_v30 = vpop.f32.mrf.mxu2  ;;  %v1196_v31 = vpop.f32.mrf.mxu3 }
 0x20a   :  { %1482 = vst.msk [vmem:[%s2485_s3 + $0x170] sm:$0xff] %vm1435_vm1, %v1417_v28  ;;  %v1028_v32 = vmax.f32 %v770_v29, %v938_v30  ;;  %v489_v33 = vpop.f32.mrf.mxu0  ;;  %v683_v34 = vpop.f32.mrf.mxu1 }
 0x20b   :  { %v771_v37 = vmax.f32 %v489_v33, %v683_v34 }
 0x20c   :  { %v1286_v35 = vmax.f32 %v1028_v32, %v1196_v31 }
 0x20e   :  { %v1354_v36 = vadd.f32 %v2349_v27, %v1286_v35 }
 0x210   :  { %v1418_v38 = vmax.f32 %v1354_v36, 0.0 }
 0x211   :  { %v941_v39 = vpop.f32.mrf.mxu2  ;;  %v1199_v40 = vpop.f32.mrf.mxu3 }
 0x212   :  { %1483 = vst.msk [vmem:[%s2485_s3 + $0x178] sm:$0xff] %vm1435_vm1, %v1418_v38  ;;  %v1029_v41 = vmax.f32 %v771_v37, %v941_v39  ;;  %v491_v42 = vpop.f32.mrf.mxu0  ;;  %v685_v43 = vpop.f32.mrf.mxu1 }
 0x213   :  { %v772_v47 = vmax.f32 %v491_v42, %v685_v43 }
 0x214   :  { %v1287_v44 = vmax.f32 %v1029_v41, %v1199_v40 }
 0x216   :  { %v1355_v45 = vadd.f32 %v2349_v27, %v1287_v44 }
 0x218   :  { %v1419_v46 = vmax.f32 %v1355_v45, 0.0 }
 0x219   :  { %v943_v48 = vpop.f32.mrf.mxu2  ;;  %v1201_v49 = vpop.f32.mrf.mxu3 }
 0x21a   :  { %1484 = vst.msk [vmem:[%s2485_s3 + $0x180] sm:$0xff] %vm1435_vm1, %v1419_v46  ;;  %v1030_v50 = vmax.f32 %v772_v47, %v943_v48  ;;  %v494_v51 = vpop.f32.mrf.mxu0  ;;  %v688_v52 = vpop.f32.mrf.mxu1 }
 0x21b   :  { %v773_v55 = vmax.f32 %v494_v51, %v688_v52 }
 0x21c   :  { %v1288_v53 = vmax.f32 %v1030_v50, %v1201_v49 }
 0x21e   :  { %v1356_v54 = vadd.f32 %v2349_v27, %v1288_v53 }
 0x220   :  { %v1420_v56 = vmax.f32 %v1356_v54, 0.0 }
 0x221   :  { %v946_v57 = vpop.f32.mrf.mxu2  ;;  %v1204_v58 = vpop.f32.mrf.mxu3 }
 0x222   :  { %1485 = vst.msk [vmem:[%s2485_s3 + $0x188] sm:$0xff] %vm1435_vm1, %v1420_v56  ;;  %v1031_v59 = vmax.f32 %v773_v55, %v946_v57  ;;  %v496_v60 = vpop.f32.mrf.mxu0  ;;  %v690_v61 = vpop.f32.mrf.mxu1 }
 0x223   :  { %v774_v1 = vmax.f32 %v496_v60, %v690_v61 }
 0x224   :  { %v1289_v62 = vmax.f32 %v1031_v59, %v1204_v58 }
 0x226   :  { %v1357_v63 = vadd.f32 %v2349_v27, %v1289_v62 }
 0x228   :  { %v1421_v0 = vmax.f32 %v1357_v63, 0.0 }
 0x229   :  { %v948_v2 = vpop.f32.mrf.mxu2  ;;  %v1206_v3 = vpop.f32.mrf.mxu3 }
 0x22a   :  { %1486 = vst.msk [vmem:[%s2485_s3 + $0x190] sm:$0xff] %vm1435_vm1, %v1421_v0  ;;  %v1032_v4 = vmax.f32 %v774_v1, %v948_v2  ;;  %v499_v5 = vpop.f32.mrf.mxu0  ;;  %v693_v6 = vpop.f32.mrf.mxu1 }
 0x22b   :  { %v775_v9 = vmax.f32 %v499_v5, %v693_v6 }
 0x22c   :  { %v1290_v7 = vmax.f32 %v1032_v4, %v1206_v3 }
 0x22e   :  { %v1358_v8 = vadd.f32 %v2349_v27, %v1290_v7 }
 0x230   :  { %v1422_v10 = vmax.f32 %v1358_v8, 0.0 }
 0x231   :  { %v951_v11 = vpop.f32.mrf.mxu2  ;;  %v1209_v12 = vpop.f32.mrf.mxu3 }
 0x232   :  { %1487 = vst.msk [vmem:[%s2485_s3 + $0x198] sm:$0xff] %vm1435_vm1, %v1422_v10  ;;  %v1033_v13 = vmax.f32 %v775_v9, %v951_v11  ;;  %v501_v14 = vpop.f32.mrf.mxu0  ;;  %v695_v15 = vpop.f32.mrf.mxu1 }
 0x233   :  { %v776_v19 = vmax.f32 %v501_v14, %v695_v15 }
 0x234   :  { %v1291_v16 = vmax.f32 %v1033_v13, %v1209_v12 }
 0x236   :  { %v1359_v17 = vadd.f32 %v2349_v27, %v1291_v16 }
 0x238   :  { %v1423_v18 = vmax.f32 %v1359_v17, 0.0 }
 0x239   :  { %v953_v20 = vpop.f32.mrf.mxu2  ;;  %v1211_v21 = vpop.f32.mrf.mxu3 }
 0x23a   :  { %1488 = vst.msk [vmem:[%s2485_s3 + $0x1a0] sm:$0xff] %vm1435_vm1, %v1423_v18  ;;  %v1034_v22 = vmax.f32 %v776_v19, %v953_v20  ;;  %v504_v23 = vpop.f32.mrf.mxu0  ;;  %v698_v24 = vpop.f32.mrf.mxu1 }
 0x23b   :  { %v777_v28 = vmax.f32 %v504_v23, %v698_v24 }
 0x23c   :  { %v1292_v25 = vmax.f32 %v1034_v22, %v1211_v21 }
 0x23e   :  { %v1360_v26 = vadd.f32 %v2349_v27, %v1292_v25 }
 0x240   :  { %v1424_v29 = vmax.f32 %v1360_v26, 0.0 }
 0x241   :  { %v956_v30 = vpop.f32.mrf.mxu2  ;;  %v1214_v31 = vpop.f32.mrf.mxu3 }
 0x242   :  { %1489 = vst.msk [vmem:[%s2485_s3 + $0x1a8] sm:$0xff] %vm1435_vm1, %v1424_v29  ;;  %v1035_v32 = vmax.f32 %v777_v28, %v956_v30  ;;  %v506_v33 = vpop.f32.mrf.mxu0  ;;  %v700_v34 = vpop.f32.mrf.mxu1 }
 0x243   :  { %v778_v38 = vmax.f32 %v506_v33, %v700_v34 }
 0x244   :  { %v1293_v35 = vmax.f32 %v1035_v32, %v1214_v31 }
 0x246   :  { %v1361_v36 = vadd.f32 %v2349_v27, %v1293_v35 }
 0x248   :  { %v1425_v37 = vmax.f32 %v1361_v36, 0.0 }
 0x249   :  { %v958_v39 = vpop.f32.mrf.mxu2  ;;  %v1216_v40 = vpop.f32.mrf.mxu3 }
 0x24a   :  { %1490 = vst.msk [vmem:[%s2485_s3 + $0x1b0] sm:$0xff] %vm1435_vm1, %v1425_v37  ;;  %v1036_v41 = vmax.f32 %v778_v38, %v958_v39  ;;  %v509_v42 = vpop.f32.mrf.mxu0  ;;  %v703_v43 = vpop.f32.mrf.mxu1 }
 0x24b   :  { %v779_v46 = vmax.f32 %v509_v42, %v703_v43 }
 0x24c   :  { %v1294_v44 = vmax.f32 %v1036_v41, %v1216_v40 }
 0x24e   :  { %v1362_v45 = vadd.f32 %v2349_v27, %v1294_v44 }
 0x250   :  { %v1426_v47 = vmax.f32 %v1362_v45, 0.0 }
 0x251   :  { %v961_v48 = vpop.f32.mrf.mxu2  ;;  %v1219_v49 = vpop.f32.mrf.mxu3 }
 0x252   :  { %1491 = vst.msk [vmem:[%s2485_s3 + $0x1b8] sm:$0xff] %vm1435_vm1, %v1426_v47  ;;  %v1037_v50 = vmax.f32 %v779_v46, %v961_v48  ;;  %v511_v51 = vpop.f32.mrf.mxu0  ;;  %v705_v52 = vpop.f32.mrf.mxu1 }
 0x253   :  { %v780_v56 = vmax.f32 %v511_v51, %v705_v52 }
 0x254   :  { %v1295_v53 = vmax.f32 %v1037_v50, %v1219_v49 }
 0x256   :  { %v1363_v54 = vadd.f32 %v2349_v27, %v1295_v53 }
 0x258   :  { %v1427_v55 = vmax.f32 %v1363_v54, 0.0 }
 0x259   :  { %v963_v57 = vpop.f32.mrf.mxu2  ;;  %v1221_v58 = vpop.f32.mrf.mxu3 }
 0x25a   :  { %1492 = vst.msk [vmem:[%s2485_s3 + $0x1c0] sm:$0xff] %vm1435_vm1, %v1427_v55  ;;  %v1038_v59 = vmax.f32 %v780_v56, %v963_v57  ;;  %v514_v60 = vpop.f32.mrf.mxu0  ;;  %v708_v61 = vpop.f32.mrf.mxu1 }
 0x25b   :  { %v781_v0 = vmax.f32 %v514_v60, %v708_v61 }
 0x25c   :  { %v1296_v62 = vmax.f32 %v1038_v59, %v1221_v58 }
 0x25e   :  { %v1364_v63 = vadd.f32 %v2349_v27, %v1296_v62 }
 0x260   :  { %v1428_v1 = vmax.f32 %v1364_v63, 0.0 }
 0x261   :  { %v966_v2 = vpop.f32.mrf.mxu2  ;;  %v1224_v3 = vpop.f32.mrf.mxu3 }
 0x262   :  { %1493 = vst.msk [vmem:[%s2485_s3 + $0x1c8] sm:$0xff] %vm1435_vm1, %v1428_v1  ;;  %v1039_v4 = vmax.f32 %v781_v0, %v966_v2  ;;  %v516_v5 = vpop.f32.mrf.mxu0  ;;  %v710_v6 = vpop.f32.mrf.mxu1 }
 0x263   :  { %v782_v10 = vmax.f32 %v516_v5, %v710_v6 }
 0x264   :  { %v1297_v7 = vmax.f32 %v1039_v4, %v1224_v3 }
 0x266   :  { %v1365_v8 = vadd.f32 %v2349_v27, %v1297_v7 }
 0x268   :  { %v1429_v9 = vmax.f32 %v1365_v8, 0.0 }
 0x269   :  { %v968_v11 = vpop.f32.mrf.mxu2  ;;  %v1226_v12 = vpop.f32.mrf.mxu3 }
 0x26a   :  { %1494 = vst.msk [vmem:[%s2485_s3 + $0x1d0] sm:$0xff] %vm1435_vm1, %v1429_v9  ;;  %v1040_v13 = vmax.f32 %v782_v10, %v968_v11  ;;  %v519_v14 = vpop.f32.mrf.mxu0  ;;  %v713_v15 = vpop.f32.mrf.mxu1 }
 0x26b   :  { %v783_v18 = vmax.f32 %v519_v14, %v713_v15 }
 0x26c   :  { %v1298_v16 = vmax.f32 %v1040_v13, %v1226_v12 }
 0x26e   :  { %v1366_v17 = vadd.f32 %v2349_v27, %v1298_v16 }
 0x270   :  { %v1430_v19 = vmax.f32 %v1366_v17, 0.0 }
 0x271   :  { %v971_v20 = vpop.f32.mrf.mxu2  ;;  %v1229_v21 = vpop.f32.mrf.mxu3 }
 0x272   :  { %1495 = vst.msk [vmem:[%s2485_s3 + $0x1d8] sm:$0xff] %vm1435_vm1, %v1430_v19  ;;  %v1041_v22 = vmax.f32 %v783_v18, %v971_v20  ;;  %v521_v23 = vpop.f32.mrf.mxu0  ;;  %v715_v24 = vpop.f32.mrf.mxu1 }
 0x273   :  { %v784_v29 = vmax.f32 %v521_v23, %v715_v24 }
 0x274   :  { %v1299_v25 = vmax.f32 %v1041_v22, %v1229_v21 }
 0x276   :  { %v1367_v26 = vadd.f32 %v2349_v27, %v1299_v25 }
 0x278   :  { %v1431_v28 = vmax.f32 %v1367_v26, 0.0 }
 0x279   :  { %v973_v30 = vpop.f32.mrf.mxu2  ;;  %v1231_v31 = vpop.f32.mrf.mxu3 }
 0x27a   :  { %1496 = vst.msk [vmem:[%s2485_s3 + $0x1e0] sm:$0xff] %vm1435_vm1, %v1431_v28  ;;  %v1042_v32 = vmax.f32 %v784_v29, %v973_v30  ;;  %v524_v33 = vpop.f32.mrf.mxu0  ;;  %v718_v34 = vpop.f32.mrf.mxu1 }
 0x27b   :  { %v785_v37 = vmax.f32 %v524_v33, %v718_v34 }
 0x27c   :  { %v1300_v35 = vmax.f32 %v1042_v32, %v1231_v31 }
 0x27e   :  { %v1368_v36 = vadd.f32 %v2349_v27, %v1300_v35 }
 0x280   :  { %v1432_v38 = vmax.f32 %v1368_v36, 0.0 }
 0x281   :  { %v976_v39 = vpop.f32.mrf.mxu2  ;;  %v1234_v40 = vpop.f32.mrf.mxu3 }
 0x282   :  { %1497 = vst.msk [vmem:[%s2485_s3 + $0x1e8] sm:$0xff] %vm1435_vm1, %v1432_v38  ;;  %v1043_v41 = vmax.f32 %v785_v37, %v976_v39  ;;  %v526_v43 = vpop.f32.mrf.mxu0  ;;  %v720_v44 = vpop.f32.mrf.mxu1 }
 0x283   :  { %v786_v47 = vmax.f32 %v526_v43, %v720_v44 }
 0x284   :  { %v1301_v42 = vmax.f32 %v1043_v41, %v1234_v40 }
 0x286   :  { %v1369_v45 = vadd.f32 %v2349_v27, %v1301_v42 }
 0x288   :  { %v1433_v46 = vmax.f32 %v1369_v45, 0.0 }
 0x289   :  { %v978_v48 = vpop.f32.mrf.mxu2  ;;  %v1236_v50 = vpop.f32.mrf.mxu3 }
 0x28a   :  { %1498 = vst.msk [vmem:[%s2485_s3 + $0x1f0] sm:$0xff] %vm1435_vm1, %v1433_v46  ;;  %v1044_v49 = vmax.f32 %v786_v47, %v978_v48 }
 0x28c   :  { %v1302_v51 = vmax.f32 %v1044_v49, %v1236_v50 }
 0x28e   :  { %v1370_v52 = vadd.f32 %v2349_v27, %v1302_v51 }
 0x290   :  { %v1434_v53 = vmax.f32 %v1370_v52, 0.0 }
 0x292   :  { %1499 = vst.msk [vmem:[%s2485_s3 + $0x1f8] sm:$0xff] %vm1435_vm1, %v1434_v53 }

// kernel: simple_cnn_forward.4
= control target key start
LH: loop header
LB: loop body
LE: loop exit
PB: predicated region body
PF: predicated region fallthrough
CT: control target
= control target key end

     0   :  { %vm2101_vm0 = vcmask 523264   ;;  %s4180_s1 = inlined_call_operand.vmem [shape: bf16[4,512,64], index: 1, kind: input, shape index: {}]   ;;  %s4181_s0 = inlined_call_operand.vmem [shape: bf16[2,64,512], index: 0, kind: input, shape index: {}]   ;;  %s4182_s2 = inlined_call_operand.vmem [shape: f32[1,64], index: 2, kind: input, shape index: {}]   ;;  %s4183_s3 = inlined_call_operand.vmem [shape: f32[2,64,64], index: 3, kind: output, shape index: {}]  }
   0x1   :  { %v2993_v0 = vld [vmem:[%s4180_s1 + $0x38] sm:$0xff]  ;;  %v2992_v4 = vld [vmem:[%s4180_s1 + $0x30] sm:$0xff]  ;;  %v2991_v8 = vld [vmem:[%s4180_s1 + $0x28] sm:$0xff] }
   0x2   :  { %v3001_v1 = vld [vmem:[%s4180_s1 + $0x78] sm:$0xff]  ;;  %462 = vmatpush.bf16.msra.mxu0 %v2993_v0  ;;  %v3000_v5 = vld [vmem:[%s4180_s1 + $0x70] sm:$0xff]  ;;  %v2999_v9 = vld [vmem:[%s4180_s1 + $0x68] sm:$0xff] }
   0x3   :  { %v3009_v2 = vld [vmem:[%s4180_s1 + $0xb8] sm:$0xff]  ;;  %511 = vmatpush.bf16.msra.mxu1 %v3001_v1  ;;  %v3008_v6 = vld [vmem:[%s4180_s1 + $0xb0] sm:$0xff]  ;;  %v3007_v10 = vld [vmem:[%s4180_s1 + $0xa8] sm:$0xff] }
   0x4   :  { %v3017_v3 = vld [vmem:[%s4180_s1 + $0xf8] sm:$0xff]  ;;  %560 = vmatpush.bf16.msra.mxu2 %v3009_v2  ;;  %v3016_v7 = vld [vmem:[%s4180_s1 + $0xf0] sm:$0xff]  ;;  %v3015_v11 = vld [vmem:[%s4180_s1 + $0xe8] sm:$0xff] }
   0x5   :  { %609 = vmatpush.bf16.msra.mxu3 %v3017_v3  ;;  %v2990_v12 = vld [vmem:[%s4180_s1 + $0x20] sm:$0xff]  ;;  %v2989_v16 = vld [vmem:[%s4180_s1 + $0x18] sm:$0xff]  ;;  %v2988_v20 = vld [vmem:[%s4180_s1 + $0x10] sm:$0xff] }
   0x6   :  { %463 = vmatpush.bf16.msra.mxu0 %v2992_v4  ;;  %v2998_v13 = vld [vmem:[%s4180_s1 + $0x60] sm:$0xff]  ;;  %v2997_v17 = vld [vmem:[%s4180_s1 + $0x58] sm:$0xff]  ;;  %v2996_v21 = vld [vmem:[%s4180_s1 + $0x50] sm:$0xff] }
   0x7   :  { %512 = vmatpush.bf16.msra.mxu1 %v3000_v5  ;;  %v3006_v14 = vld [vmem:[%s4180_s1 + $0xa0] sm:$0xff]  ;;  %v3005_v18 = vld [vmem:[%s4180_s1 + $0x98] sm:$0xff]  ;;  %v3004_v22 = vld [vmem:[%s4180_s1 + $0x90] sm:$0xff] }
   0x8   :  { %561 = vmatpush.bf16.msra.mxu2 %v3008_v6  ;;  %v3014_v15 = vld [vmem:[%s4180_s1 + $0xe0] sm:$0xff]  ;;  %v3013_v19 = vld [vmem:[%s4180_s1 + $0xd8] sm:$0xff]  ;;  %v3012_v23 = vld [vmem:[%s4180_s1 + $0xd0] sm:$0xff] }
   0x9   :  { %610 = vmatpush.bf16.msra.mxu3 %v3016_v7  ;;  %v2987_v24 = vld [vmem:[%s4180_s1 + $0x8] sm:$0xff]  ;;  %v2986_v28 = vld [vmem:[%s4180_s1] sm:$0xff]  ;;  %v2956_v33 = vld [vmem:[%s4181_s0 + $0xc] sm:$0xf0] }
   0xa   :  { %464 = vmatpush.bf16.msra.mxu0 %v2991_v8  ;;  %v2995_v25 = vld [vmem:[%s4180_s1 + $0x48] sm:$0xff]  ;;  %v2994_v29 = vld [vmem:[%s4180_s1 + $0x40] sm:$0xff]  ;;  %v2126_v35 = vld [vmem:[%s4181_s0 + $0x10] sm:$0xf0] }
   0xb   :  { %513 = vmatpush.bf16.msra.mxu1 %v2999_v9  ;;  %v3003_v26 = vld [vmem:[%s4180_s1 + $0x88] sm:$0xff]  ;;  %v3002_v30 = vld [vmem:[%s4180_s1 + $0x80] sm:$0xff]  ;;  %v2957_v37 = vld [vmem:[%s4181_s0 + $0x14] sm:$0xf0] }
   0xc   :  { %562 = vmatpush.bf16.msra.mxu2 %v3007_v10  ;;  %v3011_v27 = vld [vmem:[%s4180_s1 + $0xc8] sm:$0xff]  ;;  %v3010_v31 = vld [vmem:[%s4180_s1 + $0xc0] sm:$0xff]  ;;  %v2134_v39 = vld [vmem:[%s4181_s0 + $0x18] sm:$0xf0] }
   0xd   :  { %611 = vmatpush.bf16.msra.mxu3 %v3015_v11  ;;  %v2124_v32 = vld [vmem:[%s4181_s0] sm:$0xf]  ;;  %v2954_v34 = vld [vmem:[%s4181_s0 + $0x4] sm:$0xf]  ;;  %v2132_v36 = vld [vmem:[%s4181_s0 + $0x8] sm:$0xf] }
   0xe   :  { %465 = vmatpush.bf16.msra.mxu0 %v2990_v12  ;;  %v2955_v38 = vld [vmem:[%s4181_s0 + $0xc] sm:$0xf]  ;;  %v3041_v40 = vld [vmem:[%s4180_s1 + $0x1b8] sm:$0xff]  ;;  %v3261_v42 = vor.u32 %v2956_v33, %v2124_v32  ;;  %v3263_v43 = vor.u32 %v2954_v34, %v2126_v35  ;;  %v3265_v44 = vor.u32 %v2957_v37, %v2132_v36  ;;  %v3040_v48 = vld [vmem:[%s4180_s1 + $0x1b0] sm:$0xff] }
   0xf   :  { %514 = vmatpush.bf16.msra.mxu1 %v2998_v13  ;;  %v3049_v41 = vld [vmem:[%s4180_s1 + $0x1f8] sm:$0xff]  ;;  %v3267_v45 = vor.u32 %v2955_v38, %v2134_v39  ;;  %v3048_v49 = vld [vmem:[%s4180_s1 + $0x1f0] sm:$0xff]  ;;  %v3039_v52 = vld [vmem:[%s4180_s1 + $0x1a8] sm:$0xff] }
  0x10   :  { %563 = vmatpush.bf16.msra.mxu2 %v3006_v14  ;;  %v3025_v46 = vld [vmem:[%s4180_s1 + $0x138] sm:$0xff]  ;;  %v3024_v50 = vld [vmem:[%s4180_s1 + $0x130] sm:$0xff]  ;;  %v3047_v53 = vld [vmem:[%s4180_s1 + $0x1e8] sm:$0xff] }
  0x11   :  { %612 = vmatpush.bf16.msra.mxu3 %v3014_v15  ;;  %v3033_v47 = vld [vmem:[%s4180_s1 + $0x178] sm:$0xff]  ;;  %v3032_v51 = vld [vmem:[%s4180_s1 + $0x170] sm:$0xff]  ;;  %v3023_v54 = vld [vmem:[%s4180_s1 + $0x128] sm:$0xff] }
  0x12   :  { %466 = vmatpush.bf16.msra.mxu0 %v2989_v16  ;;  %v3031_v55 = vld [vmem:[%s4180_s1 + $0x168] sm:$0xff]  ;;  %v2140_v56 = vld [vmem:[%s4181_s0 + $0x20] sm:$0xf]  ;;  %v2960_v57 = vld [vmem:[%s4181_s0 + $0x2c] sm:$0xf0] }
  0x13   :  { %515 = vmatpush.bf16.msra.mxu1 %v2997_v17  ;;  %v2958_v58 = vld [vmem:[%s4181_s0 + $0x24] sm:$0xf]  ;;  %v2142_v59 = vld [vmem:[%s4181_s0 + $0x30] sm:$0xf0]  ;;  %v2148_v60 = vld [vmem:[%s4181_s0 + $0x28] sm:$0xf]  ;;  %v3327_v0 = vor.u32 %v2960_v57, %v2140_v56 }
  0x14   :  { %564 = vmatpush.bf16.msra.mxu2 %v3005_v18  ;;  %v2961_v61 = vld [vmem:[%s4181_s0 + $0x34] sm:$0xf0]  ;;  %v2959_v62 = vld [vmem:[%s4181_s0 + $0x2c] sm:$0xf]  ;;  %v2150_v63 = vld [vmem:[%s4181_s0 + $0x38] sm:$0xf0]  ;;  %v3329_v1 = vor.u32 %v2958_v58, %v2142_v59 }
  0x15   :  { %613 = vmatpush.bf16.msra.mxu3 %v3013_v19  ;;  %v3331_v2 = vor.u32 %v2961_v61, %v2148_v60  ;;  %v3333_v3 = vor.u32 %v2959_v62, %v2150_v63  ;;  %v3038_v4 = vld [vmem:[%s4180_s1 + $0x1a0] sm:$0xff]  ;;  %v2964_v9 = vld [vmem:[%s4181_s0 + $0x4c] sm:$0xf0]  ;;  %v2158_v11 = vld [vmem:[%s4181_s0 + $0x50] sm:$0xf0] }
  0x16   :  { %467 = vmatpush.bf16.msra.mxu0 %v2988_v20  ;;  %v3046_v5 = vld [vmem:[%s4180_s1 + $0x1e0] sm:$0xff]  ;;  %v2164_v12 = vld [vmem:[%s4181_s0 + $0x48] sm:$0xf]  ;;  %v2965_v13 = vld [vmem:[%s4181_s0 + $0x54] sm:$0xf0] }
  0x17   :  { %516 = vmatpush.bf16.msra.mxu1 %v2996_v21  ;;  %v3022_v6 = vld [vmem:[%s4180_s1 + $0x120] sm:$0xff]  ;;  %v2963_v14 = vld [vmem:[%s4181_s0 + $0x4c] sm:$0xf]  ;;  %v2166_v15 = vld [vmem:[%s4181_s0 + $0x58] sm:$0xf0]  ;;  %v3379_v18 = vor.u32 %v2965_v13, %v2164_v12 }
  0x18   :  { %565 = vmatpush.bf16.msra.mxu2 %v3004_v22  ;;  %v3030_v7 = vld [vmem:[%s4180_s1 + $0x160] sm:$0xff]  ;;  %v3381_v19 = vor.u32 %v2963_v14, %v2166_v15  ;;  %v3037_v20 = vld [vmem:[%s4180_s1 + $0x198] sm:$0xff]  ;;  %v3036_v36 = vld [vmem:[%s4180_s1 + $0x190] sm:$0xff] }
  0x19   :  { %614 = vmatpush.bf16.msra.mxu3 %v3012_v23  ;;  %v2156_v8 = vld [vmem:[%s4181_s0 + $0x40] sm:$0xf]  ;;  %v2962_v10 = vld [vmem:[%s4181_s0 + $0x44] sm:$0xf]  ;;  %v3045_v21 = vld [vmem:[%s4180_s1 + $0x1d8] sm:$0xff] }
  0x1a   :  { %468 = vmatpush.bf16.msra.mxu0 %v2987_v24  ;;  %v3375_v16 = vor.u32 %v2964_v9, %v2156_v8  ;;  %v3377_v17 = vor.u32 %v2962_v10, %v2158_v11  ;;  %4198 = vst [vmem:[#allocation2_spill] sm:$0xff] %v3381_v19  ;;  %v3021_v22 = vld [vmem:[%s4180_s1 + $0x118] sm:$0xff]  ;;  %v2172_v24 = vld [vmem:[%s4181_s0 + $0x60] sm:$0xf]  ;;  %v3044_v37 = vld [vmem:[%s4180_s1 + $0x1d0] sm:$0xff] }
  0x1b   :  { %517 = vmatpush.bf16.msra.mxu1 %v2995_v25  ;;  %v3029_v23 = vld [vmem:[%s4180_s1 + $0x158] sm:$0xff]  ;;  %v2968_v25 = vld [vmem:[%s4181_s0 + $0x6c] sm:$0xf0]  ;;  %v3035_v56 = vld [vmem:[%s4180_s1 + $0x188] sm:$0xff] }
  0x1c   :  { %566 = vmatpush.bf16.msra.mxu2 %v3003_v26  ;;  %v2966_v26 = vld [vmem:[%s4181_s0 + $0x64] sm:$0xf]  ;;  %v3423_v32 = vor.u32 %v2968_v25, %v2172_v24  ;;  %v3020_v38 = vld [vmem:[%s4180_s1 + $0x110] sm:$0xff]  ;;  %v3043_v57 = vld [vmem:[%s4180_s1 + $0x1c8] sm:$0xff] }
  0x1d   :  { %615 = vmatpush.bf16.msra.mxu3 %v3011_v27  ;;  %v2174_v27 = vld [vmem:[%s4181_s0 + $0x70] sm:$0xf0]  ;;  %v3019_v58 = vld [vmem:[%s4180_s1 + $0x108] sm:$0xff]  ;;  %v2204_v60 = vld [vmem:[%s4181_s0 + $0xa0] sm:$0xf] }
  0x1e   :  { %469 = vmatpush.bf16.msra.mxu0 %v2986_v28  ;;  %v2180_v28 = vld [vmem:[%s4181_s0 + $0x68] sm:$0xf]  ;;  %v3425_v33 = vor.u32 %v2966_v26, %v2174_v27  ;;  %v3028_v39 = vld [vmem:[%s4180_s1 + $0x150] sm:$0xff]  ;;  %v2974_v62 = vld [vmem:[%s4181_s0 + $0xa4] sm:$0xf] }
  0x1f   :  { %518 = vmatpush.bf16.msra.mxu1 %v2994_v29  ;;  %v2969_v29 = vld [vmem:[%s4181_s0 + $0x74] sm:$0xf0]  ;;  %v3027_v59 = vld [vmem:[%s4180_s1 + $0x148] sm:$0xff]  ;;  %v2976_v61 = vld [vmem:[%s4181_s0 + $0xac] sm:$0xf0] }
  0x20   :  { %567 = vmatpush.bf16.msra.mxu2 %v3002_v30  ;;  %v2967_v30 = vld [vmem:[%s4181_s0 + $0x6c] sm:$0xf]  ;;  %v3427_v34 = vor.u32 %v2969_v29, %v2180_v28  ;;  %v2206_v63 = vld [vmem:[%s4181_s0 + $0xb0] sm:$0xf0]  ;;  %v3519_v8 = vor.u32 %v2976_v61, %v2204_v60  ;;  %v3034_v12 = vld [vmem:[%s4180_s1 + $0x180] sm:$0xff] }
  0x21   :  { %616 = vmatpush.bf16.msra.mxu3 %v3010_v31  ;;  %470 = vmatmul.bf16.vlgmr.msra.gmra.mxu0 %v3261_v42  ;;  %v2182_v31 = vld [vmem:[%s4181_s0 + $0x78] sm:$0xf0]  ;;  %v3521_v9 = vor.u32 %v2974_v62, %v2206_v63  ;;  %v3042_v13 = vld [vmem:[%s4180_s1 + $0x1c0] sm:$0xff]  ;;  %v2228_v24 = vld [vmem:[%s4181_s0 + $0xc8] sm:$0xf] }
  0x22   :  { %519 = vmatmul.bf16.vlgmr.msra.gmra.mxu1 %v3263_v43  ;;  %915 = vmatpush.bf16.msrb.mxu0 %v3025_v46  ;;  %4199 = vst [vmem:[#allocation3_spill] sm:$0xff] %v3427_v34  ;;  %v3429_v35 = vor.u32 %v2967_v30, %v2182_v31  ;;  %v2970_v46 = vld [vmem:[%s4181_s0 + $0x84] sm:$0xf]  ;;  %v2981_v25 = vld [vmem:[%s4181_s0 + $0xd4] sm:$0xf0]  ;;  %v3072_v60 = vld [vmem:[%s4180_s1 + $0x2b0] sm:$0xff] }
  0x23   :  { %568 = vmatmul.bf16.vlgmr.msra.gmra.mxu2 %v3265_v44  ;;  %964 = vmatpush.bf16.msrb.mxu1 %v3033_v47  ;;  %v2190_v47 = vld [vmem:[%s4181_s0 + $0x90] sm:$0xf0]  ;;  %v3018_v14 = vld [vmem:[%s4180_s1 + $0x100] sm:$0xff]  ;;  %v2979_v26 = vld [vmem:[%s4181_s0 + $0xcc] sm:$0xf]  ;;  %v3571_v30 = vor.u32 %v2981_v25, %v2228_v24 }
  0x24   :  { %1013 = vmatpush.bf16.msrb.mxu2 %v3041_v40  ;;  %617 = vmatmul.bf16.vlgmr.msra.gmra.mxu3 %v3267_v45  ;;  %4200 = vst [vmem:[#allocation4_spill] sm:$0xff] %v3429_v35  ;;  %v2188_v40 = vld [vmem:[%s4181_s0 + $0x80] sm:$0xf]  ;;  %v2230_v27 = vld [vmem:[%s4181_s0 + $0xd8] sm:$0xf0]  ;;  %v3080_v61 = vld [vmem:[%s4180_s1 + $0x2f0] sm:$0xff] }
  0x25   :  { %1062 = vmatpush.bf16.msrb.mxu3 %v3049_v41  ;;  %v2972_v41 = vld [vmem:[%s4181_s0 + $0x8c] sm:$0xf0]  ;;  %v3026_v15 = vld [vmem:[%s4180_s1 + $0x140] sm:$0xff]  ;;  %4207 = vst [vmem:[#allocation11_spill] sm:$0xff] %v3571_v30  ;;  %v3573_v31 = vor.u32 %v2979_v26, %v2230_v27  ;;  %v3055_v24 = vld [vmem:[%s4180_s1 + $0x228] sm:$0xff] }
  0x26   :  { %916 = vmatpush.bf16.msrb.mxu0 %v3024_v50  ;;  %v2971_v50 = vld [vmem:[%s4181_s0 + $0x8c] sm:$0xf]  ;;  %v3056_v62 = vld [vmem:[%s4180_s1 + $0x230] sm:$0xff] }
  0x27   :  { %965 = vmatpush.bf16.msrb.mxu1 %v3032_v51  ;;  %v2198_v51 = vld [vmem:[%s4181_s0 + $0x98] sm:$0xf0]  ;;  %v3064_v63 = vld [vmem:[%s4180_s1 + $0x270] sm:$0xff]  ;;  %v3063_v25 = vld [vmem:[%s4180_s1 + $0x268] sm:$0xff] }
  0x28   :  { %1014 = vmatpush.bf16.msrb.mxu2 %v3040_v48  ;;  %v2196_v48 = vld [vmem:[%s4181_s0 + $0x88] sm:$0xf] }
  0x29   :  { %1063 = vmatpush.bf16.msrb.mxu3 %v3048_v49  ;;  %v2973_v49 = vld [vmem:[%s4181_s0 + $0x94] sm:$0xf0] }
  0x2a   :  { %917 = vmatpush.bf16.msrb.mxu0 %v3023_v54  ;;  %v3475_v54 = vor.u32 %v2973_v49, %v2196_v48  ;;  %v2244_v48 = vld [vmem:[%s4181_s0 + $0xe8] sm:$0xf]  ;;  %v2985_v49 = vld [vmem:[%s4181_s0 + $0xf4] sm:$0xf0] }
  0x2b   :  { %966 = vmatpush.bf16.msrb.mxu1 %v3031_v55  ;;  %v3477_v55 = vor.u32 %v2971_v50, %v2198_v51  ;;  %v2983_v50 = vld [vmem:[%s4181_s0 + $0xec] sm:$0xf]  ;;  %v2246_v51 = vld [vmem:[%s4181_s0 + $0xf8] sm:$0xf0] }
  0x2c   :  { %1015 = vmatpush.bf16.msrb.mxu2 %v3039_v52  ;;  %v3471_v52 = vor.u32 %v2972_v41, %v2188_v40  ;;  %4201 = vst [vmem:[#allocation5_spill] sm:$0xff] %v3475_v54  ;;  %v2236_v40 = vld [vmem:[%s4181_s0 + $0xe0] sm:$0xf]  ;;  %v2984_v41 = vld [vmem:[%s4181_s0 + $0xec] sm:$0xf0] }
  0x2d   :  { %1064 = vmatpush.bf16.msrb.mxu3 %v3047_v53  ;;  %v3473_v53 = vor.u32 %v2970_v46, %v2190_v47  ;;  %4202 = vst [vmem:[#allocation6_spill] sm:$0xff] %v3477_v55  ;;  %v2982_v46 = vld [vmem:[%s4181_s0 + $0xe4] sm:$0xf]  ;;  %v2238_v47 = vld [vmem:[%s4181_s0 + $0xf0] sm:$0xf0] }
  0x2e   :  { %918 = vmatpush.bf16.msrb.mxu0 %v3022_v6  ;;  %v2975_v6 = vld [vmem:[%s4181_s0 + $0xac] sm:$0xf] }
  0x2f   :  { %967 = vmatpush.bf16.msrb.mxu1 %v3030_v7  ;;  %v2214_v7 = vld [vmem:[%s4181_s0 + $0xb8] sm:$0xf0] }
  0x30   :  { %1016 = vmatpush.bf16.msrb.mxu2 %v3038_v4  ;;  %v2212_v4 = vld [vmem:[%s4181_s0 + $0xa8] sm:$0xf]  ;;  %v3525_v11 = vor.u32 %v2975_v6, %v2214_v7 }
  0x31   :  { %475 = vmatmul.bf16.gmra.mxu0 %v3327_v0  ;;  %1065 = vmatpush.bf16.msrb.mxu3 %v3046_v5  ;;  %v2977_v5 = vld [vmem:[%s4181_s0 + $0xb4] sm:$0xf0]  ;;  %v3071_v7 = vld [vmem:[%s4180_s1 + $0x2a8] sm:$0xff] }
  0x32   :  { %524 = vmatmul.bf16.gmra.mxu1 %v3329_v1  ;;  %919 = vmatpush.bf16.msrb.mxu0 %v3021_v22  ;;  %v3523_v10 = vor.u32 %v2977_v5, %v2212_v4  ;;  %4204 = vst [vmem:[#allocation8_spill] sm:$0xff] %v3525_v11  ;;  %v2978_v22 = vld [vmem:[%s4181_s0 + $0xc4] sm:$0xf] }
  0x33   :  { %573 = vmatmul.bf16.gmra.mxu2 %v3331_v2  ;;  %968 = vmatpush.bf16.msrb.mxu1 %v3029_v23  ;;  %v2222_v23 = vld [vmem:[%s4181_s0 + $0xd0] sm:$0xf0] }
  0x34   :  { %622 = vmatmul.bf16.gmra.mxu3 %v3333_v3  ;;  %1017 = vmatpush.bf16.msrb.mxu2 %v3037_v20  ;;  %4203 = vst [vmem:[#allocation7_spill] sm:$0xff] %v3523_v10  ;;  %v2220_v20 = vld [vmem:[%s4181_s0 + $0xc0] sm:$0xf]  ;;  %v3569_v29 = vor.u32 %v2978_v22, %v2222_v23 }
  0x35   :  { %1066 = vmatpush.bf16.msrb.mxu3 %v3045_v21  ;;  %v2980_v21 = vld [vmem:[%s4181_s0 + $0xcc] sm:$0xf0] }
  0x36   :  { %920 = vmatpush.bf16.msrb.mxu0 %v3020_v38  ;;  %v3567_v28 = vor.u32 %v2980_v21, %v2220_v20  ;;  %4206 = vst [vmem:[#allocation10_spill] sm:$0xff] %v3569_v29  ;;  %v3057_v38 = vld [vmem:[%s4180_s1 + $0x238] sm:$0xff] }
  0x37   :  { %969 = vmatpush.bf16.msrb.mxu1 %v3028_v39  ;;  %v3065_v39 = vld [vmem:[%s4180_s1 + $0x278] sm:$0xff] }
  0x38   :  { %1018 = vmatpush.bf16.msrb.mxu2 %v3036_v36  ;;  %4205 = vst [vmem:[#allocation9_spill] sm:$0xff] %v3567_v28  ;;  %v3073_v36 = vld [vmem:[%s4180_s1 + $0x2b8] sm:$0xff] }
  0x39   :  { %1067 = vmatpush.bf16.msrb.mxu3 %v3044_v37  ;;  %v3081_v37 = vld [vmem:[%s4180_s1 + $0x2f8] sm:$0xff] }
  0x3a   :  { %921 = vmatpush.bf16.msrb.mxu0 %v3019_v58  ;;  %v3619_v58 = vor.u32 %v2985_v49, %v2244_v48 }
  0x3b   :  { %970 = vmatpush.bf16.msrb.mxu1 %v3027_v59  ;;  %v3621_v59 = vor.u32 %v2983_v50, %v2246_v51 }
  0x3c   :  { %1019 = vmatpush.bf16.msrb.mxu2 %v3035_v56  ;;  %v3615_v56 = vor.u32 %v2984_v41, %v2236_v40  ;;  %4208 = vst [vmem:[#allocation12_spill] sm:$0xff] %v3619_v58  ;;  %v3070_v41 = vld [vmem:[%s4180_s1 + $0x2a0] sm:$0xff] }
  0x3d   :  { %1068 = vmatpush.bf16.msrb.mxu3 %v3043_v57  ;;  %v3617_v57 = vor.u32 %v2982_v46, %v2238_v47  ;;  %v3078_v46 = vld [vmem:[%s4180_s1 + $0x2e0] sm:$0xff] }
  0x3e   :  { %922 = vmatpush.bf16.msrb.mxu0 %v3018_v14 }
  0x3f   :  { %971 = vmatpush.bf16.msrb.mxu1 %v3026_v15 }
  0x40   :  { %1020 = vmatpush.bf16.msrb.mxu2 %v3034_v12  ;;  %v3079_v12 = vld [vmem:[%s4180_s1 + $0x2e8] sm:$0xff] }
  0x41   :  { %480 = vmatmul.bf16.gmra.mxu0 %v3375_v16  ;;  %1069 = vmatpush.bf16.msrb.mxu3 %v3042_v13 }
  0x42   :  { %529 = vmatmul.bf16.gmra.mxu1 %v3377_v17  ;;  %1384 = vmatpush.bf16.msra.mxu0 %v3057_v38 }
  0x43   :  { %578 = vmatmul.bf16.gmra.mxu2 %v3379_v18  ;;  %1433 = vmatpush.bf16.msra.mxu1 %v3065_v39 }
  0x44   :  { %627 = vmatmul.bf16.gmra.mxu3 %v3381_v19  ;;  %1482 = vmatpush.bf16.msra.mxu2 %v3073_v36 }
  0x45   :  { %1531 = vmatpush.bf16.msra.mxu3 %v3081_v37 }
  0x46   :  { %1385 = vmatpush.bf16.msra.mxu0 %v3056_v62  ;;  %v3054_v62 = vld [vmem:[%s4180_s1 + $0x220] sm:$0xff] }
  0x47   :  { %1434 = vmatpush.bf16.msra.mxu1 %v3064_v63  ;;  %v3062_v63 = vld [vmem:[%s4180_s1 + $0x260] sm:$0xff] }
  0x48   :  { %1483 = vmatpush.bf16.msra.mxu2 %v3072_v60 }
  0x49   :  { %1532 = vmatpush.bf16.msra.mxu3 %v3080_v61 }
  0x4a   :  { %1386 = vmatpush.bf16.msra.mxu0 %v3055_v24 }
  0x4b   :  { %1435 = vmatpush.bf16.msra.mxu1 %v3063_v25 }
  0x4c   :  { %1484 = vmatpush.bf16.msra.mxu2 %v3071_v7 }
  0x4d   :  { %1533 = vmatpush.bf16.msra.mxu3 %v3079_v12 }
  0x4e   :  { %1387 = vmatpush.bf16.msra.mxu0 %v3054_v62 }
  0x4f   :  { %1436 = vmatpush.bf16.msra.mxu1 %v3062_v63 }
  0x50   :  { %1485 = vmatpush.bf16.msra.mxu2 %v3070_v41 }
  0x51   :  { %485 = vmatmul.bf16.gmra.mxu0 %v3423_v32  ;;  %1534 = vmatpush.bf16.msra.mxu3 %v3078_v46 }
  0x52   :  { %534 = vmatmul.bf16.gmra.mxu1 %v3425_v33 }
  0x53   :  { %583 = vmatmul.bf16.gmra.mxu2 %v3427_v34 }
  0x54   :  { %632 = vmatmul.bf16.gmra.mxu3 %v3429_v35 }
  0x61   :  { %490 = vmatmul.bf16.gmra.mxu0 %v3471_v52 }
  0x62   :  { %539 = vmatmul.bf16.gmra.mxu1 %v3473_v53 }
  0x63   :  { %588 = vmatmul.bf16.gmra.mxu2 %v3475_v54 }
  0x64   :  { %637 = vmatmul.bf16.gmra.mxu3 %v3477_v55 }
  0x71   :  { %495 = vmatmul.bf16.gmra.mxu0 %v3519_v8 }
  0x72   :  { %544 = vmatmul.bf16.gmra.mxu1 %v3521_v9 }
  0x73   :  { %593 = vmatmul.bf16.gmra.mxu2 %v3523_v10 }
  0x74   :  { %642 = vmatmul.bf16.gmra.mxu3 %v3525_v11 }
  0x81   :  { %500 = vmatmul.bf16.gmra.mxu0 %v3567_v28 }
  0x82   :  { %549 = vmatmul.bf16.gmra.mxu1 %v3569_v29 }
  0x83   :  { %598 = vmatmul.bf16.gmra.mxu2 %v3571_v30 }
  0x84   :  { %647 = vmatmul.bf16.gmra.mxu3 %v3573_v31 }
  0x91   :  { %505 = vmatmul.bf16.gmra.mxu0 %v3615_v56 }
  0x92   :  { %554 = vmatmul.bf16.gmra.mxu1 %v3617_v57 }
  0x93   :  { %603 = vmatmul.bf16.gmra.mxu2 %v3619_v58 }
  0x94   :  { %652 = vmatmul.bf16.gmra.mxu3 %v3621_v59 }
  0x9e   :  { %v471_v4 = vpop.f32.mrf.mxu0 }
  0x9f   :  { %v520_v5 = vpop.f32.mrf.mxu1 }
  0xa0   :  { %v521_v6 = vadd.f32 %v520_v5, %v471_v4 }
  0xa1   :  { %923 = vmatmul.bf16.vlgmr.msrb.gmra.mxu0 %v3261_v42 }
  0xa2   :  { %972 = vmatmul.bf16.vlgmr.msrb.gmra.mxu1 %v3263_v43 }
  0xa3   :  { %1021 = vmatmul.bf16.vlgmr.msrb.gmra.mxu2 %v3265_v44 }
  0xa4   :  { %1070 = vmatmul.bf16.vlgmr.msrb.gmra.mxu3 %v3267_v45 }
  0xa6   :  { %v569_v13 = vpop.f32.mrf.mxu2  ;;  %v473_v20 = vpop.f32.mrf.mxu0 }
  0xa7   :  { %v618_v14 = vpop.f32.mrf.mxu3  ;;  %v570_v15 = vadd.f32 %v569_v13, %v521_v6  ;;  %v522_v21 = vpop.f32.mrf.mxu1 }
  0xa8   :  { %v523_v22 = vadd.f32 %v522_v21, %v473_v20  ;;  %v3077_v20 = vld [vmem:[%s4180_s1 + $0x2d8] sm:$0xff] }
  0xa9   :  { %v3649_v23 = vadd.f32 %v618_v14, %v570_v15  ;;  %v3069_v15 = vld [vmem:[%s4180_s1 + $0x298] sm:$0xff]  ;;  %1535 = vmatpush.bf16.msra.mxu3 %v3077_v20 }
  0xaa   :  { %1486 = vmatpush.bf16.msra.mxu2 %v3069_v15  ;;  %v3060_v15 = vld [vmem:[%s4180_s1 + $0x250] sm:$0xff] }
  0xae   :  { %v571_v26 = vpop.f32.mrf.mxu2  ;;  %v476_v37 = vpop.f32.mrf.mxu0 }
  0xaf   :  { %v620_v27 = vpop.f32.mrf.mxu3  ;;  %v572_v36 = vadd.f32 %v571_v26, %v523_v22  ;;  %v525_v38 = vpop.f32.mrf.mxu1 }
  0xb0   :  { %v526_v39 = vadd.f32 %v525_v38, %v476_v37  ;;  %v3053_v37 = vld [vmem:[%s4180_s1 + $0x218] sm:$0xff] }
  0xb1   :  { %v3657_v40 = vadd.f32 %v620_v27, %v572_v36  ;;  %928 = vmatmul.bf16.gmra.mxu0 %v3327_v0  ;;  %v3061_v38 = vld [vmem:[%s4180_s1 + $0x258] sm:$0xff] }
  0xb2   :  { %977 = vmatmul.bf16.gmra.mxu1 %v3329_v1  ;;  %1388 = vmatpush.bf16.msra.mxu0 %v3053_v37  ;;  %v3067_v37 = vld [vmem:[%s4180_s1 + $0x288] sm:$0xff] }
  0xb3   :  { %1026 = vmatmul.bf16.gmra.mxu2 %v3331_v2  ;;  %1437 = vmatpush.bf16.msra.mxu1 %v3061_v38  ;;  %v3075_v38 = vld [vmem:[%s4180_s1 + $0x2c8] sm:$0xff] }
  0xb4   :  { %1075 = vmatmul.bf16.gmra.mxu3 %v3333_v3 }
  0xb6   :  { %v574_v47 = vpop.f32.mrf.mxu2  ;;  %v478_v50 = vpop.f32.mrf.mxu0 }
  0xb7   :  { %v623_v48 = vpop.f32.mrf.mxu3  ;;  %v575_v49 = vadd.f32 %v574_v47, %v526_v39  ;;  %v527_v51 = vpop.f32.mrf.mxu1  ;;  %1438 = vmatpush.bf16.msra.mxu1 %v3060_v15 }
  0xb8   :  { %v528_v60 = vadd.f32 %v527_v51, %v478_v50  ;;  %v3068_v51 = vld [vmem:[%s4180_s1 + $0x290] sm:$0xff] }
  0xb9   :  { %v3669_v61 = vadd.f32 %v623_v48, %v575_v49  ;;  %1487 = vmatpush.bf16.msra.mxu2 %v3068_v51 }
  0xbd   :  { %1488 = vmatpush.bf16.msra.mxu2 %v3067_v37 }
  0xbe   :  { %v576_v4 = vpop.f32.mrf.mxu2  ;;  %v481_v7 = vpop.f32.mrf.mxu0 }
  0xbf   :  { %v625_v5 = vpop.f32.mrf.mxu3  ;;  %v577_v6 = vadd.f32 %v576_v4, %v528_v60  ;;  %v530_v12 = vpop.f32.mrf.mxu1  ;;  %v3076_v60 = vld [vmem:[%s4180_s1 + $0x2d0] sm:$0xff] }
  0xc0   :  { %v531_v13 = vadd.f32 %v530_v12, %v481_v7  ;;  %1536 = vmatpush.bf16.msra.mxu3 %v3076_v60  ;;  %v3051_v60 = vld [vmem:[%s4180_s1 + $0x208] sm:$0xff] }
  0xc1   :  { %v3677_v14 = vadd.f32 %v625_v5, %v577_v6  ;;  %933 = vmatmul.bf16.gmra.mxu0 %v3375_v16 }
  0xc2   :  { %982 = vmatmul.bf16.gmra.mxu1 %v3377_v17 }
  0xc3   :  { %1031 = vmatmul.bf16.gmra.mxu2 %v3379_v18 }
  0xc4   :  { %1080 = vmatmul.bf16.gmra.mxu3 %v3381_v19 }
  0xc5   :  { %1537 = vmatpush.bf16.msra.mxu3 %v3075_v38 }
  0xc6   :  { %v579_v21 = vpop.f32.mrf.mxu2  ;;  %v483_v25 = vpop.f32.mrf.mxu0 }
  0xc7   :  { %v628_v22 = vpop.f32.mrf.mxu3  ;;  %v580_v24 = vadd.f32 %v579_v21, %v531_v13  ;;  %v532_v26 = vpop.f32.mrf.mxu1  ;;  %v3052_v13 = vld [vmem:[%s4180_s1 + $0x210] sm:$0xff] }
  0xc8   :  { %v533_v27 = vadd.f32 %v532_v26, %v483_v25  ;;  %1389 = vmatpush.bf16.msra.mxu0 %v3052_v13 }
  0xc9   :  { %v3689_v36 = vadd.f32 %v628_v22, %v580_v24 }
  0xcc   :  { %1390 = vmatpush.bf16.msra.mxu0 %v3051_v60 }
  0xce   :  { %v581_v39 = vpop.f32.mrf.mxu2  ;;  %v486_v47 = vpop.f32.mrf.mxu0 }
  0xcf   :  { %v630_v41 = vpop.f32.mrf.mxu3  ;;  %v582_v46 = vadd.f32 %v581_v39, %v533_v27  ;;  %v535_v48 = vpop.f32.mrf.mxu1 }
  0xd0   :  { %v536_v49 = vadd.f32 %v535_v48, %v486_v47 }
  0xd1   :  { %v3697_v50 = vadd.f32 %v630_v41, %v582_v46  ;;  %938 = vmatmul.bf16.gmra.mxu0 %v3423_v32 }
  0xd2   :  { %987 = vmatmul.bf16.gmra.mxu1 %v3425_v33 }
  0xd3   :  { %1036 = vmatmul.bf16.gmra.mxu2 %v3427_v34 }
  0xd4   :  { %1085 = vmatmul.bf16.gmra.mxu3 %v3429_v35 }
  0xd6   :  { %v584_v62 = vpop.f32.mrf.mxu2  ;;  %v488_v5 = vpop.f32.mrf.mxu0 }
  0xd7   :  { %v633_v63 = vpop.f32.mrf.mxu3  ;;  %v585_v4 = vadd.f32 %v584_v62, %v536_v49  ;;  %v537_v6 = vpop.f32.mrf.mxu1  ;;  %v3059_v62 = vld [vmem:[%s4180_s1 + $0x248] sm:$0xff] }
  0xd8   :  { %v538_v7 = vadd.f32 %v537_v6, %v488_v5  ;;  %1439 = vmatpush.bf16.msra.mxu1 %v3059_v62 }
  0xd9   :  { %v3709_v12 = vadd.f32 %v633_v63, %v585_v4 }
  0xde   :  { %v586_v20 = vpop.f32.mrf.mxu2  ;;  %v491_v24 = vpop.f32.mrf.mxu0 }
  0xdf   :  { %v635_v21 = vpop.f32.mrf.mxu3  ;;  %v587_v22 = vadd.f32 %v586_v20, %v538_v7  ;;  %v540_v25 = vpop.f32.mrf.mxu1  ;;  %v3066_v20 = vld [vmem:[%s4180_s1 + $0x280] sm:$0xff] }
  0xe0   :  { %v541_v26 = vadd.f32 %v540_v25, %v491_v24  ;;  %1489 = vmatpush.bf16.msra.mxu2 %v3066_v20 }
  0xe1   :  { %v3717_v27 = vadd.f32 %v635_v21, %v587_v22  ;;  %943 = vmatmul.bf16.gmra.mxu0 %v3471_v52  ;;  %v3074_v21 = vld [vmem:[%s4180_s1 + $0x2c0] sm:$0xff] }
  0xe2   :  { %992 = vmatmul.bf16.gmra.mxu1 %v3473_v53  ;;  %1538 = vmatpush.bf16.msra.mxu3 %v3074_v21 }
  0xe3   :  { %1041 = vmatmul.bf16.gmra.mxu2 %v3475_v54 }
  0xe4   :  { %1090 = vmatmul.bf16.gmra.mxu3 %v3477_v55 }
  0xe6   :  { %v589_v39 = vpop.f32.mrf.mxu2  ;;  %v493_v47 = vpop.f32.mrf.mxu0 }
  0xe7   :  { %v638_v41 = vpop.f32.mrf.mxu3  ;;  %v590_v46 = vadd.f32 %v589_v39, %v541_v26  ;;  %v542_v48 = vpop.f32.mrf.mxu1 }
  0xe8   :  { %v543_v49 = vadd.f32 %v542_v48, %v493_v47 }
  0xe9   :  { %v3729_v51 = vadd.f32 %v638_v41, %v590_v46  ;;  %v3050_v41 = vld [vmem:[%s4180_s1 + $0x200] sm:$0xff] }
  0xea   :  { %v3058_v46 = vld [vmem:[%s4180_s1 + $0x240] sm:$0xff]  ;;  %1391 = vmatpush.bf16.msra.mxu0 %v3050_v41 }
  0xeb   :  { %1440 = vmatpush.bf16.msra.mxu1 %v3058_v46 }
  0xee   :  { %v591_v63 = vpop.f32.mrf.mxu2  ;;  %v496_v6 = vpop.f32.mrf.mxu0 }
  0xef   :  { %v640_v4 = vpop.f32.mrf.mxu3  ;;  %v592_v5 = vadd.f32 %v591_v63, %v543_v49  ;;  %v545_v7 = vpop.f32.mrf.mxu1 }
  0xf0   :  { %v546_v13 = vadd.f32 %v545_v7, %v496_v6  ;;  %v3113_v6 = vld [vmem:[%s4180_s1 + $0x3f8] sm:$0xff] }
  0xf1   :  { %v3737_v15 = vadd.f32 %v640_v4, %v592_v5  ;;  %948 = vmatmul.bf16.gmra.mxu0 %v3519_v8  ;;  %v3105_v5 = vld [vmem:[%s4180_s1 + $0x3b8] sm:$0xff]  ;;  %2000 = vmatpush.bf16.msrb.mxu3 %v3113_v6 }
  0xf2   :  { %997 = vmatmul.bf16.gmra.mxu1 %v3521_v9  ;;  %1951 = vmatpush.bf16.msrb.mxu2 %v3105_v5 }
  0xf3   :  { %1046 = vmatmul.bf16.gmra.mxu2 %v3523_v10 }
  0xf4   :  { %1095 = vmatmul.bf16.gmra.mxu3 %v3525_v11 }
  0xf6   :  { %v594_v22 = vpop.f32.mrf.mxu2  ;;  %v498_v26 = vpop.f32.mrf.mxu0 }
  0xf7   :  { %v643_v24 = vpop.f32.mrf.mxu3  ;;  %v595_v25 = vadd.f32 %v594_v22, %v546_v13  ;;  %v547_v37 = vpop.f32.mrf.mxu1 }
  0xf8   :  { %v548_v38 = vadd.f32 %v547_v37, %v498_v26  ;;  %v3089_v26 = vld [vmem:[%s4180_s1 + $0x338] sm:$0xff] }
  0xf9   :  { %v3749_v39 = vadd.f32 %v643_v24, %v595_v25  ;;  %v3097_v37 = vld [vmem:[%s4180_s1 + $0x378] sm:$0xff]  ;;  %1853 = vmatpush.bf16.msrb.mxu0 %v3089_v26  ;;  %v3096_v26 = vld [vmem:[%s4180_s1 + $0x370] sm:$0xff] }
  0xfa   :  { %1902 = vmatpush.bf16.msrb.mxu1 %v3097_v37 }
  0xfe   :  { %v596_v47 = vpop.f32.mrf.mxu2  ;;  %v501_v60 = vpop.f32.mrf.mxu0  ;;  %1903 = vmatpush.bf16.msrb.mxu1 %v3096_v26  ;;  %v3085_v26 = vld [vmem:[%s4180_s1 + $0x318] sm:$0xff] }
  0xff   :  { %v645_v48 = vpop.f32.mrf.mxu3  ;;  %v597_v49 = vadd.f32 %v596_v47, %v548_v38  ;;  %v550_v62 = vpop.f32.mrf.mxu1 }
 0x100   :  { %v551_v63 = vadd.f32 %v550_v62, %v501_v60  ;;  %v3104_v62 = vld [vmem:[%s4180_s1 + $0x3b0] sm:$0xff] }
 0x101   :  { %v3757_v4 = vadd.f32 %v645_v48, %v597_v49  ;;  %953 = vmatmul.bf16.gmra.mxu0 %v3567_v28  ;;  %1952 = vmatpush.bf16.msrb.mxu2 %v3104_v62  ;;  %v3103_v62 = vld [vmem:[%s4180_s1 + $0x3a8] sm:$0xff] }
 0x102   :  { %1002 = vmatmul.bf16.gmra.mxu1 %v3569_v29 }
 0x103   :  { %1051 = vmatmul.bf16.gmra.mxu2 %v3571_v30 }
 0x104   :  { %1100 = vmatmul.bf16.gmra.mxu3 %v3573_v31 }
 0x105   :  { %1953 = vmatpush.bf16.msrb.mxu2 %v3103_v62 }
 0x106   :  { %v599_v7 = vpop.f32.mrf.mxu2  ;;  %v503_v21 = vpop.f32.mrf.mxu0 }
 0x107   :  { %v648_v13 = vpop.f32.mrf.mxu3  ;;  %v600_v20 = vadd.f32 %v599_v7, %v551_v63  ;;  %v552_v22 = vpop.f32.mrf.mxu1  ;;  %v3112_v63 = vld [vmem:[%s4180_s1 + $0x3f0] sm:$0xff] }
 0x108   :  { %v553_v24 = vadd.f32 %v552_v22, %v503_v21  ;;  %2001 = vmatpush.bf16.msrb.mxu3 %v3112_v63  ;;  %v3111_v63 = vld [vmem:[%s4180_s1 + $0x3e8] sm:$0xff] }
 0x109   :  { %v3769_v25 = vadd.f32 %v648_v13, %v600_v20 }
 0x10c   :  { %2002 = vmatpush.bf16.msrb.mxu3 %v3111_v63 }
 0x10e   :  { %v601_v38 = vpop.f32.mrf.mxu2  ;;  %v506_v47 = vpop.f32.mrf.mxu0 }
 0x10f   :  { %v650_v41 = vpop.f32.mrf.mxu3  ;;  %v602_v46 = vadd.f32 %v601_v38, %v553_v24  ;;  %v555_v48 = vpop.f32.mrf.mxu1  ;;  %v3088_v24 = vld [vmem:[%s4180_s1 + $0x330] sm:$0xff] }
 0x110   :  { %v556_v49 = vadd.f32 %v555_v48, %v506_v47  ;;  %1854 = vmatpush.bf16.msrb.mxu0 %v3088_v24 }
 0x111   :  { %v3777_v60 = vadd.f32 %v650_v41, %v602_v46  ;;  %958 = vmatmul.bf16.gmra.mxu0 %v3615_v56 }
 0x112   :  { %1007 = vmatmul.bf16.gmra.mxu1 %v3617_v57 }
 0x113   :  { %1056 = vmatmul.bf16.gmra.mxu2 %v3619_v58 }
 0x114   :  { %1105 = vmatmul.bf16.gmra.mxu3 %v3621_v59 }
 0x116   :  { %v604_v5 = vpop.f32.mrf.mxu2  ;;  %v508_v13 = vpop.f32.mrf.mxu0 }
 0x117   :  { %v653_v6 = vpop.f32.mrf.mxu3  ;;  %v605_v7 = vadd.f32 %v604_v5, %v556_v49  ;;  %v557_v20 = vpop.f32.mrf.mxu1 }
 0x118   :  { %v558_v21 = vadd.f32 %v557_v20, %v508_v13 }
 0x119   :  { %v3789_v22 = vadd.f32 %v653_v6, %v605_v7 }
 0x11e   :  { %v606_v37 = vpop.f32.mrf.mxu2  ;;  %v924_v46 = vpop.f32.mrf.mxu0 }
 0x11f   :  { %v655_v38 = vpop.f32.mrf.mxu3  ;;  %v607_v41 = vadd.f32 %v606_v37, %v558_v21  ;;  %v973_v47 = vpop.f32.mrf.mxu1  ;;  %v3087_v37 = vld [vmem:[%s4180_s1 + $0x328] sm:$0xff] }
 0x120   :  { %v974_v48 = vadd.f32 %v973_v47, %v924_v46  ;;  %1855 = vmatpush.bf16.msrb.mxu0 %v3087_v37 }
 0x121   :  { %v3797_v49 = vadd.f32 %v655_v38, %v607_v41  ;;  %1392 = vmatmul.bf16.vlgmr.msra.gmra.mxu0 %v3261_v42  ;;  %v3095_v38 = vld [vmem:[%s4180_s1 + $0x368] sm:$0xff] }
 0x122   :  { %1441 = vmatmul.bf16.vlgmr.msra.gmra.mxu1 %v3263_v43 }
 0x123   :  { %1490 = vmatmul.bf16.vlgmr.msra.gmra.mxu2 %v3265_v44  ;;  %1904 = vmatpush.bf16.msrb.mxu1 %v3095_v38 }
 0x124   :  { %1539 = vmatmul.bf16.vlgmr.msra.gmra.mxu3 %v3267_v45 }
 0x126   :  { %v1022_v5 = vpop.f32.mrf.mxu2  ;;  %v926_v13 = vpop.f32.mrf.mxu0 }
 0x127   :  { %v1071_v6 = vpop.f32.mrf.mxu3  ;;  %v1023_v7 = vadd.f32 %v1022_v5, %v974_v48  ;;  %v975_v20 = vpop.f32.mrf.mxu1 }
 0x128   :  { %v976_v21 = vadd.f32 %v975_v20, %v926_v13  ;;  %v3110_v13 = vld [vmem:[%s4180_s1 + $0x3e0] sm:$0xff] }
 0x129   :  { %v3809_v24 = vadd.f32 %v1071_v6, %v1023_v7  ;;  %v3102_v7 = vld [vmem:[%s4180_s1 + $0x3a0] sm:$0xff]  ;;  %2003 = vmatpush.bf16.msrb.mxu3 %v3110_v13 }
 0x12a   :  { %1954 = vmatpush.bf16.msrb.mxu2 %v3102_v7  ;;  %v3094_v7 = vld [vmem:[%s4180_s1 + $0x360] sm:$0xff] }
 0x12b   :  { %1905 = vmatpush.bf16.msrb.mxu1 %v3094_v7 }
 0x12e   :  { %v1024_v41 = vpop.f32.mrf.mxu2  ;;  %v929_v48 = vpop.f32.mrf.mxu0 }
 0x12f   :  { %v1073_v46 = vpop.f32.mrf.mxu3  ;;  %v1025_v47 = vadd.f32 %v1024_v41, %v976_v21  ;;  %v978_v62 = vpop.f32.mrf.mxu1 }
 0x130   :  { %v979_v63 = vadd.f32 %v978_v62, %v929_v48  ;;  %v3086_v62 = vld [vmem:[%s4180_s1 + $0x320] sm:$0xff] }
 0x131   :  { %v3819_v5 = vadd.f32 %v1073_v46, %v1025_v47  ;;  %1397 = vmatmul.bf16.gmra.mxu0 %v3327_v0 }
 0x132   :  { %1446 = vmatmul.bf16.gmra.mxu1 %v3329_v1  ;;  %1856 = vmatpush.bf16.msrb.mxu0 %v3086_v62 }
 0x133   :  { %1495 = vmatmul.bf16.gmra.mxu2 %v3331_v2 }
 0x134   :  { %1544 = vmatmul.bf16.gmra.mxu3 %v3333_v3 }
 0x136   :  { %v1027_v20 = vpop.f32.mrf.mxu2  ;;  %v931_v38 = vpop.f32.mrf.mxu0  ;;  %1857 = vmatpush.bf16.msrb.mxu0 %v3085_v26  ;;  %v3100_v26 = vld [vmem:[%s4180_s1 + $0x390] sm:$0xff] }
 0x137   :  { %v1076_v21 = vpop.f32.mrf.mxu3  ;;  %v1028_v37 = vadd.f32 %v1027_v20, %v979_v63  ;;  %v980_v41 = vpop.f32.mrf.mxu1 }
 0x138   :  { %v981_v46 = vadd.f32 %v980_v41, %v931_v38 }
 0x139   :  { %v3833_v47 = vadd.f32 %v1076_v21, %v1028_v37 }
 0x13e   :  { %v1029_v13 = vpop.f32.mrf.mxu2  ;;  %v934_v6 = vpop.f32.mrf.mxu0 }
 0x13f   :  { %v1078_v63 = vpop.f32.mrf.mxu3  ;;  %v1030_v20 = vadd.f32 %v1029_v13, %v981_v46  ;;  %v983_v38 = vpop.f32.mrf.mxu1  ;;  %v3101_v46 = vld [vmem:[%s4180_s1 + $0x398] sm:$0xff] }
 0x140   :  { %v984_v21 = vadd.f32 %v983_v38, %v934_v6  ;;  %v3109_v6 = vld [vmem:[%s4180_s1 + $0x3d8] sm:$0xff]  ;;  %1955 = vmatpush.bf16.msrb.mxu2 %v3101_v46 }
 0x141   :  { %v3843_v37 = vadd.f32 %v1078_v63, %v1030_v20  ;;  %1402 = vmatmul.bf16.gmra.mxu0 %v3375_v16  ;;  %2004 = vmatpush.bf16.msrb.mxu3 %v3109_v6  ;;  %v3093_v46 = vld [vmem:[%s4180_s1 + $0x358] sm:$0xff] }
 0x142   :  { %1451 = vmatmul.bf16.gmra.mxu1 %v3377_v17 }
 0x143   :  { %1500 = vmatmul.bf16.gmra.mxu2 %v3379_v18  ;;  %1906 = vmatpush.bf16.msrb.mxu1 %v3093_v46 }
 0x144   :  { %1549 = vmatmul.bf16.gmra.mxu3 %v3381_v19  ;;  %1956 = vmatpush.bf16.msrb.mxu2 %v3100_v26  ;;  %v3092_v26 = vld [vmem:[%s4180_s1 + $0x350] sm:$0xff] }
 0x146   :  { %v1032_v62 = vpop.f32.mrf.mxu2  ;;  %v936_v63 = vpop.f32.mrf.mxu0 }
 0x147   :  { %v1081_v7 = vpop.f32.mrf.mxu3  ;;  %v1033_v13 = vadd.f32 %v1032_v62, %v984_v21  ;;  %v985_v20 = vpop.f32.mrf.mxu1  ;;  %1907 = vmatpush.bf16.msrb.mxu1 %v3092_v26 }
 0x148   :  { %v986_v38 = vadd.f32 %v985_v20, %v936_v63 }
 0x149   :  { %v3857_v41 = vadd.f32 %v1081_v7, %v1033_v13 }
 0x14e   :  { %v1034_v6 = vpop.f32.mrf.mxu2  ;;  %v939_v19 = vpop.f32.mrf.mxu0 }
 0x14f   :  { %v1083_v21 = vpop.f32.mrf.mxu3  ;;  %v1035_v62 = vadd.f32 %v1034_v6, %v986_v38  ;;  %v988_v63 = vpop.f32.mrf.mxu1 }
 0x150   :  { %v989_v7 = vadd.f32 %v988_v63, %v939_v19  ;;  %v3108_v19 = vld [vmem:[%s4180_s1 + $0x3d0] sm:$0xff] }
 0x151   :  { %v3867_v13 = vadd.f32 %v1083_v21, %v1035_v62  ;;  %1407 = vmatmul.bf16.gmra.mxu0 %v3423_v32  ;;  %2005 = vmatpush.bf16.msrb.mxu3 %v3108_v19 }
 0x152   :  { %1456 = vmatmul.bf16.gmra.mxu1 %v3425_v33 }
 0x153   :  { %1505 = vmatmul.bf16.gmra.mxu2 %v3427_v34 }
 0x154   :  { %1554 = vmatmul.bf16.gmra.mxu3 %v3429_v35  ;;  %v3084_v35 = vld [vmem:[%s4180_s1 + $0x310] sm:$0xff] }
 0x155   :  { %1858 = vmatpush.bf16.msrb.mxu0 %v3084_v35  ;;  %v3099_v35 = vld [vmem:[%s4180_s1 + $0x388] sm:$0xff] }
 0x156   :  { %v1037_v38 = vpop.f32.mrf.mxu2  ;;  %v941_v21 = vpop.f32.mrf.mxu0  ;;  %1957 = vmatpush.bf16.msrb.mxu2 %v3099_v35  ;;  %v3091_v35 = vld [vmem:[%s4180_s1 + $0x348] sm:$0xff] }
 0x157   :  { %v1086_v46 = vpop.f32.mrf.mxu3  ;;  %v1038_v6 = vadd.f32 %v1037_v38, %v989_v7  ;;  %v990_v62 = vpop.f32.mrf.mxu1  ;;  %1908 = vmatpush.bf16.msrb.mxu1 %v3091_v35 }
 0x158   :  { %v991_v63 = vadd.f32 %v990_v62, %v941_v21 }
 0x159   :  { %v3881_v20 = vadd.f32 %v1086_v46, %v1038_v6 }
 0x15e   :  { %v1039_v19 = vpop.f32.mrf.mxu2  ;;  %v944_v34 = vpop.f32.mrf.mxu0 }
 0x15f   :  { %v1088_v7 = vpop.f32.mrf.mxu3  ;;  %v1040_v38 = vadd.f32 %v1039_v19, %v991_v63  ;;  %v993_v21 = vpop.f32.mrf.mxu1 }
 0x160   :  { %v994_v46 = vadd.f32 %v993_v21, %v944_v34  ;;  %v3107_v34 = vld [vmem:[%s4180_s1 + $0x3c8] sm:$0xff] }
 0x161   :  { %v3891_v6 = vadd.f32 %v1088_v7, %v1040_v38  ;;  %1412 = vmatmul.bf16.gmra.mxu0 %v3471_v52  ;;  %2006 = vmatpush.bf16.msrb.mxu3 %v3107_v34 }
 0x162   :  { %1461 = vmatmul.bf16.gmra.mxu1 %v3473_v53 }
 0x163   :  { %1510 = vmatmul.bf16.gmra.mxu2 %v3475_v54 }
 0x164   :  { %1559 = vmatmul.bf16.gmra.mxu3 %v3477_v55  ;;  %v3083_v55 = vld [vmem:[%s4180_s1 + $0x308] sm:$0xff] }
 0x165   :  { %1859 = vmatpush.bf16.msrb.mxu0 %v3083_v55  ;;  %v3098_v55 = vld [vmem:[%s4180_s1 + $0x380] sm:$0xff] }
 0x166   :  { %v1042_v63 = vpop.f32.mrf.mxu2  ;;  %v946_v7 = vpop.f32.mrf.mxu0  ;;  %1958 = vmatpush.bf16.msrb.mxu2 %v3098_v55  ;;  %v3090_v55 = vld [vmem:[%s4180_s1 + $0x340] sm:$0xff] }
 0x167   :  { %v1091_v26 = vpop.f32.mrf.mxu3  ;;  %v1043_v19 = vadd.f32 %v1042_v63, %v994_v46  ;;  %v995_v38 = vpop.f32.mrf.mxu1  ;;  %1909 = vmatpush.bf16.msrb.mxu1 %v3090_v55 }
 0x168   :  { %v996_v21 = vadd.f32 %v995_v38, %v946_v7 }
 0x169   :  { %v3905_v62 = vadd.f32 %v1091_v26, %v1043_v19 }
 0x16e   :  { %v1044_v34 = vpop.f32.mrf.mxu2  ;;  %v949_v54 = vpop.f32.mrf.mxu0 }
 0x16f   :  { %v1093_v46 = vpop.f32.mrf.mxu3  ;;  %v1045_v63 = vadd.f32 %v1044_v34, %v996_v21  ;;  %v998_v7 = vpop.f32.mrf.mxu1 }
 0x170   :  { %v999_v26 = vadd.f32 %v998_v7, %v949_v54  ;;  %v3106_v54 = vld [vmem:[%s4180_s1 + $0x3c0] sm:$0xff] }
 0x171   :  { %v3915_v19 = vadd.f32 %v1093_v46, %v1045_v63  ;;  %1417 = vmatmul.bf16.gmra.mxu0 %v3519_v8  ;;  %2007 = vmatpush.bf16.msrb.mxu3 %v3106_v54 }
 0x172   :  { %1466 = vmatmul.bf16.gmra.mxu1 %v3521_v9 }
 0x173   :  { %1515 = vmatmul.bf16.gmra.mxu2 %v3523_v10 }
 0x174   :  { %1564 = vmatmul.bf16.gmra.mxu3 %v3525_v11  ;;  %v3082_v11 = vld [vmem:[%s4180_s1 + $0x300] sm:$0xff] }
 0x175   :  { %1860 = vmatpush.bf16.msrb.mxu0 %v3082_v11 }
 0x176   :  { %v1047_v21 = vpop.f32.mrf.mxu2  ;;  %v951_v46 = vpop.f32.mrf.mxu0 }
 0x177   :  { %v1096_v35 = vpop.f32.mrf.mxu3  ;;  %v1048_v34 = vadd.f32 %v1047_v21, %v999_v26  ;;  %v1000_v63 = vpop.f32.mrf.mxu1 }
 0x178   :  { %v1001_v7 = vadd.f32 %v1000_v63, %v951_v46 }
 0x179   :  { %v3929_v38 = vadd.f32 %v1096_v35, %v1048_v34 }
 0x17b   :  { %4209 = vst [vmem:[#allocation13_spill] sm:$0xff] %v3929_v38 }
 0x17e   :  { %v1049_v54 = vpop.f32.mrf.mxu2  ;;  %v954_v10 = vpop.f32.mrf.mxu0 }
 0x17f   :  { %v1098_v26 = vpop.f32.mrf.mxu3  ;;  %v1050_v21 = vadd.f32 %v1049_v54, %v1001_v7  ;;  %v1003_v46 = vpop.f32.mrf.mxu1 }
 0x180   :  { %v1004_v35 = vadd.f32 %v1003_v46, %v954_v10 }
 0x181   :  { %v3939_v34 = vadd.f32 %v1098_v26, %v1050_v21  ;;  %1422 = vmatmul.bf16.gmra.mxu0 %v3567_v28 }
 0x182   :  { %1471 = vmatmul.bf16.gmra.mxu1 %v3569_v29 }
 0x183   :  { %4210 = vst [vmem:[#allocation14_spill] sm:$0xff] %v3939_v34  ;;  %1520 = vmatmul.bf16.gmra.mxu2 %v3571_v30 }
 0x184   :  { %1569 = vmatmul.bf16.gmra.mxu3 %v3573_v31 }
 0x186   :  { %v1052_v11 = vpop.f32.mrf.mxu2  ;;  %v956_v7 = vpop.f32.mrf.mxu0 }
 0x187   :  { %v1101_v55 = vpop.f32.mrf.mxu3  ;;  %v1053_v48 = vadd.f32 %v1052_v11, %v1004_v35  ;;  %v1005_v54 = vpop.f32.mrf.mxu1 }
 0x188   :  { %v1006_v38 = vadd.f32 %v1005_v54, %v956_v7 }
 0x189   :  { %v3947_v10 = vadd.f32 %v1101_v55, %v1053_v48 }
 0x18e   :  { %v1054_v21 = vpop.f32.mrf.mxu2  ;;  %v959_v28 = vpop.f32.mrf.mxu0 }
 0x18f   :  { %v1103_v46 = vpop.f32.mrf.mxu3  ;;  %v1055_v29 = vadd.f32 %v1054_v21, %v1006_v38  ;;  %v1008_v63 = vpop.f32.mrf.mxu1 }
 0x190   :  { %v1009_v34 = vadd.f32 %v1008_v63, %v959_v28 }
 0x191   :  { %v3951_v30 = vadd.f32 %v1103_v46, %v1055_v29  ;;  %1427 = vmatmul.bf16.gmra.mxu0 %v3615_v56 }
 0x192   :  { %1476 = vmatmul.bf16.gmra.mxu1 %v3617_v57 }
 0x193   :  { %4211 = vst [vmem:[#allocation15_spill] sm:$0xff] %v3951_v30  ;;  %1525 = vmatmul.bf16.gmra.mxu2 %v3619_v58 }
 0x194   :  { %1574 = vmatmul.bf16.gmra.mxu3 %v3621_v59 }
 0x196   :  { %v1057_v48 = vpop.f32.mrf.mxu2  ;;  %v961_v38 = vpop.f32.mrf.mxu0 }
 0x197   :  { %v1106_v11 = vpop.f32.mrf.mxu3  ;;  %v1058_v55 = vadd.f32 %v1057_v48, %v1009_v34  ;;  %v1010_v7 = vpop.f32.mrf.mxu1 }
 0x198   :  { %v1011_v54 = vadd.f32 %v1010_v7, %v961_v38 }
 0x199   :  { %v3959_v28 = vadd.f32 %v1106_v11, %v1058_v55 }
 0x19e   :  { %v1059_v63 = vpop.f32.mrf.mxu2  ;;  %v1393_v26 = vpop.f32.mrf.mxu0 }
 0x19f   :  { %v1108_v21 = vpop.f32.mrf.mxu3  ;;  %v1060_v46 = vadd.f32 %v1059_v63, %v1011_v54  ;;  %v1442_v35 = vpop.f32.mrf.mxu1 }
 0x1a0   :  { %v1443_v30 = vadd.f32 %v1442_v35, %v1393_v26  ;;  %v4212_v35 = vmax.f32 %v3649_v23, %v3809_v24 }
 0x1a1   :  { %v3963_v58 = vadd.f32 %v1108_v21, %v1060_v46  ;;  %1861 = vmatmul.bf16.vlgmr.msrb.gmra.mxu0 %v3261_v42 }
 0x1a2   :  { %1910 = vmatmul.bf16.vlgmr.msrb.gmra.mxu1 %v3263_v43 }
 0x1a3   :  { %1959 = vmatmul.bf16.vlgmr.msrb.gmra.mxu2 %v3265_v44 }
 0x1a4   :  { %2008 = vmatmul.bf16.vlgmr.msrb.gmra.mxu3 %v3267_v45  ;;  %v4213_v45 = vmax.f32 %v3657_v40, %v3819_v5 }
 0x1a6   :  { %v1491_v48 = vpop.f32.mrf.mxu2  ;;  %v1395_v38 = vpop.f32.mrf.mxu0 }
 0x1a7   :  { %v1540_v11 = vpop.f32.mrf.mxu3  ;;  %v1492_v55 = vadd.f32 %v1491_v48, %v1443_v30  ;;  %v1444_v7 = vpop.f32.mrf.mxu1 }
 0x1a8   :  { %v1445_v54 = vadd.f32 %v1444_v7, %v1395_v38 }
 0x1a9   :  { %v1541_v26 = vadd.f32 %v1540_v11, %v1492_v55 }
 0x1ab   :  { %v3974_v42 = vmax.f32 %v4212_v35, %v1541_v26 }
 0x1ae   :  { %v1493_v43 = vpop.f32.mrf.mxu2  ;;  %v1398_v46 = vpop.f32.mrf.mxu0 }
 0x1af   :  { %v1542_v63 = vpop.f32.mrf.mxu3  ;;  %v1494_v21 = vadd.f32 %v1493_v43, %v1445_v54  ;;  %v1447_v34 = vpop.f32.mrf.mxu1 }
 0x1b0   :  { %v1448_v44 = vadd.f32 %v1447_v34, %v1398_v46 }
 0x1b1   :  { %v1543_v29 = vadd.f32 %v1542_v63, %v1494_v21  ;;  %1866 = vmatmul.bf16.gmra.mxu0 %v3327_v0  ;;  %v4214_v0 = vmax.f32 %v3669_v61, %v3833_v47  ;;  %v4216_v61 = vld [vmem:[#allocation2_spill] sm:$0xff] }
 0x1b2   :  { %1915 = vmatmul.bf16.gmra.mxu1 %v3329_v1 }
 0x1b3   :  { %v3981_v30 = vmax.f32 %v4213_v45, %v1543_v29  ;;  %1964 = vmatmul.bf16.gmra.mxu2 %v3331_v2 }
 0x1b4   :  { %2013 = vmatmul.bf16.gmra.mxu3 %v3333_v3  ;;  %v4215_v3 = vmax.f32 %v3677_v14, %v3843_v37 }
 0x1b6   :  { %v1496_v23 = vpop.f32.mrf.mxu2  ;;  %v1400_v11 = vpop.f32.mrf.mxu0 }
 0x1b7   :  { %v1545_v24 = vpop.f32.mrf.mxu3  ;;  %v1497_v48 = vadd.f32 %v1496_v23, %v1448_v44  ;;  %v1449_v55 = vpop.f32.mrf.mxu1 }
 0x1b8   :  { %v1450_v34 = vadd.f32 %v1449_v55, %v1400_v11  ;;  %v4218_v55 = vmax.f32 %v3697_v50, %v3867_v13 }
 0x1b9   :  { %v1546_v38 = vadd.f32 %v1545_v24, %v1497_v48 }
 0x1bb   :  { %v3988_v1 = vmax.f32 %v4214_v0, %v1546_v38  ;;  %v4219_v38 = vld [vmem:[#allocation3_spill] sm:$0xff] }
 0x1be   :  { %v1498_v7 = vpop.f32.mrf.mxu2  ;;  %v1403_v29 = vpop.f32.mrf.mxu0 }
 0x1bf   :  { %v1547_v40 = vpop.f32.mrf.mxu3  ;;  %v1499_v5 = vadd.f32 %v1498_v7, %v1450_v34  ;;  %v1452_v54 = vpop.f32.mrf.mxu1 }
 0x1c0   :  { %v1453_v2 = vadd.f32 %v1452_v54, %v1403_v29 }
 0x1c1   :  { %v1548_v26 = vadd.f32 %v1547_v40, %v1499_v5  ;;  %1871 = vmatmul.bf16.gmra.mxu0 %v3375_v16  ;;  %v4217_v16 = vmax.f32 %v3689_v36, %v3857_v41  ;;  %v4220_v36 = vld [vmem:[#allocation4_spill] sm:$0xff] }
 0x1c2   :  { %1920 = vmatmul.bf16.gmra.mxu1 %v3377_v17 }
 0x1c3   :  { %v3995_v35 = vmax.f32 %v4215_v3, %v1548_v26  ;;  %1969 = vmatmul.bf16.gmra.mxu2 %v3379_v18 }
 0x1c4   :  { %2018 = vmatmul.bf16.gmra.mxu3 %v4216_v61 }
 0x1c6   :  { %v1501_v47 = vpop.f32.mrf.mxu2  ;;  %v1405_v21 = vpop.f32.mrf.mxu0 }
 0x1c7   :  { %v1550_v43 = vpop.f32.mrf.mxu3  ;;  %v1502_v63 = vadd.f32 %v1501_v47, %v1453_v2  ;;  %v1454_v46 = vpop.f32.mrf.mxu1 }
 0x1c8   :  { %v1455_v44 = vadd.f32 %v1454_v46, %v1405_v21  ;;  %v4223_v21 = vld [vmem:[#allocation5_spill] sm:$0xff] }
 0x1c9   :  { %v1551_v45 = vadd.f32 %v1550_v43, %v1502_v63  ;;  %v4222_v43 = vmax.f32 %v3717_v27, %v3891_v6 }
 0x1cb   :  { %v4002_v17 = vmax.f32 %v4217_v16, %v1551_v45 }
 0x1ce   :  { %v1503_v23 = vpop.f32.mrf.mxu2  ;;  %v1408_v24 = vpop.f32.mrf.mxu0 }
 0x1cf   :  { %v1552_v14 = vpop.f32.mrf.mxu3  ;;  %v1504_v37 = vadd.f32 %v1503_v23, %v1455_v44  ;;  %v1457_v48 = vpop.f32.mrf.mxu1 }
 0x1d0   :  { %v1458_v18 = vadd.f32 %v1457_v48, %v1408_v24 }
 0x1d1   :  { %v1553_v11 = vadd.f32 %v1552_v14, %v1504_v37  ;;  %1876 = vmatmul.bf16.gmra.mxu0 %v3423_v32  ;;  %v4221_v32 = vmax.f32 %v3709_v12, %v3881_v20  ;;  %v4224_v12 = vld [vmem:[#allocation6_spill] sm:$0xff] }
 0x1d2   :  { %1925 = vmatmul.bf16.gmra.mxu1 %v3425_v33 }
 0x1d3   :  { %v4009_v34 = vmax.f32 %v4218_v55, %v1553_v11  ;;  %1974 = vmatmul.bf16.gmra.mxu2 %v4219_v38  ;;  %v4226_v55 = vmax.f32 %v3737_v15, %v3915_v19 }
 0x1d4   :  { %2023 = vmatmul.bf16.gmra.mxu3 %v4220_v36  ;;  %v4227_v36 = vld [vmem:[#allocation7_spill] sm:$0xff] }
 0x1d6   :  { %v1506_v41 = vpop.f32.mrf.mxu2  ;;  %v1410_v40 = vpop.f32.mrf.mxu0 }
 0x1d7   :  { %v1555_v0 = vpop.f32.mrf.mxu3  ;;  %v1507_v7 = vadd.f32 %v1506_v41, %v1458_v18  ;;  %v1459_v5 = vpop.f32.mrf.mxu1 }
 0x1d8   :  { %v1460_v29 = vadd.f32 %v1459_v5, %v1410_v40 }
 0x1d9   :  { %v1556_v54 = vadd.f32 %v1555_v0, %v1507_v7 }
 0x1db   :  { %v4016_v33 = vmax.f32 %v4221_v32, %v1556_v54 }
 0x1de   :  { %v1508_v2 = vpop.f32.mrf.mxu2  ;;  %v1413_v26 = vpop.f32.mrf.mxu0 }
 0x1df   :  { %v1557_v50 = vpop.f32.mrf.mxu3  ;;  %v1509_v13 = vadd.f32 %v1508_v2, %v1460_v29  ;;  %v1462_v3 = vpop.f32.mrf.mxu1 }
 0x1e0   :  { %v1463_v61 = vadd.f32 %v1462_v3, %v1413_v26  ;;  %v4231_v3 = vld [vmem:[#allocation9_spill] sm:$0xff] }
 0x1e1   :  { %v1558_v47 = vadd.f32 %v1557_v50, %v1509_v13  ;;  %1881 = vmatmul.bf16.gmra.mxu0 %v3471_v52  ;;  %v4225_v52 = vmax.f32 %v3729_v51, %v3905_v62  ;;  %v4228_v51 = vld [vmem:[#allocation8_spill] sm:$0xff] }
 0x1e2   :  { %1930 = vmatmul.bf16.gmra.mxu1 %v3473_v53 }
 0x1e3   :  { %v4023_v63 = vmax.f32 %v4222_v43, %v1558_v47  ;;  %1979 = vmatmul.bf16.gmra.mxu2 %v4223_v21  ;;  %v4233_v47 = vld [vmem:[#allocation14_spill] sm:$0xff] }
 0x1e4   :  { %2028 = vmatmul.bf16.gmra.mxu3 %v4224_v12  ;;  %v4234_v43 = vmax.f32 %v3757_v4, %v4233_v47  ;;  %v4235_v12 = vld [vmem:[#allocation11_spill] sm:$0xff] }
 0x1e6   :  { %v1511_v20 = vpop.f32.mrf.mxu2  ;;  %v1415_v45 = vpop.f32.mrf.mxu0 }
 0x1e7   :  { %v1560_v46 = vpop.f32.mrf.mxu3  ;;  %v1512_v44 = vadd.f32 %v1511_v20, %v1463_v61  ;;  %v1464_v16 = vpop.f32.mrf.mxu1  ;;  %v4232_v61 = vld [vmem:[#allocation10_spill] sm:$0xff] }
 0x1e8   :  { %v1465_v23 = vadd.f32 %v1464_v16, %v1415_v45 }
 0x1e9   :  { %v1561_v14 = vadd.f32 %v1560_v46, %v1512_v44 }
 0x1eb   :  { %v4030_v53 = vmax.f32 %v4225_v52, %v1561_v14  ;;  %v4236_v14 = vmax.f32 %v3769_v25, %v3947_v10 }
 0x1ee   :  { %v1513_v37 = vpop.f32.mrf.mxu2  ;;  %v1418_v24 = vpop.f32.mrf.mxu0 }
 0x1ef   :  { %v1562_v27 = vpop.f32.mrf.mxu3  ;;  %v1514_v6 = vadd.f32 %v1513_v37, %v1465_v23  ;;  %v1467_v48 = vpop.f32.mrf.mxu1 }
 0x1f0   :  { %v1468_v18 = vadd.f32 %v1467_v48, %v1418_v24 }
 0x1f1   :  { %v1563_v11 = vadd.f32 %v1562_v27, %v1514_v6  ;;  %1886 = vmatmul.bf16.gmra.mxu0 %v3519_v8  ;;  %v4229_v8 = vld [vmem:[#allocation13_spill] sm:$0xff] }
 0x1f2   :  { %1935 = vmatmul.bf16.gmra.mxu1 %v3521_v9  ;;  %v4230_v54 = vmax.f32 %v3749_v39, %v4229_v8 }
 0x1f3   :  { %v4037_v38 = vmax.f32 %v4226_v55, %v1563_v11  ;;  %1984 = vmatmul.bf16.gmra.mxu2 %v4227_v36  ;;  %v4239_v36 = vld [vmem:[#allocation12_spill] sm:$0xff] }
 0x1f4   :  { %2033 = vmatmul.bf16.gmra.mxu3 %v4228_v51 }
 0x1f6   :  { %v1516_v62 = vpop.f32.mrf.mxu2  ;;  %v1420_v7 = vpop.f32.mrf.mxu0 }
 0x1f7   :  { %v1565_v41 = vpop.f32.mrf.mxu3  ;;  %v1517_v0 = vadd.f32 %v1516_v62, %v1468_v18  ;;  %v1469_v40 = vpop.f32.mrf.mxu1 }
 0x1f8   :  { %v1470_v5 = vadd.f32 %v1469_v40, %v1420_v7 }
 0x1f9   :  { %v1566_v29 = vadd.f32 %v1565_v41, %v1517_v0 }
 0x1fb   :  { %v4044_v9 = vmax.f32 %v4230_v54, %v1566_v29 }
 0x1fe   :  { %v1518_v32 = vpop.f32.mrf.mxu2  ;;  %v1423_v2 = vpop.f32.mrf.mxu0 }
 0x1ff   :  { %v1567_v15 = vpop.f32.mrf.mxu3  ;;  %v1519_v19 = vadd.f32 %v1518_v32, %v1470_v5  ;;  %v1472_v50 = vpop.f32.mrf.mxu1 }
 0x200   :  { %v1473_v13 = vadd.f32 %v1472_v50, %v1423_v2 }
 0x201   :  { %v1568_v26 = vadd.f32 %v1567_v15, %v1519_v19  ;;  %1891 = vmatmul.bf16.gmra.mxu0 %v4231_v3 }
 0x202   :  { %1940 = vmatmul.bf16.gmra.mxu1 %v4232_v61 }
 0x203   :  { %v4051_v21 = vmax.f32 %v4234_v43, %v1568_v26  ;;  %1989 = vmatmul.bf16.gmra.mxu2 %v4235_v12 }
 0x204   :  { %2038 = vmatmul.bf16.gmra.mxu3 %v3573_v31  ;;  %v4237_v31 = vld [vmem:[#allocation15_spill] sm:$0xff] }
 0x205   :  { %v4238_v11 = vmax.f32 %v3777_v60, %v4237_v31 }
 0x206   :  { %v1521_v39 = vpop.f32.mrf.mxu2  ;;  %v1425_v44 = vpop.f32.mrf.mxu0 }
 0x207   :  { %v1570_v20 = vpop.f32.mrf.mxu3  ;;  %v1522_v46 = vadd.f32 %v1521_v39, %v1473_v13  ;;  %v1474_v45 = vpop.f32.mrf.mxu1 }
 0x208   :  { %v1475_v16 = vadd.f32 %v1474_v45, %v1425_v44 }
 0x209   :  { %v1571_v23 = vadd.f32 %v1570_v20, %v1522_v46 }
 0x20b   :  { %v4058_v52 = vmax.f32 %v4236_v14, %v1571_v23 }
 0x20e   :  { %v1523_v37 = vpop.f32.mrf.mxu2  ;;  %v1428_v6 = vpop.f32.mrf.mxu0 }
 0x20f   :  { %v1572_v4 = vpop.f32.mrf.mxu3  ;;  %v1524_v27 = vadd.f32 %v1523_v37, %v1475_v16  ;;  %v1477_v24 = vpop.f32.mrf.mxu1 }
 0x210   :  { %v1478_v48 = vadd.f32 %v1477_v24, %v1428_v6 }
 0x211   :  { %v1573_v18 = vadd.f32 %v1572_v4, %v1524_v27  ;;  %1896 = vmatmul.bf16.gmra.mxu0 %v3615_v56  ;;  %v4240_v56 = vmax.f32 %v3789_v22, %v3959_v28  ;;  %v4082_v28 = vld [vmem:[%s4182_s2] ss:$0 sm:$0xff] }
 0x212   :  { %1945 = vmatmul.bf16.gmra.mxu1 %v3617_v57 }
 0x213   :  { %v4065_v55 = vmax.f32 %v4238_v11, %v1573_v18  ;;  %1994 = vmatmul.bf16.gmra.mxu2 %v4239_v36 }
 0x214   :  { %2043 = vmatmul.bf16.gmra.mxu3 %v3621_v59  ;;  %v4241_v59 = vmax.f32 %v3797_v49, %v3963_v58 }
 0x216   :  { %v1526_v25 = vpop.f32.mrf.mxu2  ;;  %v1430_v62 = vpop.f32.mrf.mxu0 }
 0x217   :  { %v1575_v10 = vpop.f32.mrf.mxu3  ;;  %v1527_v51 = vadd.f32 %v1526_v25, %v1478_v48  ;;  %v1479_v41 = vpop.f32.mrf.mxu1 }
 0x218   :  { %v1480_v0 = vadd.f32 %v1479_v41, %v1430_v62 }
 0x219   :  { %v1576_v7 = vadd.f32 %v1575_v10, %v1527_v51 }
 0x21b   :  { %v4072_v57 = vmax.f32 %v4240_v56, %v1576_v7 }
 0x21e   :  { %v1528_v40 = vpop.f32.mrf.mxu2  ;;  %v1862_v29 = vpop.f32.mrf.mxu0 }
 0x21f   :  { %v1577_v60 = vpop.f32.mrf.mxu3  ;;  %v1529_v5 = vadd.f32 %v1528_v40, %v1480_v0  ;;  %v1911_v8 = vpop.f32.mrf.mxu1 }
 0x220   :  { %v1912_v15 = vadd.f32 %v1911_v8, %v1862_v29 }
 0x221   :  { %v1578_v54 = vadd.f32 %v1577_v60, %v1529_v5 }
 0x223   :  { %v4077_v32 = vmax.f32 %v4241_v59, %v1578_v54 }
 0x226   :  { %v1960_v19 = vpop.f32.mrf.mxu2  ;;  %v1864_v13 = vpop.f32.mrf.mxu0 }
 0x227   :  { %v2009_v2 = vpop.f32.mrf.mxu3  ;;  %v1961_v50 = vadd.f32 %v1960_v19, %v1912_v15  ;;  %v1913_v26 = vpop.f32.mrf.mxu1 }
 0x228   :  { %v1914_v47 = vadd.f32 %v1913_v26, %v1864_v13 }
 0x229   :  { %v2010_v22 = vadd.f32 %v2009_v2, %v1961_v50 }
 0x22b   :  { %v2049_v3 = vmax.f32 %v3974_v42, %v2010_v22 }
 0x22d   :  { %v2069_v61 = vadd.f32 %v4082_v28, %v2049_v3 }
 0x22e   :  { %v1962_v58 = vpop.f32.mrf.mxu2  ;;  %v1867_v39 = vpop.f32.mrf.mxu0 }
 0x22f   :  { %v2011_v49 = vpop.f32.mrf.mxu3  ;;  %v2085_v43 = vmax.f32 %v2069_v61, 0.0  ;;  %v1963_v12 = vadd.f32 %v1962_v58, %v1914_v47  ;;  %v1916_v20 = vpop.f32.mrf.mxu1 }
 0x230   :  { %v1917_v45 = vadd.f32 %v1916_v20, %v1867_v39 }
 0x231   :  { %2102 = vst.msk [vmem:[%s4183_s3] sm:$0xff] %vm2101_vm0, %v2085_v43  ;;  %v2012_v46 = vadd.f32 %v2011_v49, %v1963_v12 }
 0x233   :  { %v2050_v44 = vmax.f32 %v3981_v30, %v2012_v46 }
 0x235   :  { %v2070_v42 = vadd.f32 %v4082_v28, %v2050_v44 }
 0x236   :  { %v1965_v16 = vpop.f32.mrf.mxu2  ;;  %v1869_v4 = vpop.f32.mrf.mxu0 }
 0x237   :  { %v2014_v23 = vpop.f32.mrf.mxu3  ;;  %v2086_v14 = vmax.f32 %v2070_v42, 0.0  ;;  %v1966_v37 = vadd.f32 %v1965_v16, %v1917_v45  ;;  %v1918_v27 = vpop.f32.mrf.mxu1 }
 0x238   :  { %v1919_v30 = vadd.f32 %v1918_v27, %v1869_v4 }
 0x239   :  { %2103 = vst.msk [vmem:[%s4183_s3 + $0x8] sm:$0xff] %vm2101_vm0, %v2086_v14  ;;  %v2015_v6 = vadd.f32 %v2014_v23, %v1966_v37 }
 0x23b   :  { %v2051_v24 = vmax.f32 %v3988_v1, %v2015_v6 }
 0x23d   :  { %v2071_v48 = vadd.f32 %v4082_v28, %v2051_v24 }
 0x23e   :  { %v1967_v18 = vpop.f32.mrf.mxu2  ;;  %v1872_v25 = vpop.f32.mrf.mxu0 }
 0x23f   :  { %v2016_v31 = vpop.f32.mrf.mxu3  ;;  %v2087_v11 = vmax.f32 %v2071_v48, 0.0  ;;  %v1968_v36 = vadd.f32 %v1967_v18, %v1919_v30  ;;  %v1921_v10 = vpop.f32.mrf.mxu1 }
 0x240   :  { %v1922_v41 = vadd.f32 %v1921_v10, %v1872_v25 }
 0x241   :  { %2104 = vst.msk [vmem:[%s4183_s3 + $0x10] sm:$0xff] %vm2101_vm0, %v2087_v11  ;;  %v2017_v51 = vadd.f32 %v2016_v31, %v1968_v36 }
 0x243   :  { %v2052_v62 = vmax.f32 %v3995_v35, %v2017_v51 }
 0x245   :  { %v2072_v1 = vadd.f32 %v4082_v28, %v2052_v62 }
 0x246   :  { %v1970_v0 = vpop.f32.mrf.mxu2  ;;  %v1874_v60 = vpop.f32.mrf.mxu0 }
 0x247   :  { %v2019_v7 = vpop.f32.mrf.mxu3  ;;  %v2088_v56 = vmax.f32 %v2072_v1, 0.0  ;;  %v1971_v40 = vadd.f32 %v1970_v0, %v1922_v41  ;;  %v1923_v5 = vpop.f32.mrf.mxu1 }
 0x248   :  { %v1924_v35 = vadd.f32 %v1923_v5, %v1874_v60 }
 0x249   :  { %2105 = vst.msk [vmem:[%s4183_s3 + $0x18] sm:$0xff] %vm2101_vm0, %v2088_v56  ;;  %v2020_v29 = vadd.f32 %v2019_v7, %v1971_v40 }
 0x24b   :  { %v2053_v8 = vmax.f32 %v4002_v17, %v2020_v29 }
 0x24d   :  { %v2073_v54 = vadd.f32 %v4082_v28, %v2053_v8 }
 0x24e   :  { %v1972_v59 = vpop.f32.mrf.mxu2  ;;  %v1877_v50 = vpop.f32.mrf.mxu0 }
 0x24f   :  { %v2021_v15 = vpop.f32.mrf.mxu3  ;;  %v2089_v19 = vmax.f32 %v2073_v54, 0.0  ;;  %v1973_v2 = vadd.f32 %v1972_v59, %v1924_v35  ;;  %v1926_v13 = vpop.f32.mrf.mxu1 }
 0x250   :  { %v1927_v3 = vadd.f32 %v1926_v13, %v1877_v50 }
 0x251   :  { %2106 = vst.msk [vmem:[%s4183_s3 + $0x20] sm:$0xff] %vm2101_vm0, %v2089_v19  ;;  %v2022_v26 = vadd.f32 %v2021_v15, %v1973_v2 }
 0x253   :  { %v2054_v22 = vmax.f32 %v4009_v34, %v2022_v26 }
 0x255   :  { %v2074_v17 = vadd.f32 %v4082_v28, %v2054_v22 }
 0x256   :  { %v1975_v61 = vpop.f32.mrf.mxu2  ;;  %v1879_v43 = vpop.f32.mrf.mxu0 }
 0x257   :  { %v2024_v47 = vpop.f32.mrf.mxu3  ;;  %v2090_v58 = vmax.f32 %v2074_v17, 0.0  ;;  %v1976_v49 = vadd.f32 %v1975_v61, %v1927_v3  ;;  %v1928_v12 = vpop.f32.mrf.mxu1 }
 0x258   :  { %v1929_v34 = vadd.f32 %v1928_v12, %v1879_v43 }
 0x259   :  { %2107 = vst.msk [vmem:[%s4183_s3 + $0x28] sm:$0xff] %vm2101_vm0, %v2090_v58  ;;  %v2025_v39 = vadd.f32 %v2024_v47, %v1976_v49 }
 0x25b   :  { %v2055_v20 = vmax.f32 %v4016_v33, %v2025_v39 }
 0x25d   :  { %v2075_v46 = vadd.f32 %v4082_v28, %v2055_v20 }
 0x25e   :  { %v1977_v44 = vpop.f32.mrf.mxu2  ;;  %v1882_v23 = vpop.f32.mrf.mxu0 }
 0x25f   :  { %v2026_v45 = vpop.f32.mrf.mxu3  ;;  %v2091_v42 = vmax.f32 %v2075_v46, 0.0  ;;  %v1978_v16 = vadd.f32 %v1977_v44, %v1929_v34  ;;  %v1931_v14 = vpop.f32.mrf.mxu1 }
 0x260   :  { %v1932_v27 = vadd.f32 %v1931_v14, %v1882_v23 }
 0x261   :  { %2108 = vst.msk [vmem:[%s4183_s3 + $0x30] sm:$0xff] %vm2101_vm0, %v2091_v42  ;;  %v2027_v37 = vadd.f32 %v2026_v45, %v1978_v16 }
 0x263   :  { %v2056_v4 = vmax.f32 %v4023_v63, %v2027_v37 }
 0x265   :  { %v2076_v33 = vadd.f32 %v4082_v28, %v2056_v4 }
 0x266   :  { %v1980_v6 = vpop.f32.mrf.mxu2  ;;  %v1884_v18 = vpop.f32.mrf.mxu0 }
 0x267   :  { %v2029_v24 = vpop.f32.mrf.mxu3  ;;  %v2092_v48 = vmax.f32 %v2076_v33, 0.0  ;;  %v1981_v30 = vadd.f32 %v1980_v6, %v1932_v27  ;;  %v1933_v31 = vpop.f32.mrf.mxu1 }
 0x268   :  { %v1934_v63 = vadd.f32 %v1933_v31, %v1884_v18 }
 0x269   :  { %2109 = vst.msk [vmem:[%s4183_s3 + $0x38] sm:$0xff] %vm2101_vm0, %v2092_v48  ;;  %v2030_v11 = vadd.f32 %v2029_v24, %v1981_v30 }
 0x26b   :  { %v2057_v36 = vmax.f32 %v4030_v53, %v2030_v11 }
 0x26d   :  { %v2077_v25 = vadd.f32 %v4082_v28, %v2057_v36 }
 0x26e   :  { %v1982_v10 = vpop.f32.mrf.mxu2  ;;  %v1887_v1 = vpop.f32.mrf.mxu0 }
 0x26f   :  { %v2031_v51 = vpop.f32.mrf.mxu3  ;;  %v2093_v62 = vmax.f32 %v2077_v25, 0.0  ;;  %v1983_v41 = vadd.f32 %v1982_v10, %v1934_v63  ;;  %v1936_v0 = vpop.f32.mrf.mxu1 }
 0x270   :  { %v1937_v40 = vadd.f32 %v1936_v0, %v1887_v1 }
 0x271   :  { %2110 = vst.msk [vmem:[%s4183_s3 + $0x40] sm:$0xff] %vm2101_vm0, %v2093_v62  ;;  %v2032_v7 = vadd.f32 %v2031_v51, %v1983_v41 }
 0x273   :  { %v2058_v56 = vmax.f32 %v4037_v38, %v2032_v7 }
 0x275   :  { %v2078_v53 = vadd.f32 %v4082_v28, %v2058_v56 }
 0x276   :  { %v1985_v60 = vpop.f32.mrf.mxu2  ;;  %v1889_v54 = vpop.f32.mrf.mxu0 }
 0x277   :  { %v2034_v5 = vpop.f32.mrf.mxu3  ;;  %v2094_v29 = vmax.f32 %v2078_v53, 0.0  ;;  %v1986_v8 = vadd.f32 %v1985_v60, %v1937_v40  ;;  %v1938_v35 = vpop.f32.mrf.mxu1 }
 0x278   :  { %v1939_v38 = vadd.f32 %v1938_v35, %v1889_v54 }
 0x279   :  { %2111 = vst.msk [vmem:[%s4183_s3 + $0x48] sm:$0xff] %vm2101_vm0, %v2094_v29  ;;  %v2035_v59 = vadd.f32 %v2034_v5, %v1986_v8 }
 0x27b   :  { %v2059_v15 = vmax.f32 %v4044_v9, %v2035_v59 }
 0x27d   :  { %v2079_v19 = vadd.f32 %v4082_v28, %v2059_v15 }
 0x27e   :  { %v1987_v2 = vpop.f32.mrf.mxu2  ;;  %v1892_v22 = vpop.f32.mrf.mxu0 }
 0x27f   :  { %v2036_v50 = vpop.f32.mrf.mxu3  ;;  %v2095_v13 = vmax.f32 %v2079_v19, 0.0  ;;  %v1988_v26 = vadd.f32 %v1987_v2, %v1939_v38  ;;  %v1941_v3 = vpop.f32.mrf.mxu1 }
 0x280   :  { %v1942_v47 = vadd.f32 %v1941_v3, %v1892_v22 }
 0x281   :  { %2112 = vst.msk [vmem:[%s4183_s3 + $0x50] sm:$0xff] %vm2101_vm0, %v2095_v13  ;;  %v2037_v17 = vadd.f32 %v2036_v50, %v1988_v26 }
 0x283   :  { %v2060_v61 = vmax.f32 %v4051_v21, %v2037_v17 }
 0x285   :  { %v2080_v9 = vadd.f32 %v4082_v28, %v2060_v61 }
 0x286   :  { %v1990_v58 = vpop.f32.mrf.mxu2  ;;  %v1894_v39 = vpop.f32.mrf.mxu0 }
 0x287   :  { %v2039_v49 = vpop.f32.mrf.mxu3  ;;  %v2096_v43 = vmax.f32 %v2080_v9, 0.0  ;;  %v1991_v12 = vadd.f32 %v1990_v58, %v1942_v47  ;;  %v1943_v20 = vpop.f32.mrf.mxu1 }
 0x288   :  { %v1944_v21 = vadd.f32 %v1943_v20, %v1894_v39 }
 0x289   :  { %2113 = vst.msk [vmem:[%s4183_s3 + $0x58] sm:$0xff] %vm2101_vm0, %v2096_v43  ;;  %v2040_v46 = vadd.f32 %v2039_v49, %v1991_v12 }
 0x28b   :  { %v2061_v34 = vmax.f32 %v4058_v52, %v2040_v46 }
 0x28d   :  { %v2081_v44 = vadd.f32 %v4082_v28, %v2061_v34 }
 0x28e   :  { %v1992_v45 = vpop.f32.mrf.mxu2  ;;  %v1897_v14 = vpop.f32.mrf.mxu0 }
 0x28f   :  { %v2041_v42 = vpop.f32.mrf.mxu3  ;;  %v2097_v16 = vmax.f32 %v2081_v44, 0.0  ;;  %v1993_v23 = vadd.f32 %v1992_v45, %v1944_v21  ;;  %v1946_v37 = vpop.f32.mrf.mxu1 }
 0x290   :  { %v1947_v33 = vadd.f32 %v1946_v37, %v1897_v14 }
 0x291   :  { %2114 = vst.msk [vmem:[%s4183_s3 + $0x60] sm:$0xff] %vm2101_vm0, %v2097_v16  ;;  %v2042_v4 = vadd.f32 %v2041_v42, %v1993_v23 }
 0x293   :  { %v2062_v27 = vmax.f32 %v4065_v55, %v2042_v4 }
 0x295   :  { %v2082_v52 = vadd.f32 %v4082_v28, %v2062_v27 }
 0x296   :  { %v1995_v6 = vpop.f32.mrf.mxu2  ;;  %v1899_v31 = vpop.f32.mrf.mxu0 }
 0x297   :  { %v2044_v24 = vpop.f32.mrf.mxu3  ;;  %v2098_v48 = vmax.f32 %v2082_v52, 0.0  ;;  %v1996_v30 = vadd.f32 %v1995_v6, %v1947_v33  ;;  %v1948_v11 = vpop.f32.mrf.mxu1 }
 0x298   :  { %v1949_v55 = vadd.f32 %v1948_v11, %v1899_v31 }
 0x299   :  { %2115 = vst.msk [vmem:[%s4183_s3 + $0x68] sm:$0xff] %vm2101_vm0, %v2098_v48  ;;  %v2045_v18 = vadd.f32 %v2044_v24, %v1996_v30 }
 0x29b   :  { %v2063_v36 = vmax.f32 %v4072_v57, %v2045_v18 }
 0x29d   :  { %v2083_v25 = vadd.f32 %v4082_v28, %v2063_v36 }
 0x29e   :  { %v1997_v63 = vpop.f32.mrf.mxu2 }
 0x29f   :  { %v2099_v10 = vmax.f32 %v2083_v25, 0.0  ;;  %v1998_v51 = vadd.f32 %v1997_v63, %v1949_v55  ;;  %v2046_v62 = vpop.f32.mrf.mxu3 }
 0x2a1   :  { %2116 = vst.msk [vmem:[%s4183_s3 + $0x70] sm:$0xff] %vm2101_vm0, %v2099_v10  ;;  %v2047_v41 = vadd.f32 %v2046_v62, %v1998_v51 }
 0x2a3   :  { %v2064_v1 = vmax.f32 %v4077_v32, %v2047_v41 }
 0x2a5   :  { %v2084_v0 = vadd.f32 %v4082_v28, %v2064_v1 }
 0x2a7   :  { %v2100_v7 = vmax.f32 %v2084_v0, 0.0 }
 0x2a9   :  { %2117 = vst.msk [vmem:[%s4183_s3 + $0x78] sm:$0xff] %vm2101_vm0, %v2100_v7 }

// kernel: simple_cnn_forward.5
= control target key start
LH: loop header
LB: loop body
LE: loop exit
PB: predicated region body
PF: predicated region fallthrough
CT: control target
= control target key end

     0   :  { %s4861_s0 = inlined_call_operand.vmem [shape: bf16[2,4096], index: 0, kind: input, shape index: {}]   ;;  %s4862_s1 = inlined_call_operand.vmem [shape: bf16[4096,128], index: 1, kind: input, shape index: {}]   ;;  %s4863_s2 = inlined_call_operand.vmem [shape: f32[1,128], index: 2, kind: input, shape index: {}]   ;;  %s4864_s3 = inlined_call_operand.vmem [shape: bf16[128,128], index: 3, kind: input, shape index: {}]   ;;  %s4865_s4 = inlined_call_operand.vmem [shape: f32[1,128], index: 4, kind: input, shape index: {}]   ;;  %s4866_s5 = inlined_call_operand.hbm [shape: f32[2,128], index: 5, kind: output, shape index: {}]  }
   0x1   :  { %v3728_v0 = vld [vmem:[%s4862_s1 + $0x38] sm:$0xff]  ;;  %v3727_v4 = vld [vmem:[%s4862_s1 + $0x30] sm:$0xff]  ;;  %v3726_v8 = vld [vmem:[%s4862_s1 + $0x28] sm:$0xff] }
   0x2   :  { %v3736_v1 = vld [vmem:[%s4862_s1 + $0x78] sm:$0xff]  ;;  %2149 = vmatpush.bf16.msra.mxu0 %v3728_v0  ;;  %v3735_v5 = vld [vmem:[%s4862_s1 + $0x70] sm:$0xff]  ;;  %v3734_v9 = vld [vmem:[%s4862_s1 + $0x68] sm:$0xff] }
   0x3   :  { %v3744_v2 = vld [vmem:[%s4862_s1 + $0xb8] sm:$0xff]  ;;  %2162 = vmatpush.bf16.msra.mxu1 %v3736_v1  ;;  %v3743_v6 = vld [vmem:[%s4862_s1 + $0xb0] sm:$0xff]  ;;  %v3742_v10 = vld [vmem:[%s4862_s1 + $0xa8] sm:$0xff] }
   0x4   :  { %v3752_v3 = vld [vmem:[%s4862_s1 + $0xf8] sm:$0xff]  ;;  %2175 = vmatpush.bf16.msra.mxu2 %v3744_v2  ;;  %v3751_v7 = vld [vmem:[%s4862_s1 + $0xf0] sm:$0xff]  ;;  %v3750_v11 = vld [vmem:[%s4862_s1 + $0xe8] sm:$0xff] }
   0x5   :  { %2188 = vmatpush.bf16.msra.mxu3 %v3752_v3  ;;  %v3725_v12 = vld [vmem:[%s4862_s1 + $0x20] sm:$0xff]  ;;  %v3724_v16 = vld [vmem:[%s4862_s1 + $0x18] sm:$0xff]  ;;  %v3723_v20 = vld [vmem:[%s4862_s1 + $0x10] sm:$0xff] }
   0x6   :  { %2150 = vmatpush.bf16.msra.mxu0 %v3727_v4  ;;  %v3733_v13 = vld [vmem:[%s4862_s1 + $0x60] sm:$0xff]  ;;  %v3732_v17 = vld [vmem:[%s4862_s1 + $0x58] sm:$0xff]  ;;  %v3731_v21 = vld [vmem:[%s4862_s1 + $0x50] sm:$0xff] }
   0x7   :  { %2163 = vmatpush.bf16.msra.mxu1 %v3735_v5  ;;  %v3741_v14 = vld [vmem:[%s4862_s1 + $0xa0] sm:$0xff]  ;;  %v3740_v18 = vld [vmem:[%s4862_s1 + $0x98] sm:$0xff]  ;;  %v3739_v23 = vld [vmem:[%s4862_s1 + $0x90] sm:$0xff] }
   0x8   :  { %2176 = vmatpush.bf16.msra.mxu2 %v3743_v6  ;;  %v3749_v15 = vld [vmem:[%s4862_s1 + $0xe0] sm:$0xff]  ;;  %v3748_v19 = vld [vmem:[%s4862_s1 + $0xd8] sm:$0xff]  ;;  %v3747_v24 = vld [vmem:[%s4862_s1 + $0xd0] sm:$0xff] }
   0x9   :  { %2189 = vmatpush.bf16.msra.mxu3 %v3751_v7  ;;  %v21_v22 = vld [vmem:[%s4861_s0] sm:$0xff] }
   0xa   :  { %2151 = vmatpush.bf16.msra.mxu0 %v3726_v8  ;;  %542 = vst [vmem:[#allocation1] ss:$9 sm:$0xff] %v21_v22 }
   0xb   :  { %2164 = vmatpush.bf16.msra.mxu1 %v3734_v9 }
   0xc   :  { %2177 = vmatpush.bf16.msra.mxu2 %v3742_v10 }
   0xd   :  { %2190 = vmatpush.bf16.msra.mxu3 %v3750_v11 }
   0xe   :  { %2152 = vmatpush.bf16.msra.mxu0 %v3725_v12 }
   0xf   :  { %2165 = vmatpush.bf16.msra.mxu1 %v3733_v13 }
  0x10   :  { %2178 = vmatpush.bf16.msra.mxu2 %v3741_v14 }
  0x11   :  { %2191 = vmatpush.bf16.msra.mxu3 %v3749_v15 }
  0x12   :  { %2153 = vmatpush.bf16.msra.mxu0 %v3724_v16 }
  0x13   :  { %2166 = vmatpush.bf16.msra.mxu1 %v3732_v17 }
  0x14   :  { %2179 = vmatpush.bf16.msra.mxu2 %v3740_v18 }
  0x15   :  { %2192 = vmatpush.bf16.msra.mxu3 %v3748_v19 }
  0x16   :  { %10 = vsyncpa [#allocation3], 0  ;;  %2154 = vmatpush.bf16.msra.mxu0 %v3723_v20  ;;  %v3722_v25 = vld [vmem:[%s4862_s1 + $0x8] sm:$0xff]  ;;  %v3721_v29 = vld [vmem:[%s4862_s1] sm:$0xff]  ;;  %s4014_s18 = smov [#allocation2]   ;;  %s2656_s22 = sshll.u32 %s4866_s5, 4  ;;  %s2657_s22 = int_to_ptr.hbm [resolvable:$true] %s2656_s22 }
  0x17   :  { %2167 = vmatpush.bf16.msra.mxu1 %v3731_v21  ;;  %v3730_v26 = vld [vmem:[%s4862_s1 + $0x48] sm:$0xff]  ;;  %v3729_v30 = vld [vmem:[%s4862_s1 + $0x40] sm:$0xff]  ;;  %v3760_v33 = vld [vmem:[%s4862_s1 + $0x138] sm:$0xff]  ;;  %s2654_s19 = sshll.u32 %s4014_s18, 4  ;;  %s2655_s19 = int_to_ptr.vmem [resolvable:$true] %s2654_s19 }
  0x18   :  { %2180 = vmatpush.bf16.msra.mxu2 %v3739_v23  ;;  %v3738_v27 = vld [vmem:[%s4862_s1 + $0x88] sm:$0xff]  ;;  %v3737_v31 = vld [vmem:[%s4862_s1 + $0x80] sm:$0xff]  ;;  %v3768_v34 = vld [vmem:[%s4862_s1 + $0x178] sm:$0xff] }
  0x19   :  { %2193 = vmatpush.bf16.msra.mxu3 %v3747_v24  ;;  %v3746_v28 = vld [vmem:[%s4862_s1 + $0xc8] sm:$0xff]  ;;  %v3745_v32 = vld [vmem:[%s4862_s1 + $0xc0] sm:$0xff]  ;;  %v3776_v35 = vld [vmem:[%s4862_s1 + $0x1b8] sm:$0xff] }
  0x1a   :  { %2155 = vmatpush.bf16.msra.mxu0 %v3722_v25  ;;  %v3784_v36 = vld [vmem:[%s4862_s1 + $0x1f8] sm:$0xff]  ;;  %v3759_v37 = vld [vmem:[%s4862_s1 + $0x130] sm:$0xff]  ;;  %v543_v39 = vld [vmem:[#allocation1] sm:$0xff] }
  0x1b   :  { %2168 = vmatpush.bf16.msra.mxu1 %v3730_v26  ;;  %v545_v38 = vld [vmem:[#allocation1 + $0x12] sm:$0xff]  ;;  %v546_v41 = vld [vmem:[#allocation1 + $0x1b] sm:$0xff]  ;;  %v544_v42 = vld [vmem:[#allocation1 + $0x9] sm:$0xff] }
  0x1c   :  { %2181 = vmatpush.bf16.msra.mxu2 %v3738_v27  ;;  %v3767_v40 = vld [vmem:[%s4862_s1 + $0x170] sm:$0xff]  ;;  %v3758_v45 = vld [vmem:[%s4862_s1 + $0x128] sm:$0xff]  ;;  %v3757_v49 = vld [vmem:[%s4862_s1 + $0x120] sm:$0xff] }
  0x1d   :  { %2194 = vmatpush.bf16.msra.mxu3 %v3746_v28  ;;  %v3775_v43 = vld [vmem:[%s4862_s1 + $0x1b0] sm:$0xff]  ;;  %v3766_v46 = vld [vmem:[%s4862_s1 + $0x168] sm:$0xff]  ;;  %v3765_v50 = vld [vmem:[%s4862_s1 + $0x160] sm:$0xff] }
  0x1e   :  { %2156 = vmatpush.bf16.msra.mxu0 %v3721_v29  ;;  %v3783_v44 = vld [vmem:[%s4862_s1 + $0x1f0] sm:$0xff]  ;;  %v3774_v47 = vld [vmem:[%s4862_s1 + $0x1a8] sm:$0xff]  ;;  %v550_v54 = vld [vmem:[#allocation1 + $0x3f] sm:$0xff] }
  0x1f   :  { %2169 = vmatpush.bf16.msra.mxu1 %v3729_v30  ;;  %v3782_v48 = vld [vmem:[%s4862_s1 + $0x1e8] sm:$0xff]  ;;  %v549_v51 = vld [vmem:[#allocation1 + $0x36] sm:$0xff]  ;;  %v3773_v56 = vld [vmem:[%s4862_s1 + $0x1a0] sm:$0xff] }
  0x20   :  { %2182 = vmatpush.bf16.msra.mxu2 %v3737_v31  ;;  %v22_v52 = vld [vmem:[%s4861_s0 + $0x8] sm:$0xff]  ;;  %v3781_v57 = vld [vmem:[%s4862_s1 + $0x1e0] sm:$0xff]  ;;  %v3756_v58 = vld [vmem:[%s4862_s1 + $0x118] sm:$0xff] }
  0x21   :  { %2195 = vmatpush.bf16.msra.mxu3 %v3745_v32  ;;  %2157 = vmatmul.bf16.vlgmr.msra.gmra.mxu0 %v543_v39  ;;  %v547_v53 = vld [vmem:[#allocation1 + $0x24] sm:$0xff]  ;;  %v548_v55 = vld [vmem:[#allocation1 + $0x2d] sm:$0xff]  ;;  %v3764_v59 = vld [vmem:[%s4862_s1 + $0x158] sm:$0xff] }
  0x22   :  { %2201 = vmatpush.bf16.msrb.mxu0 %v3760_v33  ;;  %2170 = vmatmul.bf16.vlgmr.msra.gmra.mxu1 %v544_v42  ;;  %552 = vst [vmem:[#allocation1] ss:$9 sm:$0xff] %v22_v52  ;;  %v3772_v60 = vld [vmem:[%s4862_s1 + $0x198] sm:$0xff]  ;;  %v3755_v62 = vld [vmem:[%s4862_s1 + $0x110] sm:$0xff]  ;;  %v3754_v2 = vld [vmem:[%s4862_s1 + $0x108] sm:$0xff] }
  0x23   :  { %2214 = vmatpush.bf16.msrb.mxu1 %v3768_v34  ;;  %2183 = vmatmul.bf16.vlgmr.msra.gmra.mxu2 %v545_v38  ;;  %v3780_v61 = vld [vmem:[%s4862_s1 + $0x1d8] sm:$0xff]  ;;  %v3763_v63 = vld [vmem:[%s4862_s1 + $0x150] sm:$0xff]  ;;  %v3762_v3 = vld [vmem:[%s4862_s1 + $0x148] sm:$0xff] }
  0x24   :  { %2227 = vmatpush.bf16.msrb.mxu2 %v3776_v35  ;;  %2196 = vmatmul.bf16.vlgmr.msra.gmra.mxu3 %v546_v41  ;;  %v3771_v0 = vld [vmem:[%s4862_s1 + $0x190] sm:$0xff]  ;;  %v3770_v4 = vld [vmem:[%s4862_s1 + $0x188] sm:$0xff]  ;;  %v3753_v6 = vld [vmem:[%s4862_s1 + $0x100] sm:$0xff] }
  0x25   :  { %2240 = vmatpush.bf16.msrb.mxu3 %v3784_v36  ;;  %v3779_v1 = vld [vmem:[%s4862_s1 + $0x1d0] sm:$0xff]  ;;  %v3778_v5 = vld [vmem:[%s4862_s1 + $0x1c8] sm:$0xff]  ;;  %v3761_v7 = vld [vmem:[%s4862_s1 + $0x140] sm:$0xff] }
  0x26   :  { %2202 = vmatpush.bf16.msrb.mxu0 %v3759_v37  ;;  %v3769_v8 = vld [vmem:[%s4862_s1 + $0x180] sm:$0xff]  ;;  %v3792_v10 = vld [vmem:[%s4862_s1 + $0x238] sm:$0xff]  ;;  %v3791_v14 = vld [vmem:[%s4862_s1 + $0x230] sm:$0xff] }
  0x27   :  { %2215 = vmatpush.bf16.msrb.mxu1 %v3767_v40  ;;  %v3777_v9 = vld [vmem:[%s4862_s1 + $0x1c0] sm:$0xff]  ;;  %v3800_v11 = vld [vmem:[%s4862_s1 + $0x278] sm:$0xff]  ;;  %v3799_v15 = vld [vmem:[%s4862_s1 + $0x270] sm:$0xff] }
  0x28   :  { %2228 = vmatpush.bf16.msrb.mxu2 %v3775_v43  ;;  %v3808_v12 = vld [vmem:[%s4862_s1 + $0x2b8] sm:$0xff]  ;;  %v3807_v16 = vld [vmem:[%s4862_s1 + $0x2b0] sm:$0xff]  ;;  %v3790_v18 = vld [vmem:[%s4862_s1 + $0x228] sm:$0xff] }
  0x29   :  { %2241 = vmatpush.bf16.msrb.mxu3 %v3783_v44  ;;  %v3816_v13 = vld [vmem:[%s4862_s1 + $0x2f8] sm:$0xff]  ;;  %v3815_v17 = vld [vmem:[%s4862_s1 + $0x2f0] sm:$0xff]  ;;  %v3798_v19 = vld [vmem:[%s4862_s1 + $0x268] sm:$0xff] }
  0x2a   :  { %2203 = vmatpush.bf16.msrb.mxu0 %v3758_v45  ;;  %v3806_v20 = vld [vmem:[%s4862_s1 + $0x2a8] sm:$0xff]  ;;  %v3789_v22 = vld [vmem:[%s4862_s1 + $0x220] sm:$0xff]  ;;  %v3788_v26 = vld [vmem:[%s4862_s1 + $0x218] sm:$0xff] }
  0x2b   :  { %2216 = vmatpush.bf16.msrb.mxu1 %v3766_v46  ;;  %v3814_v21 = vld [vmem:[%s4862_s1 + $0x2e8] sm:$0xff]  ;;  %v3797_v23 = vld [vmem:[%s4862_s1 + $0x260] sm:$0xff]  ;;  %v3796_v27 = vld [vmem:[%s4862_s1 + $0x258] sm:$0xff] }
  0x2c   :  { %2229 = vmatpush.bf16.msrb.mxu2 %v3774_v47  ;;  %v3805_v24 = vld [vmem:[%s4862_s1 + $0x2a0] sm:$0xff]  ;;  %v3804_v28 = vld [vmem:[%s4862_s1 + $0x298] sm:$0xff]  ;;  %v3787_v30 = vld [vmem:[%s4862_s1 + $0x210] sm:$0xff] }
  0x2d   :  { %2242 = vmatpush.bf16.msrb.mxu3 %v3782_v48  ;;  %v3813_v25 = vld [vmem:[%s4862_s1 + $0x2e0] sm:$0xff]  ;;  %v3812_v29 = vld [vmem:[%s4862_s1 + $0x2d8] sm:$0xff]  ;;  %v3795_v31 = vld [vmem:[%s4862_s1 + $0x250] sm:$0xff] }
  0x2e   :  { %2204 = vmatpush.bf16.msrb.mxu0 %v3757_v49  ;;  %v3803_v32 = vld [vmem:[%s4862_s1 + $0x290] sm:$0xff]  ;;  %v3786_v34 = vld [vmem:[%s4862_s1 + $0x208] sm:$0xff]  ;;  %v3785_v38 = vld [vmem:[%s4862_s1 + $0x200] sm:$0xff] }
  0x2f   :  { %2217 = vmatpush.bf16.msrb.mxu1 %v3765_v50  ;;  %v3811_v33 = vld [vmem:[%s4862_s1 + $0x2d0] sm:$0xff]  ;;  %v3794_v35 = vld [vmem:[%s4862_s1 + $0x248] sm:$0xff]  ;;  %v3793_v39 = vld [vmem:[%s4862_s1 + $0x240] sm:$0xff] }
  0x30   :  { %2230 = vmatpush.bf16.msrb.mxu2 %v3773_v56  ;;  %v3802_v36 = vld [vmem:[%s4862_s1 + $0x288] sm:$0xff]  ;;  %v3801_v40 = vld [vmem:[%s4862_s1 + $0x280] sm:$0xff]  ;;  %v3824_v42 = vld [vmem:[%s4862_s1 + $0x338] sm:$0xff] }
  0x31   :  { %2243 = vmatpush.bf16.msrb.mxu3 %v3781_v57  ;;  %v3810_v37 = vld [vmem:[%s4862_s1 + $0x2c8] sm:$0xff]  ;;  %v3809_v41 = vld [vmem:[%s4862_s1 + $0x2c0] sm:$0xff]  ;;  %v3832_v43 = vld [vmem:[%s4862_s1 + $0x378] sm:$0xff] }
  0x32   :  { %2205 = vmatpush.bf16.msrb.mxu0 %v3756_v58  ;;  %v3840_v44 = vld [vmem:[%s4862_s1 + $0x3b8] sm:$0xff]  ;;  %v553_v46 = vld [vmem:[#allocation1] sm:$0xff]  ;;  %v554_v48 = vld [vmem:[#allocation1 + $0x9] sm:$0xff] }
  0x33   :  { %2218 = vmatpush.bf16.msrb.mxu1 %v3764_v59  ;;  %v3848_v45 = vld [vmem:[%s4862_s1 + $0x3f8] sm:$0xff]  ;;  %v3823_v50 = vld [vmem:[%s4862_s1 + $0x330] sm:$0xff]  ;;  %v3838_v56 = vld [vmem:[%s4862_s1 + $0x3a8] sm:$0xff] }
  0x34   :  { %2231 = vmatpush.bf16.msrb.mxu2 %v3772_v60  ;;  %v555_v47 = vld [vmem:[#allocation1 + $0x12] sm:$0xff]  ;;  %v556_v49 = vld [vmem:[#allocation1 + $0x1b] sm:$0xff]  ;;  %v3846_v57 = vld [vmem:[%s4862_s1 + $0x3e8] sm:$0xff] }
  0x35   :  { %2244 = vmatpush.bf16.msrb.mxu3 %v3780_v61  ;;  %v3839_v52 = vld [vmem:[%s4862_s1 + $0x3b0] sm:$0xff]  ;;  %v3821_v58 = vld [vmem:[%s4862_s1 + $0x320] sm:$0xff] }
  0x36   :  { %2206 = vmatpush.bf16.msrb.mxu0 %v3755_v62  ;;  %v3829_v59 = vld [vmem:[%s4862_s1 + $0x360] sm:$0xff]  ;;  %v3820_v62 = vld [vmem:[%s4862_s1 + $0x318] sm:$0xff] }
  0x37   :  { %2219 = vmatpush.bf16.msrb.mxu1 %v3763_v63  ;;  %v3837_v60 = vld [vmem:[%s4862_s1 + $0x3a0] sm:$0xff]  ;;  %v3828_v63 = vld [vmem:[%s4862_s1 + $0x358] sm:$0xff] }
  0x38   :  { %2232 = vmatpush.bf16.msrb.mxu2 %v3771_v0  ;;  %v3845_v61 = vld [vmem:[%s4862_s1 + $0x3e0] sm:$0xff]  ;;  %v3836_v0 = vld [vmem:[%s4862_s1 + $0x398] sm:$0xff] }
  0x39   :  { %2245 = vmatpush.bf16.msrb.mxu3 %v3779_v1  ;;  %v3844_v1 = vld [vmem:[%s4862_s1 + $0x3d8] sm:$0xff] }
  0x3a   :  { %2207 = vmatpush.bf16.msrb.mxu0 %v3754_v2  ;;  %v3819_v2 = vld [vmem:[%s4862_s1 + $0x310] sm:$0xff] }
  0x3b   :  { %2220 = vmatpush.bf16.msrb.mxu1 %v3762_v3  ;;  %v3827_v3 = vld [vmem:[%s4862_s1 + $0x350] sm:$0xff] }
  0x3c   :  { %2233 = vmatpush.bf16.msrb.mxu2 %v3770_v4  ;;  %v3835_v4 = vld [vmem:[%s4862_s1 + $0x390] sm:$0xff] }
  0x3d   :  { %2246 = vmatpush.bf16.msrb.mxu3 %v3778_v5  ;;  %v3843_v5 = vld [vmem:[%s4862_s1 + $0x3d0] sm:$0xff] }
  0x3e   :  { %2208 = vmatpush.bf16.msrb.mxu0 %v3753_v6  ;;  %v3818_v6 = vld [vmem:[%s4862_s1 + $0x308] sm:$0xff] }
  0x3f   :  { %2221 = vmatpush.bf16.msrb.mxu1 %v3761_v7  ;;  %v3826_v7 = vld [vmem:[%s4862_s1 + $0x348] sm:$0xff] }
  0x40   :  { %2234 = vmatpush.bf16.msrb.mxu2 %v3769_v8  ;;  %v3834_v8 = vld [vmem:[%s4862_s1 + $0x388] sm:$0xff] }
  0x41   :  { %2247 = vmatpush.bf16.msrb.mxu3 %v3777_v9  ;;  %2209 = vmatmul.bf16.vlgmr.msrb.gmra.mxu0 %v547_v53  ;;  %v3847_v53 = vld [vmem:[%s4862_s1 + $0x3f0] sm:$0xff]  ;;  %v3842_v9 = vld [vmem:[%s4862_s1 + $0x3c8] sm:$0xff] }
  0x42   :  { %2253 = vmatpush.bf16.msra.mxu0 %v3792_v10  ;;  %2222 = vmatmul.bf16.vlgmr.msrb.gmra.mxu1 %v548_v55  ;;  %v3830_v55 = vld [vmem:[%s4862_s1 + $0x368] sm:$0xff] }
  0x43   :  { %2266 = vmatpush.bf16.msra.mxu1 %v3800_v11  ;;  %2235 = vmatmul.bf16.vlgmr.msrb.gmra.mxu2 %v549_v51  ;;  %v3831_v51 = vld [vmem:[%s4862_s1 + $0x370] sm:$0xff]  ;;  %v557_v10 = vld [vmem:[#allocation1 + $0x24] sm:$0xff] }
  0x44   :  { %2279 = vmatpush.bf16.msra.mxu2 %v3808_v12  ;;  %2248 = vmatmul.bf16.vlgmr.msrb.gmra.mxu3 %v550_v54  ;;  %v3822_v54 = vld [vmem:[%s4862_s1 + $0x328] sm:$0xff]  ;;  %v559_v11 = vld [vmem:[#allocation1 + $0x36] sm:$0xff] }
  0x45   :  { %2292 = vmatpush.bf16.msra.mxu3 %v3816_v13  ;;  %v558_v12 = vld [vmem:[#allocation1 + $0x2d] sm:$0xff]  ;;  %v560_v13 = vld [vmem:[#allocation1 + $0x3f] sm:$0xff] }
  0x46   :  { %2254 = vmatpush.bf16.msra.mxu0 %v3791_v14  ;;  %v23_v14 = vld [vmem:[%s4861_s0 + $0x10] sm:$0xff] }
  0x47   :  { %2267 = vmatpush.bf16.msra.mxu1 %v3799_v15  ;;  %562 = vst [vmem:[#allocation1] ss:$9 sm:$0xff] %v23_v14  ;;  %v3817_v15 = vld [vmem:[%s4862_s1 + $0x300] sm:$0xff]  ;;  %v3900_v14 = vld [vmem:[%s4862_s1 + $0x598] sm:$0xff] }
  0x48   :  { %2280 = vmatpush.bf16.msra.mxu2 %v3807_v16  ;;  %v3825_v16 = vld [vmem:[%s4862_s1 + $0x340] sm:$0xff] }
  0x49   :  { %2293 = vmatpush.bf16.msra.mxu3 %v3815_v17  ;;  %v3833_v17 = vld [vmem:[%s4862_s1 + $0x380] sm:$0xff] }
  0x4a   :  { %2255 = vmatpush.bf16.msra.mxu0 %v3790_v18  ;;  %v3841_v18 = vld [vmem:[%s4862_s1 + $0x3c0] sm:$0xff] }
  0x4b   :  { %2268 = vmatpush.bf16.msra.mxu1 %v3798_v19  ;;  %v3856_v19 = vld [vmem:[%s4862_s1 + $0x438] sm:$0xff] }
  0x4c   :  { %2281 = vmatpush.bf16.msra.mxu2 %v3806_v20  ;;  %v3864_v20 = vld [vmem:[%s4862_s1 + $0x478] sm:$0xff] }
  0x4d   :  { %2294 = vmatpush.bf16.msra.mxu3 %v3814_v21  ;;  %v3872_v21 = vld [vmem:[%s4862_s1 + $0x4b8] sm:$0xff] }
  0x4e   :  { %2256 = vmatpush.bf16.msra.mxu0 %v3789_v22  ;;  %v3880_v22 = vld [vmem:[%s4862_s1 + $0x4f8] sm:$0xff] }
  0x4f   :  { %2269 = vmatpush.bf16.msra.mxu1 %v3797_v23  ;;  %v3855_v23 = vld [vmem:[%s4862_s1 + $0x430] sm:$0xff] }
  0x50   :  { %2282 = vmatpush.bf16.msra.mxu2 %v3805_v24  ;;  %v3863_v24 = vld [vmem:[%s4862_s1 + $0x470] sm:$0xff] }
  0x51   :  { %2295 = vmatpush.bf16.msra.mxu3 %v3813_v25  ;;  %v3871_v25 = vld [vmem:[%s4862_s1 + $0x4b0] sm:$0xff] }
  0x52   :  { %2257 = vmatpush.bf16.msra.mxu0 %v3788_v26  ;;  %v3879_v26 = vld [vmem:[%s4862_s1 + $0x4f0] sm:$0xff] }
  0x53   :  { %2270 = vmatpush.bf16.msra.mxu1 %v3796_v27  ;;  %v3854_v27 = vld [vmem:[%s4862_s1 + $0x428] sm:$0xff] }
  0x54   :  { %2283 = vmatpush.bf16.msra.mxu2 %v3804_v28  ;;  %v3862_v28 = vld [vmem:[%s4862_s1 + $0x468] sm:$0xff] }
  0x55   :  { %2296 = vmatpush.bf16.msra.mxu3 %v3812_v29  ;;  %v3870_v29 = vld [vmem:[%s4862_s1 + $0x4a8] sm:$0xff] }
  0x56   :  { %2258 = vmatpush.bf16.msra.mxu0 %v3787_v30  ;;  %v3878_v30 = vld [vmem:[%s4862_s1 + $0x4e8] sm:$0xff] }
  0x57   :  { %2271 = vmatpush.bf16.msra.mxu1 %v3795_v31  ;;  %v3853_v31 = vld [vmem:[%s4862_s1 + $0x420] sm:$0xff] }
  0x58   :  { %2284 = vmatpush.bf16.msra.mxu2 %v3803_v32  ;;  %v3861_v32 = vld [vmem:[%s4862_s1 + $0x460] sm:$0xff] }
  0x59   :  { %2297 = vmatpush.bf16.msra.mxu3 %v3811_v33  ;;  %v3869_v33 = vld [vmem:[%s4862_s1 + $0x4a0] sm:$0xff] }
  0x5a   :  { %2259 = vmatpush.bf16.msra.mxu0 %v3786_v34  ;;  %v3877_v34 = vld [vmem:[%s4862_s1 + $0x4e0] sm:$0xff] }
  0x5b   :  { %2272 = vmatpush.bf16.msra.mxu1 %v3794_v35  ;;  %v3852_v35 = vld [vmem:[%s4862_s1 + $0x418] sm:$0xff] }
  0x5c   :  { %2285 = vmatpush.bf16.msra.mxu2 %v3802_v36  ;;  %v3860_v36 = vld [vmem:[%s4862_s1 + $0x458] sm:$0xff] }
  0x5d   :  { %2298 = vmatpush.bf16.msra.mxu3 %v3810_v37  ;;  %v3868_v37 = vld [vmem:[%s4862_s1 + $0x498] sm:$0xff] }
  0x5e   :  { %2260 = vmatpush.bf16.msra.mxu0 %v3785_v38  ;;  %v3876_v38 = vld [vmem:[%s4862_s1 + $0x4d8] sm:$0xff] }
  0x5f   :  { %2273 = vmatpush.bf16.msra.mxu1 %v3793_v39  ;;  %v3851_v39 = vld [vmem:[%s4862_s1 + $0x410] sm:$0xff] }
  0x60   :  { %2286 = vmatpush.bf16.msra.mxu2 %v3801_v40  ;;  %v3859_v40 = vld [vmem:[%s4862_s1 + $0x450] sm:$0xff] }
  0x61   :  { %2299 = vmatpush.bf16.msra.mxu3 %v3809_v41  ;;  %2261 = vmatmul.bf16.vlgmr.msra.gmra.mxu0 %v553_v46  ;;  %v3867_v41 = vld [vmem:[%s4862_s1 + $0x490] sm:$0xff]  ;;  %v3874_v46 = vld [vmem:[%s4862_s1 + $0x4c8] sm:$0xff] }
  0x62   :  { %2305 = vmatpush.bf16.msrb.mxu0 %v3824_v42  ;;  %2274 = vmatmul.bf16.vlgmr.msra.gmra.mxu1 %v554_v48  ;;  %v3875_v42 = vld [vmem:[%s4862_s1 + $0x4d0] sm:$0xff]  ;;  %v3857_v48 = vld [vmem:[%s4862_s1 + $0x440] sm:$0xff] }
  0x63   :  { %2318 = vmatpush.bf16.msrb.mxu1 %v3832_v43  ;;  %2287 = vmatmul.bf16.vlgmr.msra.gmra.mxu2 %v555_v47  ;;  %v3850_v43 = vld [vmem:[%s4862_s1 + $0x408] sm:$0xff]  ;;  %v3849_v47 = vld [vmem:[%s4862_s1 + $0x400] sm:$0xff] }
  0x64   :  { %2331 = vmatpush.bf16.msrb.mxu2 %v3840_v44  ;;  %2300 = vmatmul.bf16.vlgmr.msra.gmra.mxu3 %v556_v49  ;;  %v3858_v44 = vld [vmem:[%s4862_s1 + $0x448] sm:$0xff]  ;;  %v3865_v49 = vld [vmem:[%s4862_s1 + $0x480] sm:$0xff] }
  0x65   :  { %2344 = vmatpush.bf16.msrb.mxu3 %v3848_v45  ;;  %v3866_v45 = vld [vmem:[%s4862_s1 + $0x488] sm:$0xff] }
  0x66   :  { %2306 = vmatpush.bf16.msrb.mxu0 %v3823_v50  ;;  %v3873_v50 = vld [vmem:[%s4862_s1 + $0x4c0] sm:$0xff] }
  0x67   :  { %2319 = vmatpush.bf16.msrb.mxu1 %v3831_v51  ;;  %v3888_v51 = vld [vmem:[%s4862_s1 + $0x538] sm:$0xff] }
  0x68   :  { %2332 = vmatpush.bf16.msrb.mxu2 %v3839_v52  ;;  %v3896_v52 = vld [vmem:[%s4862_s1 + $0x578] sm:$0xff] }
  0x69   :  { %2345 = vmatpush.bf16.msrb.mxu3 %v3847_v53  ;;  %v3904_v53 = vld [vmem:[%s4862_s1 + $0x5b8] sm:$0xff] }
  0x6a   :  { %2307 = vmatpush.bf16.msrb.mxu0 %v3822_v54  ;;  %v3912_v54 = vld [vmem:[%s4862_s1 + $0x5f8] sm:$0xff] }
  0x6b   :  { %2320 = vmatpush.bf16.msrb.mxu1 %v3830_v55  ;;  %v563_v55 = vld [vmem:[#allocation1] sm:$0xff] }
  0x6c   :  { %2333 = vmatpush.bf16.msrb.mxu2 %v3838_v56  ;;  %v565_v56 = vld [vmem:[#allocation1 + $0x12] sm:$0xff] }
  0x6d   :  { %2346 = vmatpush.bf16.msrb.mxu3 %v3846_v57  ;;  %v564_v57 = vld [vmem:[#allocation1 + $0x9] sm:$0xff] }
  0x6e   :  { %2308 = vmatpush.bf16.msrb.mxu0 %v3821_v58  ;;  %v566_v58 = vld [vmem:[#allocation1 + $0x1b] sm:$0xff] }
  0x6f   :  { %2321 = vmatpush.bf16.msrb.mxu1 %v3829_v59  ;;  %v3887_v59 = vld [vmem:[%s4862_s1 + $0x530] sm:$0xff] }
  0x70   :  { %2334 = vmatpush.bf16.msrb.mxu2 %v3837_v60  ;;  %v3895_v60 = vld [vmem:[%s4862_s1 + $0x570] sm:$0xff] }
  0x71   :  { %2347 = vmatpush.bf16.msrb.mxu3 %v3845_v61  ;;  %v3903_v61 = vld [vmem:[%s4862_s1 + $0x5b0] sm:$0xff] }
  0x72   :  { %2309 = vmatpush.bf16.msrb.mxu0 %v3820_v62  ;;  %v3911_v62 = vld [vmem:[%s4862_s1 + $0x5f0] sm:$0xff] }
  0x73   :  { %2322 = vmatpush.bf16.msrb.mxu1 %v3828_v63  ;;  %v3886_v63 = vld [vmem:[%s4862_s1 + $0x528] sm:$0xff] }
  0x74   :  { %2335 = vmatpush.bf16.msrb.mxu2 %v3836_v0  ;;  %v3894_v0 = vld [vmem:[%s4862_s1 + $0x568] sm:$0xff] }
  0x75   :  { %2348 = vmatpush.bf16.msrb.mxu3 %v3844_v1  ;;  %v3986_v1 = vld [vmem:[%s4863_s2] ss:$0 sm:$0xff] }
  0x76   :  { %2310 = vmatpush.bf16.msrb.mxu0 %v3819_v2  ;;  %v3902_v2 = vld [vmem:[%s4862_s1 + $0x5a8] sm:$0xff] }
  0x77   :  { %2323 = vmatpush.bf16.msrb.mxu1 %v3827_v3  ;;  %v3910_v3 = vld [vmem:[%s4862_s1 + $0x5e8] sm:$0xff] }
  0x78   :  { %2336 = vmatpush.bf16.msrb.mxu2 %v3835_v4 }
  0x79   :  { %2349 = vmatpush.bf16.msrb.mxu3 %v3843_v5  ;;  %v3885_v5 = vld [vmem:[%s4862_s1 + $0x520] sm:$0xff] }
  0x7a   :  { %2311 = vmatpush.bf16.msrb.mxu0 %v3818_v6  ;;  %v3893_v6 = vld [vmem:[%s4862_s1 + $0x560] sm:$0xff] }
  0x7b   :  { %2324 = vmatpush.bf16.msrb.mxu1 %v3826_v7 }
  0x7c   :  { %2337 = vmatpush.bf16.msrb.mxu2 %v3834_v8 }
  0x7d   :  { %2350 = vmatpush.bf16.msrb.mxu3 %v3842_v9  ;;  %v3901_v9 = vld [vmem:[%s4862_s1 + $0x5a0] sm:$0xff] }
  0x7e   :  { %2312 = vmatpush.bf16.msrb.mxu0 %v3817_v15  ;;  %v3908_v15 = vld [vmem:[%s4862_s1 + $0x5d8] sm:$0xff] }
  0x7f   :  { %2325 = vmatpush.bf16.msrb.mxu1 %v3825_v16 }
  0x80   :  { %2338 = vmatpush.bf16.msrb.mxu2 %v3833_v17 }
  0x81   :  { %2351 = vmatpush.bf16.msrb.mxu3 %v3841_v18  ;;  %2313 = vmatmul.bf16.vlgmr.msrb.gmra.mxu0 %v557_v10  ;;  %v3909_v10 = vld [vmem:[%s4862_s1 + $0x5e0] sm:$0xff] }
  0x82   :  { %2357 = vmatpush.bf16.msra.mxu0 %v3856_v19  ;;  %2326 = vmatmul.bf16.vlgmr.msrb.gmra.mxu1 %v558_v12  ;;  %v3884_v12 = vld [vmem:[%s4862_s1 + $0x518] sm:$0xff] }
  0x83   :  { %2370 = vmatpush.bf16.msra.mxu1 %v3864_v20  ;;  %2339 = vmatmul.bf16.vlgmr.msrb.gmra.mxu2 %v559_v11  ;;  %v3883_v20 = vld [vmem:[%s4862_s1 + $0x510] sm:$0xff] }
  0x84   :  { %2383 = vmatpush.bf16.msra.mxu2 %v3872_v21  ;;  %2352 = vmatmul.bf16.vlgmr.msrb.gmra.mxu3 %v560_v13  ;;  %v3892_v13 = vld [vmem:[%s4862_s1 + $0x558] sm:$0xff]  ;;  %v3891_v21 = vld [vmem:[%s4862_s1 + $0x550] sm:$0xff] }
  0x85   :  { %2396 = vmatpush.bf16.msra.mxu3 %v3880_v22 }
  0x86   :  { %2358 = vmatpush.bf16.msra.mxu0 %v3855_v23 }
  0x87   :  { %2371 = vmatpush.bf16.msra.mxu1 %v3863_v24  ;;  %v3899_v24 = vld [vmem:[%s4862_s1 + $0x590] sm:$0xff] }
  0x88   :  { %2384 = vmatpush.bf16.msra.mxu2 %v3871_v25  ;;  %v3907_v25 = vld [vmem:[%s4862_s1 + $0x5d0] sm:$0xff] }
  0x89   :  { %2397 = vmatpush.bf16.msra.mxu3 %v3879_v26  ;;  %v3882_v26 = vld [vmem:[%s4862_s1 + $0x508] sm:$0xff] }
  0x8a   :  { %2359 = vmatpush.bf16.msra.mxu0 %v3854_v27  ;;  %v3890_v27 = vld [vmem:[%s4862_s1 + $0x548] sm:$0xff] }
  0x8b   :  { %2372 = vmatpush.bf16.msra.mxu1 %v3862_v28  ;;  %v3898_v28 = vld [vmem:[%s4862_s1 + $0x588] sm:$0xff] }
  0x8c   :  { %2385 = vmatpush.bf16.msra.mxu2 %v3870_v29  ;;  %v3906_v29 = vld [vmem:[%s4862_s1 + $0x5c8] sm:$0xff] }
  0x8d   :  { %2398 = vmatpush.bf16.msra.mxu3 %v3878_v30  ;;  %v567_v30 = vld [vmem:[#allocation1 + $0x24] sm:$0xff] }
  0x8e   :  { %2360 = vmatpush.bf16.msra.mxu0 %v3853_v31  ;;  %v569_v31 = vld [vmem:[#allocation1 + $0x36] sm:$0xff] }
  0x8f   :  { %2373 = vmatpush.bf16.msra.mxu1 %v3861_v32 }
  0x90   :  { %2386 = vmatpush.bf16.msra.mxu2 %v3869_v33  ;;  %v568_v33 = vld [vmem:[#allocation1 + $0x2d] sm:$0xff] }
  0x91   :  { %2399 = vmatpush.bf16.msra.mxu3 %v3877_v34  ;;  %v570_v34 = vld [vmem:[#allocation1 + $0x3f] sm:$0xff] }
  0x92   :  { %2361 = vmatpush.bf16.msra.mxu0 %v3852_v35 }
  0x93   :  { %2374 = vmatpush.bf16.msra.mxu1 %v3860_v36  ;;  %v24_v36 = vld [vmem:[%s4861_s0 + $0x18] sm:$0xff] }
  0x94   :  { %2387 = vmatpush.bf16.msra.mxu2 %v3868_v37  ;;  %572 = vst [vmem:[#allocation1] ss:$9 sm:$0xff] %v24_v36  ;;  %v3881_v37 = vld [vmem:[%s4862_s1 + $0x500] sm:$0xff]  ;;  %v3974_v36 = vld [vmem:[%s4862_s1 + $0x7e8] sm:$0xff] }
  0x95   :  { %2400 = vmatpush.bf16.msra.mxu3 %v3876_v38  ;;  %v3889_v38 = vld [vmem:[%s4862_s1 + $0x540] sm:$0xff] }
  0x96   :  { %2362 = vmatpush.bf16.msra.mxu0 %v3851_v39  ;;  %v3897_v39 = vld [vmem:[%s4862_s1 + $0x580] sm:$0xff] }
  0x97   :  { %2375 = vmatpush.bf16.msra.mxu1 %v3859_v40  ;;  %v3905_v40 = vld [vmem:[%s4862_s1 + $0x5c0] sm:$0xff] }
  0x98   :  { %2388 = vmatpush.bf16.msra.mxu2 %v3867_v41  ;;  %v3920_v41 = vld [vmem:[%s4862_s1 + $0x638] sm:$0xff] }
  0x99   :  { %2401 = vmatpush.bf16.msra.mxu3 %v3875_v42  ;;  %v3928_v42 = vld [vmem:[%s4862_s1 + $0x678] sm:$0xff] }
  0x9a   :  { %2363 = vmatpush.bf16.msra.mxu0 %v3850_v43  ;;  %v3936_v43 = vld [vmem:[%s4862_s1 + $0x6b8] sm:$0xff] }
  0x9b   :  { %2376 = vmatpush.bf16.msra.mxu1 %v3858_v44  ;;  %v3944_v44 = vld [vmem:[%s4862_s1 + $0x6f8] sm:$0xff] }
  0x9c   :  { %2389 = vmatpush.bf16.msra.mxu2 %v3866_v45  ;;  %v3919_v45 = vld [vmem:[%s4862_s1 + $0x630] sm:$0xff] }
  0x9d   :  { %2402 = vmatpush.bf16.msra.mxu3 %v3874_v46  ;;  %v3927_v46 = vld [vmem:[%s4862_s1 + $0x670] sm:$0xff] }
  0x9e   :  { %2364 = vmatpush.bf16.msra.mxu0 %v3849_v47  ;;  %v2158_v4 = vpop.f32.mrf.mxu0  ;;  %v3935_v47 = vld [vmem:[%s4862_s1 + $0x6b0] sm:$0xff] }
  0x9f   :  { %2377 = vmatpush.bf16.msra.mxu1 %v3857_v48  ;;  %v2159_v7 = vadd.f32 %v3986_v1, %v2158_v4  ;;  %v2171_v8 = vpop.f32.mrf.mxu1  ;;  %v3943_v48 = vld [vmem:[%s4862_s1 + $0x6f0] sm:$0xff] }
  0xa0   :  { %2390 = vmatpush.bf16.msra.mxu2 %v3865_v49  ;;  %v3918_v49 = vld [vmem:[%s4862_s1 + $0x628] sm:$0xff] }
  0xa1   :  { %2403 = vmatpush.bf16.msra.mxu3 %v3873_v50  ;;  %2365 = vmatmul.bf16.vlgmr.msra.gmra.mxu0 %v563_v55  ;;  %v2172_v11 = vadd.f32 %v2171_v8, %v2159_v7  ;;  %v3926_v50 = vld [vmem:[%s4862_s1 + $0x668] sm:$0xff]  ;;  %v3925_v55 = vld [vmem:[%s4862_s1 + $0x660] sm:$0xff] }
  0xa2   :  { %2409 = vmatpush.bf16.msrb.mxu0 %v3888_v51  ;;  %2378 = vmatmul.bf16.vlgmr.msra.gmra.mxu1 %v564_v57  ;;  %v3934_v51 = vld [vmem:[%s4862_s1 + $0x6a8] sm:$0xff] }
  0xa3   :  { %2422 = vmatpush.bf16.msrb.mxu1 %v3896_v52  ;;  %2391 = vmatmul.bf16.vlgmr.msra.gmra.mxu2 %v565_v56  ;;  %v3942_v52 = vld [vmem:[%s4862_s1 + $0x6e8] sm:$0xff] }
  0xa4   :  { %2435 = vmatpush.bf16.msrb.mxu2 %v3904_v53  ;;  %2404 = vmatmul.bf16.vlgmr.msra.gmra.mxu3 %v566_v58  ;;  %v3933_v58 = vld [vmem:[%s4862_s1 + $0x6a0] sm:$0xff] }
  0xa5   :  { %2448 = vmatpush.bf16.msrb.mxu3 %v3912_v54  ;;  %v3917_v54 = vld [vmem:[%s4862_s1 + $0x620] sm:$0xff] }
  0xa6   :  { %2410 = vmatpush.bf16.msrb.mxu0 %v3887_v59  ;;  %v2184_v16 = vpop.f32.mrf.mxu2  ;;  %v2160_v19 = vpop.f32.mrf.mxu0  ;;  %v3941_v59 = vld [vmem:[%s4862_s1 + $0x6e0] sm:$0xff] }
  0xa7   :  { %2423 = vmatpush.bf16.msrb.mxu1 %v3895_v60  ;;  %v2185_v17 = vadd.f32 %v2184_v16, %v2172_v11  ;;  %v2197_v18 = vpop.f32.mrf.mxu3  ;;  %v2173_v23 = vpop.f32.mrf.mxu1  ;;  %v3914_v11 = vld [vmem:[%s4862_s1 + $0x608] sm:$0xff]  ;;  %v3929_v19 = vld [vmem:[%s4862_s1 + $0x680] sm:$0xff] }
  0xa8   :  { %2436 = vmatpush.bf16.msrb.mxu2 %v3903_v61  ;;  %v3916_v61 = vld [vmem:[%s4862_s1 + $0x618] sm:$0xff] }
  0xa9   :  { %2449 = vmatpush.bf16.msrb.mxu3 %v3911_v62  ;;  %v4603_v22 = vadd.f32 %v2197_v18, %v2185_v17  ;;  %v3924_v62 = vld [vmem:[%s4862_s1 + $0x658] sm:$0xff]  ;;  %v3913_v17 = vld [vmem:[%s4862_s1 + $0x600] sm:$0xff] }
  0xaa   :  { %2411 = vmatpush.bf16.msrb.mxu0 %v3886_v63  ;;  %v3932_v63 = vld [vmem:[%s4862_s1 + $0x698] sm:$0xff]  ;;  %v3921_v18 = vld [vmem:[%s4862_s1 + $0x640] sm:$0xff] }
  0xab   :  { %2424 = vmatpush.bf16.msrb.mxu1 %v3894_v0  ;;  %v3940_v0 = vld [vmem:[%s4862_s1 + $0x6d8] sm:$0xff] }
  0xac   :  { %2437 = vmatpush.bf16.msrb.mxu2 %v3902_v2  ;;  %v3968_v23 = vld [vmem:[%s4862_s1 + $0x7b8] sm:$0xff] }
  0xad   :  { %2450 = vmatpush.bf16.msrb.mxu3 %v3910_v3 }
  0xae   :  { %2412 = vmatpush.bf16.msrb.mxu0 %v3885_v5  ;;  %v2186_v32 = vpop.f32.mrf.mxu2  ;;  %v3915_v5 = vld [vmem:[%s4862_s1 + $0x610] sm:$0xff] }
  0xaf   :  { %2425 = vmatpush.bf16.msrb.mxu1 %v3893_v6  ;;  %v2199_v35 = vpop.f32.mrf.mxu3  ;;  %v3923_v6 = vld [vmem:[%s4862_s1 + $0x650] sm:$0xff] }
  0xb0   :  { %2438 = vmatpush.bf16.msrb.mxu2 %v3901_v9  ;;  %v3931_v9 = vld [vmem:[%s4862_s1 + $0x690] sm:$0xff]  ;;  %v3966_v35 = vld [vmem:[%s4862_s1 + $0x7a8] sm:$0xff] }
  0xb1   :  { %2451 = vmatpush.bf16.msrb.mxu3 %v3909_v10  ;;  %v3939_v10 = vld [vmem:[%s4862_s1 + $0x6d0] sm:$0xff] }
  0xb2   :  { %2413 = vmatpush.bf16.msrb.mxu0 %v3884_v12  ;;  %v3922_v12 = vld [vmem:[%s4862_s1 + $0x648] sm:$0xff]  ;;  %v3975_v32 = vld [vmem:[%s4862_s1 + $0x7f0] sm:$0xff] }
  0xb3   :  { %2426 = vmatpush.bf16.msrb.mxu1 %v3892_v13  ;;  %v3930_v13 = vld [vmem:[%s4862_s1 + $0x688] sm:$0xff] }
  0xb4   :  { %2439 = vmatpush.bf16.msrb.mxu2 %v3900_v14  ;;  %v3938_v14 = vld [vmem:[%s4862_s1 + $0x6c8] sm:$0xff] }
  0xb5   :  { %2452 = vmatpush.bf16.msrb.mxu3 %v3908_v15 }
  0xb6   :  { %2414 = vmatpush.bf16.msrb.mxu0 %v3883_v20  ;;  %v3937_v20 = vld [vmem:[%s4862_s1 + $0x6c0] sm:$0xff] }
  0xb7   :  { %2427 = vmatpush.bf16.msrb.mxu1 %v3891_v21  ;;  %v3952_v21 = vld [vmem:[%s4862_s1 + $0x738] sm:$0xff] }
  0xb8   :  { %2440 = vmatpush.bf16.msrb.mxu2 %v3899_v24  ;;  %v3976_v24 = vld [vmem:[%s4862_s1 + $0x7f8] sm:$0xff] }
  0xb9   :  { %2453 = vmatpush.bf16.msrb.mxu3 %v3907_v25  ;;  %v573_v25 = vld [vmem:[#allocation1] sm:$0xff] }
  0xba   :  { %2415 = vmatpush.bf16.msrb.mxu0 %v3882_v26  ;;  %v575_v26 = vld [vmem:[#allocation1 + $0x12] sm:$0xff] }
  0xbb   :  { %2428 = vmatpush.bf16.msrb.mxu1 %v3890_v27  ;;  %v574_v27 = vld [vmem:[#allocation1 + $0x9] sm:$0xff] }
  0xbc   :  { %2441 = vmatpush.bf16.msrb.mxu2 %v3898_v28  ;;  %v576_v28 = vld [vmem:[#allocation1 + $0x1b] sm:$0xff] }
  0xbd   :  { %2454 = vmatpush.bf16.msrb.mxu3 %v3906_v29  ;;  %v3951_v29 = vld [vmem:[%s4862_s1 + $0x730] sm:$0xff] }
  0xbe   :  { %2416 = vmatpush.bf16.msrb.mxu0 %v3881_v37  ;;  %v2210_v53 = vpop.f32.mrf.mxu0 }
  0xbf   :  { %2429 = vmatpush.bf16.msrb.mxu1 %v3889_v38  ;;  %v2211_v56 = vadd.f32 %v2210_v53, %v4603_v22  ;;  %v2223_v57 = vpop.f32.mrf.mxu1  ;;  %v3960_v22 = vld [vmem:[%s4862_s1 + $0x778] sm:$0xff] }
  0xc0   :  { %2442 = vmatpush.bf16.msrb.mxu2 %v3897_v39  ;;  %v3949_v39 = vld [vmem:[%s4862_s1 + $0x720] sm:$0xff] }
  0xc1   :  { %2455 = vmatpush.bf16.msrb.mxu3 %v3905_v40  ;;  %2417 = vmatmul.bf16.vlgmr.msrb.gmra.mxu0 %v567_v30  ;;  %v2224_v60 = vadd.f32 %v2223_v57, %v2211_v56  ;;  %v3959_v30 = vld [vmem:[%s4862_s1 + $0x770] sm:$0xff]  ;;  %v3957_v40 = vld [vmem:[%s4862_s1 + $0x760] sm:$0xff] }
  0xc2   :  { %2461 = vmatpush.bf16.msra.mxu0 %v3920_v41  ;;  %2430 = vmatmul.bf16.vlgmr.msrb.gmra.mxu1 %v568_v33  ;;  %v3950_v33 = vld [vmem:[%s4862_s1 + $0x728] sm:$0xff]  ;;  %v3963_v57 = vld [vmem:[%s4862_s1 + $0x790] sm:$0xff] }
  0xc3   :  { %2474 = vmatpush.bf16.msra.mxu1 %v3928_v42  ;;  %2443 = vmatmul.bf16.vlgmr.msrb.gmra.mxu2 %v569_v31  ;;  %v3967_v31 = vld [vmem:[%s4862_s1 + $0x7b0] sm:$0xff]  ;;  %v3965_v42 = vld [vmem:[%s4862_s1 + $0x7a0] sm:$0xff] }
  0xc4   :  { %2487 = vmatpush.bf16.msra.mxu2 %v3936_v43  ;;  %2456 = vmatmul.bf16.vlgmr.msrb.gmra.mxu3 %v570_v34  ;;  %v3958_v34 = vld [vmem:[%s4862_s1 + $0x768] sm:$0xff]  ;;  %v3973_v43 = vld [vmem:[%s4862_s1 + $0x7e0] sm:$0xff] }
  0xc5   :  { %2500 = vmatpush.bf16.msra.mxu3 %v3944_v44 }
  0xc6   :  { %2462 = vmatpush.bf16.msra.mxu0 %v3919_v45  ;;  %v2236_v1 = vpop.f32.mrf.mxu2  ;;  %v2212_v4 = vpop.f32.mrf.mxu0  ;;  %v3948_v45 = vld [vmem:[%s4862_s1 + $0x718] sm:$0xff] }
  0xc7   :  { %2475 = vmatpush.bf16.msra.mxu1 %v3927_v46  ;;  %v2237_v2 = vadd.f32 %v2236_v1, %v2224_v60  ;;  %v2249_v3 = vpop.f32.mrf.mxu3  ;;  %v2225_v8 = vpop.f32.mrf.mxu1  ;;  %v3956_v46 = vld [vmem:[%s4862_s1 + $0x758] sm:$0xff]  ;;  %v3954_v60 = vld [vmem:[%s4862_s1 + $0x748] sm:$0xff]  ;;  %v3945_v1 = vld [vmem:[%s4862_s1 + $0x700] sm:$0xff] }
  0xc8   :  { %2488 = vmatpush.bf16.msra.mxu2 %v3935_v47  ;;  %v3964_v47 = vld [vmem:[%s4862_s1 + $0x798] sm:$0xff]  ;;  %v3969_v4 = vld [vmem:[%s4862_s1 + $0x7c0] sm:$0xff] }
  0xc9   :  { %2501 = vmatpush.bf16.msra.mxu3 %v3943_v48  ;;  %v2250_v7 = vadd.f32 %v2249_v3, %v2237_v2  ;;  %v3972_v48 = vld [vmem:[%s4862_s1 + $0x7d8] sm:$0xff]  ;;  %v3953_v2 = vld [vmem:[%s4862_s1 + $0x740] sm:$0xff] }
  0xca   :  { %2463 = vmatpush.bf16.msra.mxu0 %v3918_v49  ;;  %v3961_v3 = vld [vmem:[%s4862_s1 + $0x780] sm:$0xff] }
  0xcb   :  { %2476 = vmatpush.bf16.msra.mxu1 %v3926_v50  ;;  %v580_v8 = vld [vmem:[#allocation1 + $0x3f] sm:$0xff] }
  0xcc   :  { %2489 = vmatpush.bf16.msra.mxu2 %v3934_v51 }
  0xcd   :  { %2502 = vmatpush.bf16.msra.mxu3 %v3942_v52 }
  0xce   :  { %2464 = vmatpush.bf16.msra.mxu0 %v3917_v54  ;;  %v2238_v15 = vpop.f32.mrf.mxu2  ;;  %v3947_v54 = vld [vmem:[%s4862_s1 + $0x710] sm:$0xff] }
  0xcf   :  { %2477 = vmatpush.bf16.msra.mxu1 %v3925_v55  ;;  %v2251_v16 = vpop.f32.mrf.mxu3  ;;  %v3955_v55 = vld [vmem:[%s4862_s1 + $0x750] sm:$0xff] }
  0xd0   :  { %2490 = vmatpush.bf16.msra.mxu2 %v3933_v58  ;;  %v3971_v58 = vld [vmem:[%s4862_s1 + $0x7d0] sm:$0xff] }
  0xd1   :  { %2503 = vmatpush.bf16.msra.mxu3 %v3941_v59  ;;  %v3946_v59 = vld [vmem:[%s4862_s1 + $0x708] sm:$0xff] }
  0xd2   :  { %2465 = vmatpush.bf16.msra.mxu0 %v3916_v61  ;;  %v3962_v61 = vld [vmem:[%s4862_s1 + $0x788] sm:$0xff] }
  0xd3   :  { %2478 = vmatpush.bf16.msra.mxu1 %v3924_v62  ;;  %v3970_v62 = vld [vmem:[%s4862_s1 + $0x7c8] sm:$0xff] }
  0xd4   :  { %2491 = vmatpush.bf16.msra.mxu2 %v3932_v63 }
  0xd5   :  { %2504 = vmatpush.bf16.msra.mxu3 %v3940_v0 }
  0xd6   :  { %2466 = vmatpush.bf16.msra.mxu0 %v3915_v5  ;;  %v577_v5 = vld [vmem:[#allocation1 + $0x24] sm:$0xff] }
  0xd7   :  { %2479 = vmatpush.bf16.msra.mxu1 %v3923_v6  ;;  %v578_v6 = vld [vmem:[#allocation1 + $0x2d] sm:$0xff] }
  0xd8   :  { %2492 = vmatpush.bf16.msra.mxu2 %v3931_v9 }
  0xd9   :  { %2505 = vmatpush.bf16.msra.mxu3 %v3939_v10 }
  0xda   :  { %2467 = vmatpush.bf16.msra.mxu0 %v3914_v11 }
  0xdb   :  { %2480 = vmatpush.bf16.msra.mxu1 %v3922_v12 }
  0xdc   :  { %2493 = vmatpush.bf16.msra.mxu2 %v3930_v13 }
  0xdd   :  { %2506 = vmatpush.bf16.msra.mxu3 %v3938_v14 }
  0xde   :  { %2468 = vmatpush.bf16.msra.mxu0 %v3913_v17  ;;  %v2262_v37 = vpop.f32.mrf.mxu0 }
  0xdf   :  { %2481 = vmatpush.bf16.msra.mxu1 %v3921_v18  ;;  %v2263_v38 = vadd.f32 %v2262_v37, %v2250_v7  ;;  %v2275_v41 = vpop.f32.mrf.mxu1  ;;  %v579_v7 = vld [vmem:[#allocation1 + $0x36] sm:$0xff] }
  0xe0   :  { %2494 = vmatpush.bf16.msra.mxu2 %v3929_v19  ;;  %v3984_v37 = vld [vmem:[%s4864_s3 + $0x38] sm:$0xff] }
  0xe1   :  { %2507 = vmatpush.bf16.msra.mxu3 %v3937_v20  ;;  %2469 = vmatmul.bf16.vlgmr.msra.gmra.mxu0 %v573_v25  ;;  %v2276_v44 = vadd.f32 %v2275_v41, %v2263_v38  ;;  %v3982_v41 = vld [vmem:[%s4864_s3 + $0x28] sm:$0xff] }
  0xe2   :  { %2513 = vmatpush.bf16.msrb.mxu0 %v3952_v21  ;;  %2482 = vmatmul.bf16.vlgmr.msra.gmra.mxu1 %v574_v27 }
  0xe3   :  { %2526 = vmatpush.bf16.msrb.mxu1 %v3960_v22  ;;  %2495 = vmatmul.bf16.vlgmr.msra.gmra.mxu2 %v575_v26 }
  0xe4   :  { %2539 = vmatpush.bf16.msrb.mxu2 %v3968_v23  ;;  %2508 = vmatmul.bf16.vlgmr.msra.gmra.mxu3 %v576_v28 }
  0xe5   :  { %2552 = vmatpush.bf16.msrb.mxu3 %v3976_v24 }
  0xe6   :  { %2514 = vmatpush.bf16.msrb.mxu0 %v3951_v29  ;;  %v2288_v49 = vpop.f32.mrf.mxu2  ;;  %v2264_v52 = vpop.f32.mrf.mxu0 }
  0xe7   :  { %2527 = vmatpush.bf16.msrb.mxu1 %v3959_v30  ;;  %v2289_v50 = vadd.f32 %v2288_v49, %v2276_v44  ;;  %v2301_v51 = vpop.f32.mrf.mxu3  ;;  %v2277_v56 = vpop.f32.mrf.mxu1  ;;  %v3981_v44 = vld [vmem:[%s4864_s3 + $0x20] sm:$0xff]  ;;  %v3978_v49 = vld [vmem:[%s4864_s3 + $0x8] sm:$0xff] }
  0xe8   :  { %2540 = vmatpush.bf16.msrb.mxu2 %v3967_v31 }
  0xe9   :  { %2553 = vmatpush.bf16.msrb.mxu3 %v3975_v32  ;;  %v2302_v53 = vadd.f32 %v2301_v51, %v2289_v50 }
  0xea   :  { %2515 = vmatpush.bf16.msrb.mxu0 %v3950_v33 }
  0xeb   :  { %2528 = vmatpush.bf16.msrb.mxu1 %v3958_v34 }
  0xec   :  { %2541 = vmatpush.bf16.msrb.mxu2 %v3966_v35 }
  0xed   :  { %2554 = vmatpush.bf16.msrb.mxu3 %v3974_v36 }
  0xee   :  { %2516 = vmatpush.bf16.msrb.mxu0 %v3949_v39  ;;  %v2290_v63 = vpop.f32.mrf.mxu2 }
  0xef   :  { %2529 = vmatpush.bf16.msrb.mxu1 %v3957_v40  ;;  %v2303_v0 = vpop.f32.mrf.mxu3  ;;  %v3983_v40 = vld [vmem:[%s4864_s3 + $0x30] sm:$0xff] }
  0xf0   :  { %2542 = vmatpush.bf16.msrb.mxu2 %v3965_v42 }
  0xf1   :  { %2555 = vmatpush.bf16.msrb.mxu3 %v3973_v43 }
  0xf2   :  { %2517 = vmatpush.bf16.msrb.mxu0 %v3948_v45  ;;  %v3980_v45 = vld [vmem:[%s4864_s3 + $0x18] sm:$0xff] }
  0xf3   :  { %2530 = vmatpush.bf16.msrb.mxu1 %v3956_v46 }
  0xf4   :  { %2543 = vmatpush.bf16.msrb.mxu2 %v3964_v47  ;;  %v3979_v47 = vld [vmem:[%s4864_s3 + $0x10] sm:$0xff] }
  0xf5   :  { %2556 = vmatpush.bf16.msrb.mxu3 %v3972_v48 }
  0xf6   :  { %2518 = vmatpush.bf16.msrb.mxu0 %v3947_v54  ;;  %v3977_v54 = vld [vmem:[%s4864_s3] sm:$0xff] }
  0xf7   :  { %2531 = vmatpush.bf16.msrb.mxu1 %v3955_v55 }
  0xf8   :  { %2544 = vmatpush.bf16.msrb.mxu2 %v3963_v57 }
  0xf9   :  { %2557 = vmatpush.bf16.msrb.mxu3 %v3971_v58 }
  0xfa   :  { %2519 = vmatpush.bf16.msrb.mxu0 %v3946_v59 }
  0xfb   :  { %2532 = vmatpush.bf16.msrb.mxu1 %v3954_v60 }
  0xfc   :  { %2545 = vmatpush.bf16.msrb.mxu2 %v3962_v61 }
  0xfd   :  { %2558 = vmatpush.bf16.msrb.mxu3 %v3970_v62 }
  0xfe   :  { %2520 = vmatpush.bf16.msrb.mxu0 %v3945_v1  ;;  %v2314_v9 = vpop.f32.mrf.mxu0 }
  0xff   :  { %2533 = vmatpush.bf16.msrb.mxu1 %v3953_v2  ;;  %v2315_v10 = vadd.f32 %v2314_v9, %v2302_v53  ;;  %v2327_v11 = vpop.f32.mrf.mxu1 }
 0x100   :  { %2546 = vmatpush.bf16.msrb.mxu2 %v3961_v3 }
 0x101   :  { %2559 = vmatpush.bf16.msrb.mxu3 %v3969_v4  ;;  %2521 = vmatmul.bf16.vlgmr.msrb.gmra.mxu0 %v577_v5  ;;  %v2328_v12 = vadd.f32 %v2327_v11, %v2315_v10 }
 0x102   :  { %2534 = vmatmul.bf16.vlgmr.msrb.gmra.mxu1 %v578_v6  ;;  %2635 = vmatpush.bf16.msra.mxu0 %v3984_v37 }
 0x103   :  { %2547 = vmatmul.bf16.vlgmr.msrb.gmra.mxu2 %v579_v7 }
 0x104   :  { %2560 = vmatmul.bf16.vlgmr.msrb.gmra.mxu3 %v580_v8 }
 0x106   :  { %v2340_v13 = vpop.f32.mrf.mxu2  ;;  %v2316_v16 = vpop.f32.mrf.mxu0  ;;  %2636 = vmatpush.bf16.msra.mxu0 %v3983_v40 }
 0x107   :  { %v2341_v14 = vadd.f32 %v2340_v13, %v2328_v12  ;;  %v2353_v15 = vpop.f32.mrf.mxu3  ;;  %v2329_v18 = vpop.f32.mrf.mxu1 }
 0x109   :  { %v2354_v17 = vadd.f32 %v2353_v15, %v2341_v14  ;;  %v3987_v15 = vld [vmem:[%s4865_s4] ss:$0 sm:$0xff] }
 0x10a   :  { %2637 = vmatpush.bf16.msra.mxu0 %v3982_v41 }
 0x10e   :  { %v2342_v19 = vpop.f32.mrf.mxu2  ;;  %2638 = vmatpush.bf16.msra.mxu0 %v3981_v44 }
 0x10f   :  { %v2355_v20 = vpop.f32.mrf.mxu3 }
 0x112   :  { %2639 = vmatpush.bf16.msra.mxu0 %v3980_v45 }
 0x116   :  { %2640 = vmatpush.bf16.msra.mxu0 %v3979_v47 }
 0x11a   :  { %2641 = vmatpush.bf16.msra.mxu0 %v3978_v49 }
 0x11e   :  { %v2366_v21 = vpop.f32.mrf.mxu0  ;;  %2642 = vmatpush.bf16.msra.mxu0 %v3977_v54 }
 0x11f   :  { %v2367_v22 = vadd.f32 %v2366_v21, %v2354_v17  ;;  %v2379_v23 = vpop.f32.mrf.mxu1 }
 0x121   :  { %v2380_v24 = vadd.f32 %v2379_v23, %v2367_v22 }
 0x126   :  { %v2392_v25 = vpop.f32.mrf.mxu2  ;;  %v2368_v28 = vpop.f32.mrf.mxu0 }
 0x127   :  { %v2393_v26 = vadd.f32 %v2392_v25, %v2380_v24  ;;  %v2405_v27 = vpop.f32.mrf.mxu3  ;;  %v2381_v30 = vpop.f32.mrf.mxu1 }
 0x129   :  { %v2406_v29 = vadd.f32 %v2405_v27, %v2393_v26 }
 0x12e   :  { %v2394_v31 = vpop.f32.mrf.mxu2 }
 0x12f   :  { %v2407_v32 = vpop.f32.mrf.mxu3 }
 0x13e   :  { %v2418_v33 = vpop.f32.mrf.mxu0 }
 0x13f   :  { %v2431_v34 = vpop.f32.mrf.mxu1  ;;  %v2419_v51 = vadd.f32 %v2418_v33, %v2406_v29 }
 0x141   :  { %v2432_v56 = vadd.f32 %v2431_v34, %v2419_v51 }
 0x146   :  { %v2444_v35 = vpop.f32.mrf.mxu2  ;;  %v2420_v38 = vpop.f32.mrf.mxu0 }
 0x147   :  { %v2457_v36 = vpop.f32.mrf.mxu3  ;;  %v2433_v39 = vpop.f32.mrf.mxu1  ;;  %v2445_v57 = vadd.f32 %v2444_v35, %v2432_v56 }
 0x149   :  { %v2458_v60 = vadd.f32 %v2457_v36, %v2445_v57 }
 0x14e   :  { %v2446_v42 = vpop.f32.mrf.mxu2 }
 0x14f   :  { %v2459_v43 = vpop.f32.mrf.mxu3 }
 0x15e   :  { %v2470_v46 = vpop.f32.mrf.mxu0 }
 0x15f   :  { %v2483_v48 = vpop.f32.mrf.mxu1  ;;  %v2471_v61 = vadd.f32 %v2470_v46, %v2458_v60 }
 0x161   :  { %v2484_v62 = vadd.f32 %v2483_v48, %v2471_v61 }
 0x166   :  { %v2496_v50 = vpop.f32.mrf.mxu2  ;;  %v2472_v53 = vpop.f32.mrf.mxu0 }
 0x167   :  { %v2509_v52 = vpop.f32.mrf.mxu3  ;;  %v2485_v55 = vpop.f32.mrf.mxu1  ;;  %v2497_v63 = vadd.f32 %v2496_v50, %v2484_v62 }
 0x169   :  { %v2510_v0 = vadd.f32 %v2509_v52, %v2497_v63 }
 0x16e   :  { %v2498_v58 = vpop.f32.mrf.mxu2 }
 0x16f   :  { %v2511_v59 = vpop.f32.mrf.mxu3 }
 0x17e   :  { %v2522_v1 = vpop.f32.mrf.mxu0 }
 0x17f   :  { %v2535_v2 = vpop.f32.mrf.mxu1  ;;  %v2523_v3 = vadd.f32 %v2522_v1, %v2510_v0 }
 0x181   :  { %v2536_v4 = vadd.f32 %v2535_v2, %v2523_v3 }
 0x186   :  { %v2548_v5 = vpop.f32.mrf.mxu2  ;;  %v2524_v8 = vpop.f32.mrf.mxu0 }
 0x187   :  { %v2561_v6 = vpop.f32.mrf.mxu3  ;;  %v2549_v7 = vadd.f32 %v2548_v5, %v2536_v4  ;;  %v2537_v9 = vpop.f32.mrf.mxu1 }
 0x189   :  { %v2562_v10 = vadd.f32 %v2561_v6, %v2549_v7 }
 0x18b   :  { %v2565_v11 = vmax.f32 %v2562_v10, 0.0 }
 0x18d   :  { %v2566_v12 = vpack.c.bf16 %v2565_v11, %v2565_v11 }
 0x18e   :  { %v2550_v13 = vpop.f32.mrf.mxu2 }
 0x18f   :  { %v2563_v14 = vpop.f32.mrf.mxu3  ;;  %2643 = vmatmul.bf16.vlgmr.msra.gmra.mxu0 %v2566_v12 }
 0x20c   :  { %v2644_v16 = vpop.f32.mrf.mxu0 }
 0x20d   :  { %v2645_v17 = vadd.f32 %v3987_v15, %v2644_v16 }
 0x20f   :  { %2648 = vst [vmem:[#allocation2] sm:$0x3] %v2645_v17 }
 0x210   :  { %2659 = dma.vmem_to_hbm [thread:$0]  %s2655_s19, 32, %s2657_s22, [#allocation3]  }
 0x214   :  { %v2646_v18 = vpop.f32.mrf.mxu0 }
 0x215   :  { %4012 = dma.done.wait [#allocation3], 32  }
 0x216   :  { %4013 = vsyncadd [#allocation3], 4294967264 }
 0x217   :  { %2664 = vsyncpa [#allocation3], 1 }

</bundles_post_ra>
